<compile_context>
chip_gen: v7x
topology: tpu7x:2x2x1
jax: 0.10.0
libtpu: 0.0.40
codegen_flags: <defaults>
</compile_context>

<pallas_src>
import jax
import jax.numpy as jnp
from jax.experimental import pallas as pl
from jax.experimental.pallas import tpu as pltpu
import numpy as np


def _make_kernels(tileH, W, Cin, Cout_s, K_pad, H, Hp):
    """Build the two pass kernels for a given tile geometry (closed over)."""
    tileM = tileH * W
    K = 9 * Cin
    need_mask = (Hp != H)  # padded H rows must be excluded from the BN statistics

    def _conv_tile(xm_ref, xh_ref, w_ref, xw_ref, slab_ref):
        # Assemble the (tileH+2, W+2, Cin) halo window from the two input blocks.
        xw_ref[0:tileH] = xm_ref[...]
        xw_ref[tileH:tileH + 2] = xh_ref[...]
        # im2col slab in VMEM, K ordered (kh, kw, cin) to match the weight layout.
        if K_pad > K:  # make the padded tail of the contraction explicitly zero
            slab_ref[:, K:] = jnp.zeros((tileM, K_pad - K), jnp.bfloat16)
        for kh in range(3):
            for kw in range(3):
                k0 = (kh * 3 + kw) * Cin
                piece = xw_ref[kh:kh + tileH, kw:kw + W, :].reshape(tileM, Cin)
                slab_ref[:, k0:k0 + Cin] = piece
        # Single fused MXU matmul, f32 accumulation.
        return jnp.dot(slab_ref[...], w_ref[...],
                       preferred_element_type=jnp.float32)      # (tileM, Cout_s)

    def stats_kernel(xm_ref, xh_ref, w_ref, s_ref, xw_ref, slab_ref):
        z = _conv_tile(xm_ref, xh_ref, w_ref, xw_ref, slab_ref)
        if need_mask:  # zero out rows that belong to the H padding
            t = pl.program_id(1)
            r = jax.lax.broadcasted_iota(jnp.int32, (tileM, 1), 0)
            z = jnp.where(r < (H - t * tileH) * W, z, 0.0)
        s_ref[0:1, :] = jnp.sum(z, axis=0, keepdims=True)
        s_ref[1:2, :] = jnp.sum(z * z, axis=0, keepdims=True)

    def norm_kernel(xm_ref, xh_ref, w_ref, scale_ref, shift_ref, o_ref,
                    xw_ref, slab_ref):
        z = _conv_tile(xm_ref, xh_ref, w_ref, xw_ref, slab_ref)
        y = jnp.maximum(z * scale_ref[...] + shift_ref[...], 0.0)   # (tileM, Cout_s)
        # channels-major, lane-dense store (Cout_s sublanes x tileM lanes)
        o_ref[...] = jnp.transpose(y).astype(o_ref.dtype)           # (Cout_s, tileM)

    return stats_kernel, norm_kernel


def de_conv_forward(x_nchw, w_oihw, conv_b, gamma, beta, *, max_tile_rows=2048):
    """x_nchw: (N, Cin, H, W); w_oihw: (Cout, Cin, 3, 3). Returns NCHW."""
    N, Cin, H, W = x_nchw.shape
    Cout = w_oihw.shape[0]
    Cout_s = ((Cout + 7) // 8) * 8                 # sublane-aligned channel count
    K = 9 * Cin
    K_pad = ((K + 127) // 128) * 128               # lane-aligned contraction depth

    # conv bias cancels exactly under training-mode BN (mean subtraction).
    del conv_b

    # ---- cdiv-based H tiling (tileH even, prefer multiples of 8) ----------------
    cap = max(1, max_tile_rows // W)
    tileH = min(H, cap)
    if tileH >= 8:
        tileH -= tileH % 8
    if tileH % 2:
        tileH += 1                                  # 2-row halo block needs even tileH
    num_ht = (H + tileH - 1) // tileH
    while N * num_ht < 2 and tileH > 2:             # keep both v7x TensorCores busy
        tileH = max(2, tileH // 2 + (tileH // 2) % 2)
        num_ht = (H + tileH - 1) // tileH
    Hp = num_ht * tileH
    tileM = tileH * W

    # ---- glue: NCHW -> padded NHWC, fed ONCE (halos handled inside the pipeline) -
    x_nhwc = jnp.transpose(x_nchw, (0, 2, 3, 1))                    # (N, H, W, Cin)
    xp = jnp.pad(x_nhwc, ((0, 0), (1, 1 + Hp - H), (1, 1), (0, 0)))
    xp = xp.astype(jnp.bfloat16)                                    # (N, Hp+2, W+2, Cin)

    # (Cout, Cin, 3, 3) -> (kh, kw, Cin, Cout) -> (K_pad, Cout_s), bf16
    w_mat = jnp.transpose(w_oihw, (2, 3, 1, 0)).reshape(K, Cout)
    w_mat = jnp.pad(w_mat, ((0, K_pad - K), (0, Cout_s - Cout))).astype(jnp.bfloat16)
    gamma_p = jnp.pad(gamma.astype(jnp.float32), (0, Cout_s - Cout))
    beta_p = jnp.pad(beta.astype(jnp.float32), (0, Cout_s - Cout))

    stats_kernel, norm_kernel = _make_kernels(tileH, W, Cin, Cout_s, K_pad, H, Hp)

    grid = (N, num_ht)
    compiler_params = pltpu.CompilerParams(
        dimension_semantics=("parallel", "parallel"),  # disjoint output blocks
        vmem_limit_bytes=32 * 1024 * 1024,
    )
    # Main rows [t*tileH, (t+1)*tileH) and the 2-row halo [(t+1)*tileH, +2),
    # both read straight from the SAME padded input array (no repack).
    xm_spec = pl.BlockSpec((None, tileH, W + 2, Cin), lambda n, t: (n, t, 0, 0))
    xh_spec = pl.BlockSpec((None, 2, W + 2, Cin),
                           lambda n, t: (n, (t + 1) * (tileH // 2), 0, 0))
    w_spec = pl.BlockSpec((K_pad, Cout_s), lambda n, t: (0, 0))
    scratch_shapes = [pltpu.VMEM((tileH + 2, W + 2, Cin), jnp.bfloat16),  # halo window
                      pltpu.VMEM((tileM, K_pad), jnp.bfloat16)]           # im2col slab

    # ---- pass 1: conv + per-tile partial BN statistics (tiny output) ----
    stats = pl.pallas_call(
        stats_kernel,
        out_shape=jax.ShapeDtypeStruct((N, num_ht, 2, Cout_s), jnp.float32),
        grid=grid,
        in_specs=[xm_spec, xh_spec, w_spec],
        out_specs=pl.BlockSpec((None, None, 2, Cout_s), lambda n, t: (n, t, 0, 0)),
        scratch_shapes=scratch_shapes,
        compiler_params=compiler_params,
    )(xp, xp, w_mat)

    # ---- tiny global reduction + folded BN affine (f32, outside the kernel) ----
    count = jnp.float32(N * H * W)
    total = jnp.sum(stats, axis=(0, 1))                      # (2, Cout_s)
    mean = total[0] / count
    var = jnp.maximum(total[1] / count - mean * mean, 0.0)   # biased variance
    inv = jax.lax.rsqrt(var + 1e-5)
    scale = (gamma_p * inv).reshape(1, Cout_s)
    shift = (beta_p - mean * gamma_p * inv).reshape(1, Cout_s)

    # ---- pass 2: conv recomputed, normalize + ReLU, channels-major store ----
    out = pl.pallas_call(
        norm_kernel,
        out_shape=jax.ShapeDtypeStruct((N, num_ht, Cout_s, tileM), jnp.float32),
        grid=grid,
        in_specs=[xm_spec, xh_spec, w_spec,
                  pl.BlockSpec((1, Cout_s), lambda n, t: (0, 0)),
                  pl.BlockSpec((1, Cout_s), lambda n, t: (0, 0))],
        out_specs=pl.BlockSpec((None, None, Cout_s, tileM),
                               lambda n, t: (n, t, 0, 0)),
        scratch_shapes=scratch_shapes,
        compiler_params=compiler_params,
    )(xp, xp, w_mat, scale, shift)

    # (N, num_ht, Cout_s, tileH, W) -> NCHW directly (no 128-padded channel slab)
    y = out.reshape(N, num_ht, Cout_s, tileH, W)
    y = jnp.transpose(y, (0, 2, 1, 3, 4)).reshape(N, Cout_s, Hp, W)
    return y[:, :Cout, :H, :].astype(x_nchw.dtype)


def de_conv_reference(x, w, cb, gamma, beta):
    """Plain-JAX reference mirroring the PyTorch module's forward (f32)."""
    z = jax.lax.conv_general_dilated(
        x, w, window_strides=(1, 1), padding=((1, 1), (1, 1)),
        dimension_numbers=("NCHW", "OIHW", "NCHW"))
    z = z + cb.reshape(1, -1, 1, 1)
    mean = jnp.mean(z, axis=(0, 2, 3), keepdims=True)
    var = jnp.mean((z - mean) ** 2, axis=(0, 2, 3), keepdims=True)
    y = (z - mean) * jax.lax.rsqrt(var + 1e-5)
    y = y * gamma.reshape(1, -1, 1, 1) + beta.reshape(1, -1, 1, 1)
    return jnp.maximum(y, 0.0)


if __name__ == "__main__":
    # Small shapes consistent with de_conv(in_ch=4, out_ch=8)
    N, Cin, Cout, H, W = 2, 4, 8, 16, 16

    key = jax.random.PRNGKey(0)
    kx, kw, kb, kg, kbeta = jax.random.split(key, 5)
    x = jax.random.normal(kx, (N, Cin, H, W), dtype=jnp.float32)
    conv_w = 0.1 * jax.random.normal(kw, (Cout, Cin, 3, 3), dtype=jnp.float32)
    conv_b = 0.1 * jax.random.normal(kb, (Cout,), dtype=jnp.float32)
    gamma = 1.0 + 0.1 * jax.random.normal(kg, (Cout,), dtype=jnp.float32)
    beta = 0.1 * jax.random.normal(kbeta, (Cout,), dtype=jnp.float32)

    out = jax.block_until_ready(de_conv_forward(x, conv_w, conv_b, gamma, beta))
    ref = jax.block_until_ready(de_conv_reference(x, conv_w, conv_b, gamma, beta))
    np.testing.assert_allclose(np.asarray(out), np.asarray(ref),
                               rtol=2e-2, atol=2e-2)

    print("KERNEL_OK")
</pallas_src>

<mosaic_0001>
module attributes {stable_mosaic.version = 11 : i64} {
  func.func @stats_kernel(%arg0: i32, %arg1: i32, %arg2: memref<1x16x18x4xbf16, #tpu.memory_space<vmem>>, %arg3: memref<1x2x18x4xbf16, #tpu.memory_space<vmem>>, %arg4: memref<128x8xbf16, #tpu.memory_space<vmem>>, %arg5: memref<1x1x2x8xf32, #tpu.memory_space<vmem>>, %arg6: memref<18x18x4xbf16, #tpu.memory_space<vmem>>, %arg7: memref<256x128xbf16, #tpu.memory_space<vmem>>) attributes {dimension_semantics = [#tpu.dimension_semantics<parallel>, #tpu.dimension_semantics<parallel>], iteration_bounds = array<i64: 2, 1>, scalar_prefetch = 0 : i64, scratch_operands = 2 : i64, tpu.core_type = #tpu.core_type<tc>, window_params = [{transform_indices = @transform_0, window_bounds = array<i64: 1, 16, 18, 4>}, {transform_indices = @transform_1, window_bounds = array<i64: 1, 2, 18, 4>}, {pipeline_mode = #tpu.pipeline_mode<synchronous>, transform_indices = @transform_2, window_bounds = array<i64: 128, 8>}, {transform_indices = @transform_3, window_bounds = array<i64: 1, 1, 2, 8>}]} {
    %c0 = arith.constant 0 : index
    %c0_0 = arith.constant 0 : index
    %c0_1 = arith.constant 0 : index
    %c0_2 = arith.constant 0 : index
    %0 = vector.load %arg2[%c0, %c0_0, %c0_1, %c0_2] : memref<1x16x18x4xbf16, #tpu.memory_space<vmem>>, vector<1x16x18x4xbf16>
    %1 = vector.shape_cast %0 : vector<1x16x18x4xbf16> to vector<16x18x4xbf16>
    %c0_3 = arith.constant 0 : index
    %c0_4 = arith.constant 0 : index
    %c0_5 = arith.constant 0 : index
    %2 = vector.load %arg6[%c0_3, %c0_4, %c0_5] : memref<18x18x4xbf16, #tpu.memory_space<vmem>>, vector<16x18x4xbf16>
    tpu.vector_store %arg6[%c0_3, %c0_4, %c0_5], %1 {strides = array<i32>} : memref<18x18x4xbf16, #tpu.memory_space<vmem>>, vector<16x18x4xbf16>,
    %c0_6 = arith.constant 0 : index
    %c0_7 = arith.constant 0 : index
    %c0_8 = arith.constant 0 : index
    %c0_9 = arith.constant 0 : index
    %3 = vector.load %arg3[%c0_6, %c0_7, %c0_8, %c0_9] : memref<1x2x18x4xbf16, #tpu.memory_space<vmem>>, vector<1x2x18x4xbf16>
    %4 = vector.shape_cast %3 : vector<1x2x18x4xbf16> to vector<2x18x4xbf16>
    %c16 = arith.constant 16 : index
    %c0_10 = arith.constant 0 : index
    %c0_11 = arith.constant 0 : index
    %5 = vector.load %arg6[%c16, %c0_10, %c0_11] : memref<18x18x4xbf16, #tpu.memory_space<vmem>>, vector<2x18x4xbf16>
    tpu.vector_store %arg6[%c16, %c0_10, %c0_11], %4 {strides = array<i32>} : memref<18x18x4xbf16, #tpu.memory_space<vmem>>, vector<2x18x4xbf16>,
    %cst = arith.constant 0.000000e+00 : bf16
    %6 = vector.broadcast %cst : bf16 to vector<256x92xbf16>
    %c0_12 = arith.constant 0 : index
    %c36 = arith.constant 36 : index
    %7 = vector.load %arg7[%c0_12, %c36] : memref<256x128xbf16, #tpu.memory_space<vmem>>, vector<256x92xbf16>
    tpu.vector_store %arg7[%c0_12, %c36], %6 {strides = array<i32>} : memref<256x128xbf16, #tpu.memory_space<vmem>>, vector<256x92xbf16>,
    %c0_13 = arith.constant 0 : index
    %c0_14 = arith.constant 0 : index
    %c0_15 = arith.constant 0 : index
    %8 = vector.load %arg6[%c0_13, %c0_14, %c0_15] : memref<18x18x4xbf16, #tpu.memory_space<vmem>>, vector<16x16x4xbf16>
    %9 = vector.shape_cast %8 : vector<16x16x4xbf16> to vector<256x4xbf16>
    %c0_16 = arith.constant 0 : index
    %c0_17 = arith.constant 0 : index
    %10 = vector.load %arg7[%c0_16, %c0_17] : memref<256x128xbf16, #tpu.memory_space<vmem>>, vector<256x4xbf16>
    tpu.vector_store %arg7[%c0_16, %c0_17], %9 {strides = array<i32>} : memref<256x128xbf16, #tpu.memory_space<vmem>>, vector<256x4xbf16>,
    %c0_18 = arith.constant 0 : index
    %c1 = arith.constant 1 : index
    %c0_19 = arith.constant 0 : index
    %11 = vector.load %arg6[%c0_18, %c1, %c0_19] : memref<18x18x4xbf16, #tpu.memory_space<vmem>>, vector<16x16x4xbf16>
    %12 = vector.shape_cast %11 : vector<16x16x4xbf16> to vector<256x4xbf16>
    %c0_20 = arith.constant 0 : index
    %c4 = arith.constant 4 : index
    %13 = vector.load %arg7[%c0_20, %c4] : memref<256x128xbf16, #tpu.memory_space<vmem>>, vector<256x4xbf16>
    tpu.vector_store %arg7[%c0_20, %c4], %12 {strides = array<i32>} : memref<256x128xbf16, #tpu.memory_space<vmem>>, vector<256x4xbf16>,
    %c0_21 = arith.constant 0 : index
    %c2 = arith.constant 2 : index
    %c0_22 = arith.constant 0 : index
    %14 = vector.load %arg6[%c0_21, %c2, %c0_22] : memref<18x18x4xbf16, #tpu.memory_space<vmem>>, vector<16x16x4xbf16>
    %15 = vector.shape_cast %14 : vector<16x16x4xbf16> to vector<256x4xbf16>
    %c0_23 = arith.constant 0 : index
    %c8 = arith.constant 8 : index
    %16 = vector.load %arg7[%c0_23, %c8] : memref<256x128xbf16, #tpu.memory_space<vmem>>, vector<256x4xbf16>
    tpu.vector_store %arg7[%c0_23, %c8], %15 {strides = array<i32>} : memref<256x128xbf16, #tpu.memory_space<vmem>>, vector<256x4xbf16>,
    %c1_24 = arith.constant 1 : index
    %c0_25 = arith.constant 0 : index
    %c0_26 = arith.constant 0 : index
    %17 = vector.load %arg6[%c1_24, %c0_25, %c0_26] : memref<18x18x4xbf16, #tpu.memory_space<vmem>>, vector<16x16x4xbf16>
    %18 = vector.shape_cast %17 : vector<16x16x4xbf16> to vector<256x4xbf16>
    %c0_27 = arith.constant 0 : index
    %c12 = arith.constant 12 : index
    %19 = vector.load %arg7[%c0_27, %c12] : memref<256x128xbf16, #tpu.memory_space<vmem>>, vector<256x4xbf16>
    tpu.vector_store %arg7[%c0_27, %c12], %18 {strides = array<i32>} : memref<256x128xbf16, #tpu.memory_space<vmem>>, vector<256x4xbf16>,
    %c1_28 = arith.constant 1 : index
    %c1_29 = arith.constant 1 : index
    %c0_30 = arith.constant 0 : index
    %20 = vector.load %arg6[%c1_28, %c1_29, %c0_30] : memref<18x18x4xbf16, #tpu.memory_space<vmem>>, vector<16x16x4xbf16>
    %21 = vector.shape_cast %20 : vector<16x16x4xbf16> to vector<256x4xbf16>
    %c0_31 = arith.constant 0 : index
    %c16_32 = arith.constant 16 : index
    %22 = vector.load %arg7[%c0_31, %c16_32] : memref<256x128xbf16, #tpu.memory_space<vmem>>, vector<256x4xbf16>
    tpu.vector_store %arg7[%c0_31, %c16_32], %21 {strides = array<i32>} : memref<256x128xbf16, #tpu.memory_space<vmem>>, vector<256x4xbf16>,
    %c1_33 = arith.constant 1 : index
    %c2_34 = arith.constant 2 : index
    %c0_35 = arith.constant 0 : index
    %23 = vector.load %arg6[%c1_33, %c2_34, %c0_35] : memref<18x18x4xbf16, #tpu.memory_space<vmem>>, vector<16x16x4xbf16>
    %24 = vector.shape_cast %23 : vector<16x16x4xbf16> to vector<256x4xbf16>
    %c0_36 = arith.constant 0 : index
    %c20 = arith.constant 20 : index
    %25 = vector.load %arg7[%c0_36, %c20] : memref<256x128xbf16, #tpu.memory_space<vmem>>, vector<256x4xbf16>
    tpu.vector_store %arg7[%c0_36, %c20], %24 {strides = array<i32>} : memref<256x128xbf16, #tpu.memory_space<vmem>>, vector<256x4xbf16>,
    %c2_37 = arith.constant 2 : index
    %c0_38 = arith.constant 0 : index
    %c0_39 = arith.constant 0 : index
    %26 = vector.load %arg6[%c2_37, %c0_38, %c0_39] : memref<18x18x4xbf16, #tpu.memory_space<vmem>>, vector<16x16x4xbf16>
    %27 = vector.shape_cast %26 : vector<16x16x4xbf16> to vector<256x4xbf16>
    %c0_40 = arith.constant 0 : index
    %c24 = arith.constant 24 : index
    %28 = vector.load %arg7[%c0_40, %c24] : memref<256x128xbf16, #tpu.memory_space<vmem>>, vector<256x4xbf16>
    tpu.vector_store %arg7[%c0_40, %c24], %27 {strides = array<i32>} : memref<256x128xbf16, #tpu.memory_space<vmem>>, vector<256x4xbf16>,
    %c2_41 = arith.constant 2 : index
    %c1_42 = arith.constant 1 : index
    %c0_43 = arith.constant 0 : index
    %29 = vector.load %arg6[%c2_41, %c1_42, %c0_43] : memref<18x18x4xbf16, #tpu.memory_space<vmem>>, vector<16x16x4xbf16>
    %30 = vector.shape_cast %29 : vector<16x16x4xbf16> to vector<256x4xbf16>
    %c0_44 = arith.constant 0 : index
    %c28 = arith.constant 28 : index
    %31 = vector.load %arg7[%c0_44, %c28] : memref<256x128xbf16, #tpu.memory_space<vmem>>, vector<256x4xbf16>
    tpu.vector_store %arg7[%c0_44, %c28], %30 {strides = array<i32>} : memref<256x128xbf16, #tpu.memory_space<vmem>>, vector<256x4xbf16>,
    %c2_45 = arith.constant 2 : index
    %c2_46 = arith.constant 2 : index
    %c0_47 = arith.constant 0 : index
    %32 = vector.load %arg6[%c2_45, %c2_46, %c0_47] : memref<18x18x4xbf16, #tpu.memory_space<vmem>>, vector<16x16x4xbf16>
    %33 = vector.shape_cast %32 : vector<16x16x4xbf16> to vector<256x4xbf16>
    %c0_48 = arith.constant 0 : index
    %c32 = arith.constant 32 : index
    %34 = vector.load %arg7[%c0_48, %c32] : memref<256x128xbf16, #tpu.memory_space<vmem>>, vector<256x4xbf16>
    tpu.vector_store %arg7[%c0_48, %c32], %33 {strides = array<i32>} : memref<256x128xbf16, #tpu.memory_space<vmem>>, vector<256x4xbf16>,
    %c0_49 = arith.constant 0 : index
    %c0_50 = arith.constant 0 : index
    %35 = vector.load %arg7[%c0_49, %c0_50] : memref<256x128xbf16, #tpu.memory_space<vmem>>, vector<256x128xbf16>
    %c0_51 = arith.constant 0 : index
    %c0_52 = arith.constant 0 : index
    %36 = vector.load %arg4[%c0_51, %c0_52] : memref<128x8xbf16, #tpu.memory_space<vmem>>, vector<128x8xbf16>
    %cst_53 = arith.constant dense<0.000000e+00> : vector<256x8xf32>
    %37 = tpu.matmul %35, %36, %cst_53 {dimension_numbers = #tpu.dot_dimension_numbers<[1], [0], [0], [1], [0, 0, 1, 1], [], []>} : vector<256x128xbf16>, vector<128x8xbf16>, vector<256x8xf32> -> vector<256x8xf32>
    %cst_54 = arith.constant dense<0.000000e+00> : vector<8xf32>
    %38 = vector.multi_reduction <add>, %37, %cst_54 [0] : vector<256x8xf32> to vector<8xf32>
    %39 = vector.shape_cast %38 : vector<8xf32> to vector<1x8xf32>
    %c0_55 = arith.constant 0 : index
    %c0_56 = arith.constant 0 : index
    %c0_57 = arith.constant 0 : index
    %c0_58 = arith.constant 0 : index
    %40 = vector.load %arg5[%c0_55, %c0_56, %c0_57, %c0_58] : memref<1x1x2x8xf32, #tpu.memory_space<vmem>>, vector<1x1x1x8xf32>
    %41 = vector.shape_cast %40 : vector<1x1x1x8xf32> to vector<1x8xf32>
    %42 = vector.shape_cast %39 : vector<1x8xf32> to vector<1x1x1x8xf32>
    tpu.vector_store %arg5[%c0_55, %c0_56, %c0_57, %c0_58], %42 {strides = array<i32>} : memref<1x1x2x8xf32, #tpu.memory_space<vmem>>, vector<1x1x1x8xf32>,
    %43 = arith.mulf %37, %37 : vector<256x8xf32>
    %cst_59 = arith.constant dense<0.000000e+00> : vector<8xf32>
    %44 = vector.multi_reduction <add>, %43, %cst_59 [0] : vector<256x8xf32> to vector<8xf32>
    %45 = vector.shape_cast %44 : vector<8xf32> to vector<1x8xf32>
    %c0_60 = arith.constant 0 : index
    %c0_61 = arith.constant 0 : index
    %c1_62 = arith.constant 1 : index
    %c0_63 = arith.constant 0 : index
    %46 = vector.load %arg5[%c0_60, %c0_61, %c1_62, %c0_63] : memref<1x1x2x8xf32, #tpu.memory_space<vmem>>, vector<1x1x1x8xf32>
    %47 = vector.shape_cast %46 : vector<1x1x1x8xf32> to vector<1x8xf32>
    %48 = vector.shape_cast %45 : vector<1x8xf32> to vector<1x1x1x8xf32>
    tpu.vector_store %arg5[%c0_60, %c0_61, %c1_62, %c0_63], %48 {strides = array<i32>} : memref<1x1x2x8xf32, #tpu.memory_space<vmem>>, vector<1x1x1x8xf32>,
    return
  }
  func.func @transform_0(%arg0: i32, %arg1: i32) -> (i32, i32, i32, i32) {
    %c0_i32 = arith.constant 0 : i32
    %c0_i32_0 = arith.constant 0 : i32
    %c0_i32_1 = arith.constant 0 : i32
    return %arg0, %arg1, %c0_i32, %c0_i32_0 : i32, i32, i32, i32
  }
  func.func @transform_1(%arg0: i32, %arg1: i32) -> (i32, i32, i32, i32) {
    %c1_i32 = arith.constant 1 : i32
    %0 = arith.addi %arg1, %c1_i32 : i32
    %c8_i32 = arith.constant 8 : i32
    %1 = arith.muli %0, %c8_i32 : i32
    %c0_i32 = arith.constant 0 : i32
    %c0_i32_0 = arith.constant 0 : i32
    %c0_i32_1 = arith.constant 0 : i32
    return %arg0, %1, %c0_i32, %c0_i32_0 : i32, i32, i32, i32
  }
  func.func @transform_2(%arg0: i32, %arg1: i32) -> (i32, i32) {
    %c0_i32 = arith.constant 0 : i32
    %c0_i32_0 = arith.constant 0 : i32
    %c0_i32_1 = arith.constant 0 : i32
    return %c0_i32, %c0_i32_0 : i32, i32
  }
  func.func @transform_3(%arg0: i32, %arg1: i32) -> (i32, i32, i32, i32) {
    %c0_i32 = arith.constant 0 : i32
    %c0_i32_0 = arith.constant 0 : i32
    %c0_i32_1 = arith.constant 0 : i32
    return %arg0, %arg1, %c0_i32, %c0_i32_0 : i32, i32, i32, i32
  }
}

</mosaic_0001>

<bundles_post_ra>
// kernel: tpu_custom_call.1
= control target key start
LH: loop header
LB: loop body
LE: loop exit
PB: predicated region body
PF: predicated region fallthrough
CT: control target
= control target key end

     0   :  { %8 = vsyncpa [#allocation5], 0  ;;  %s5669_s0 = inlined_call_operand.vmem [shape: bf16[2,18,18,4], index: 0, kind: input, shape index: {}]   ;;  %s5670_s1 = inlined_call_operand.vmem [shape: bf16[2,18,18,4], index: 1, kind: input, shape index: {}]   ;;  %s5671_s2 = inlined_call_operand.vmem [shape: bf16[128,8], index: 2, kind: input, shape index: {}]   ;;  %s5672_s3 = inlined_call_operand.hbm [shape: f32[2,1,2,8], index: 3, kind: output, shape index: {}]  }
   0x1   :  { %10 = vsyncpa [#allocation5 + $0x1], 0  ;;  %s4577_s12 = smov 0   ;;  %s4579_s13 = smov 0  }
   0x2   :  { %s4581_s14 = smov 0   ;;  %s4583_s15 = smov 0  }
   0x3   :  { %s4585_s16 = smov 0   ;;  %s4587_s17 = smov 0  }
   0x4 LB: > { %s4042_s18 = sadd.s32 4294967295, %s4545_s17   ;;  %s4043_s19 = sadd.s32 4294967294, %s4545_s17   ;;  %s4545_s17 = sphi %s4587_s17, %s16_s17   ;;  %s4541_s16 = sphi %s4585_s16, %s5683_s16   ;;  %s4537_s15 = sphi %s4583_s15, %s5682_s15   ;;  %s4533_s14 = sphi %s4581_s14, %s5681_s14   ;;  %s4529_s13 = sphi %s4579_s13, %s5680_s13   ;;  %s4525_s12 = sphi %s4577_s12, %s5679_s12  }
   0x5   : > { %s28_s20 = sadd.s32 1, %s4541_s16  ;;  %s118_s21 = sadd.s32 1, %s4533_s14 }
   0x6   : > { %p30_p0 = scmp.ge.s32.totalorder %s28_s20, 2  ;;  %p128_p1 = scmp.ne.s32.totalorder %s4533_s14, %s4529_s13 }
   0x7   : > { %p129_p2 = scmp.eq.s32.totalorder %s4042_s18, 1  ;;  %p134_p3 = scmp.ne.s32.totalorder %s4529_s13, %s4525_s12 }
   0x8   : > { %s5685_s20 = smov (%p30_p0, %s28_s20), 0  ;;  %p135_p5 = scmp.eq.s32.totalorder %s4043_s19, 1 }
   0x9   : > { %p4617_p4 = por %p129_p2, %p128_p1  ;;  %s113_s23 = ssub.s32 %s4541_s16, %s5685_s20 }
   0xa   : > { %p4046_p6 = scmp.ge.s32.totalorder %s4545_s17, 1  ;;  %p116_p7 = scmp.eq.s32.totalorder %s113_s23, 0 }
   0xb   : > { %p4624_p8 = por %p135_p5, %p134_p3  ;;  %p198_p9 = scmp.lt.s32.totalorder %s4545_s17, 3 }
   0xc   : > { %s4630_s25 = scalar_select %p116_p7, %s4533_s14, %s118_s21  }
   0xd   : > { %p199_p10 = pnand %p4046_p6, %p198_p9 }
   0xe   : > { %p250_p11 = scmp.lt.s32.totalorder (!%p199_p10), %s4537_s15, 1  ;;  %vm329_vm0 = vcmask (!%p199_p10), 27648   ;;  %vm332_vm1 = vcmask (!%p199_p10), 24576   ;;  %vm1198_vm2 = vcmask (!%p199_p10), 1042432   ;;  %vm1199_vm3 = vcmask (!%p199_p10), 1046532   ;;  %s4547_s4 = smov (!%p199_p10), 12  }
   0xf   : > { %202 = sbr.rel (%p199_p10) target bundleno = 723 (0x2d3), region = 32  ;;  %vm4667_vm4 = vmor (!%p199_p10), %vm1198_vm2, %vm1199_vm3  ;;  %vm602_vm5 = vsmask.f32 (!%p199_p10), 3328  ;;  %vm603_vm6 = vsmask.f32 (!%p199_p10), 7440  ;;  %s4548_s5 = smov (!%p199_p10), 24  }
  0x10   : > { %s4549_s6 = smov (!%p199_p10), 20   ;;  %s4550_s7 = smov (!%p199_p10), 8   ;;  %vm4718_vm7 = vmor (!%p199_p10), %vm602_vm5, %vm603_vm6  ;;  %vm392_vm8 = vcmask (!%p199_p10), 1047840   ;;  %vm537_vm9 = vcmask (!%p199_p10), 31744   ;;  %vm1085_vm10 = vcmask (!%p199_p10), 64544   ;;  %vm1409_vm11 = vcmask (!%p199_p10), 97344  }
  0x11   : > { %s4551_s8 = smov (!%p199_p10), 4   ;;  %s4552_s19 = smov (!%p199_p10), 16   ;;  %vm1587_vm12 = vcmask (!%p199_p10), 130144   ;;  %vm2132_vm13 = vcmask (!%p199_p10), 162944   ;;  %vm2453_vm14 = vcmask (!%p199_p10), 195744   ;;  %vm2631_vm15 = vcmask (!%p199_p10), 228544  }
  0x12   : > { %s4553_s28 = smov (!%p199_p10), 28   ;;  %s4554_s29 = smov (!%p199_p10), 32   ;;  %vm3176_vm2 = vcmask (!%p199_p10), 261344   ;;  %vm3497_vm3 = vcmask (!%p199_p10), 294144  }
  0x16   : > { %s4634_s26 = scalar_select %p250_p11, %s4537_s15, 1 }
  0x18   : > { %s4344_s27 = smul.u32 216, %s4634_s26 }
  0x1a   : > { %s4642_s30 = scalar_lea.vmem %s5669_s0, %s4344_s27 }
  0x1b   : > { %v287_v0 = vld [vmem:[%s4642_s30 + $0x18] sm:$0xf]  ;;  %v288_v1 = vld [vmem:[%s4642_s30 + $0x1c] sm:$0xf]  ;;  %v284_v2 = vld [vmem:[%s4642_s30 + $0xc] sm:$0xf] }
  0x1c   : > { %337 = vst.msk [vmem:[#allocation2 + $0x18] sm:$0xf] %vm329_vm0, %v287_v0  ;;  %338 = vst.msk [vmem:[#allocation2 + $0x1c] sm:$0xf] %vm329_vm0, %v288_v1  ;;  %v285_v3 = vld [vmem:[%s4642_s30 + $0x10] sm:$0xf] }
  0x1d   : > { %334 = vst.msk [vmem:[#allocation2 + $0xc] sm:$0xf] %vm329_vm0, %v284_v2  ;;  %v290_v4 = vld [vmem:[%s4642_s30 + $0x24] sm:$0xf]  ;;  %v291_v5 = vld [vmem:[%s4642_s30 + $0x28] sm:$0xf] }
  0x1e   : > { %335 = vst.msk [vmem:[#allocation2 + $0x10] sm:$0xf] %vm329_vm0, %v285_v3  ;;  %340 = vst.msk [vmem:[#allocation2 + $0x24] sm:$0xf] %vm329_vm0, %v290_v4  ;;  %v286_v6 = vld [vmem:[%s4642_s30 + $0x14] sm:$0x1] }
  0x1f   : > { %341 = vst.msk [vmem:[#allocation2 + $0x28] sm:$0xf] %vm329_vm0, %v291_v5  ;;  %v281_v7 = vld [vmem:[%s4642_s30] sm:$0xf]  ;;  %v282_v8 = vld [vmem:[%s4642_s30 + $0x4] sm:$0xf] }
  0x20   : > { %336 = vst.msk [vmem:[#allocation2 + $0x14] sm:$0x1] %vm332_vm1, %v286_v6  ;;  %v283_v9 = vld [vmem:[%s4642_s30 + $0x8] sm:$0x1]  ;;  %v289_v10 = vld [vmem:[%s4642_s30 + $0x20] sm:$0x1] }
  0x21   : > { %330 = vst.msk [vmem:[#allocation2] sm:$0xf] %vm329_vm0, %v281_v7  ;;  %331 = vst.msk [vmem:[#allocation2 + $0x4] sm:$0xf] %vm329_vm0, %v282_v8  ;;  %v292_v11 = vld [vmem:[%s4642_s30 + $0x2c] sm:$0x1] }
  0x22   : > { %333 = vst.msk [vmem:[#allocation2 + $0x8] sm:$0x1] %vm332_vm1, %v283_v9  ;;  %339 = vst.msk [vmem:[#allocation2 + $0x20] sm:$0x1] %vm332_vm1, %v289_v10  ;;  %v293_v13 = vld [vmem:[%s4642_s30 + $0x30] sm:$0xf] }
  0x23   : > { %342 = vst.msk [vmem:[#allocation2 + $0x2c] sm:$0x1] %vm332_vm1, %v292_v11  ;;  %v294_v14 = vld [vmem:[%s4642_s30 + $0x34] sm:$0xf]  ;;  %v295_v15 = vld [vmem:[%s4642_s30 + $0x38] sm:$0x1] }
  0x24   : > { %343 = vst.msk [vmem:[#allocation2 + $0x30] sm:$0xf] %vm329_vm0, %v293_v13  ;;  %344 = vst.msk [vmem:[#allocation2 + $0x34] sm:$0xf] %vm329_vm0, %v294_v14  ;;  %v296_v16 = vld [vmem:[%s4642_s30 + $0x3c] sm:$0xf] }
  0x25   : > { %345 = vst.msk [vmem:[#allocation2 + $0x38] sm:$0x1] %vm332_vm1, %v295_v15  ;;  %v297_v17 = vld [vmem:[%s4642_s30 + $0x40] sm:$0xf]  ;;  %v298_v18 = vld [vmem:[%s4642_s30 + $0x44] sm:$0x1] }
  0x26   : > { %346 = vst.msk [vmem:[#allocation2 + $0x3c] sm:$0xf] %vm329_vm0, %v296_v16  ;;  %347 = vst.msk [vmem:[#allocation2 + $0x40] sm:$0xf] %vm329_vm0, %v297_v17  ;;  %v299_v19 = vld [vmem:[%s4642_s30 + $0x48] sm:$0xf] }
  0x27   : > { %348 = vst.msk [vmem:[#allocation2 + $0x44] sm:$0x1] %vm332_vm1, %v298_v18  ;;  %v300_v20 = vld [vmem:[%s4642_s30 + $0x4c] sm:$0xf]  ;;  %v301_v21 = vld [vmem:[%s4642_s30 + $0x50] sm:$0x1] }
  0x28   : > { %349 = vst.msk [vmem:[#allocation2 + $0x48] sm:$0xf] %vm329_vm0, %v299_v19  ;;  %350 = vst.msk [vmem:[#allocation2 + $0x4c] sm:$0xf] %vm329_vm0, %v300_v20  ;;  %v302_v22 = vld [vmem:[%s4642_s30 + $0x54] sm:$0xf] }
  0x29   : > { %351 = vst.msk [vmem:[#allocation2 + $0x50] sm:$0x1] %vm332_vm1, %v301_v21  ;;  %v303_v23 = vld [vmem:[%s4642_s30 + $0x58] sm:$0xf]  ;;  %v304_v24 = vld [vmem:[%s4642_s30 + $0x5c] sm:$0x1] }
  0x2a   : > { %v4411_v25 = vld [vmem:[#allocation2 + $0x18] sm:$0xff]   ;;  %352 = vst.msk [vmem:[#allocation2 + $0x54] sm:$0xf] %vm329_vm0, %v302_v22  ;;  %353 = vst.msk [vmem:[#allocation2 + $0x58] sm:$0xf] %vm329_vm0, %v303_v23  ;;  %v4412_v26 = vld [vmem:[#allocation2 + $0xc] sm:$0xff]  }
  0x2b   : > { %354 = vst.msk [vmem:[#allocation2 + $0x5c] sm:$0x1] %vm332_vm1, %v304_v24  ;;  %1541 = vrot.lane.b32.xlu1 %v4411_v25, %s4547_s4  ;;  %v4413_v27 = vld [vmem:[#allocation2 + $0x24] sm:$0xff]   ;;  %1539 = vrot.lane.b32.xlu0 %v4412_v26, %s4547_s4  ;;  %v4414_v28 = vld [vmem:[#allocation2 + $0x18] sm:$0xff]   ;;  %v2149_v29 = vld [vmem:[#allocation2 + $0xc] sm:$0xe] }
  0x2c   : > { %v2150_v30 = vld [vmem:[#allocation2 + $0x10] sm:$0xf]  ;;  %v2151_v31 = vld [vmem:[#allocation2 + $0x14] sm:$0x1]  ;;  %v4146_v32 = vrot.slane %v2149_v29, 9 }
  0x2d   : > { %v2247_v33 = vrot.slane %v2150_v30, 5  ;;  %v2250_v34 = vrot.slane %v2151_v31, 5  ;;  %v1102_v35 = vld [vmem:[#allocation2] sm:$0xe]  ;;  %v1103_v36 = vld [vmem:[#allocation2 + $0x4] sm:$0xf] }
  0x2e   : > { %v1104_v37 = vld [vmem:[#allocation2 + $0x8] sm:$0x1]  ;;  %v4082_v38 = vrot.slane %v1102_v35, 9  ;;  %v1203_v41 = vrot.slane %v1103_v36, 5  ;;  %v1105_v43 = vld [vmem:[#allocation2 + $0xc] sm:$0xe] }
  0x2f   : > { %2585 = vrot.lane.b32.xlu1 %v4413_v27, %s4548_s5  ;;  %2583 = vrot.lane.b32.xlu0 %v4414_v28, %s4548_s5  ;;  %v2248_v39 = vsel %vm4667_vm4, %v4146_v32, %v2247_v33  ;;  %v2249_v40 = vrot.slane %v2247_v33, 4  ;;  %v1206_v42 = vrot.slane %v1104_v37, 5  ;;  %v1106_v44 = vld [vmem:[#allocation2 + $0x10] sm:$0xf]  ;;  %v1107_v45 = vld [vmem:[#allocation2 + $0x14] sm:$0x1] }
  0x30   : > { %v4083_v46 = vrot.slane %v1105_v43, 9  ;;  %v1204_v48 = vsel %vm4667_vm4, %v4082_v38, %v1203_v41  ;;  %v1205_v49 = vrot.slane %v1203_v41, 4  ;;  %v1210_v50 = vrot.slane %v1106_v44, 5  ;;  %v554_v51 = vld [vmem:[#allocation2] sm:$0xf] }
  0x31   : > { %v2251_v47 = vsel %vm4667_vm4, %v2249_v40, %v2250_v34  ;;  %v555_v52 = vld [vmem:[#allocation2 + $0x4] sm:$0xf]  ;;  %v1213_v54 = vrot.slane %v1107_v45, 5  ;;  %v556_v55 = vld [vmem:[#allocation2 + $0x8] sm:$0x1]  ;;  %v606_v56 = vshrl.u32 %v554_v51, 16 }
  0x32   : > { %v4162_v53 = vcombine.low %v2248_v39, %v2251_v47  ;;  %v609_v57 = vshll.u32 %v554_v51, 16  ;;  %v1207_v58 = vsel %vm4667_vm4, %v1205_v49, %v1206_v42  ;;  %v1211_v59 = vsel %vm4667_vm4, %v4083_v46, %v1210_v50  ;;  %v2152_v62 = vld [vmem:[#allocation2 + $0x18] sm:$0xe]  ;;  %v2153_v63 = vld [vmem:[#allocation2 + $0x1c] sm:$0xf] }
  0x33   : > { %v1212_v60 = vrot.slane %v1210_v50, 4  ;;  %v615_v61 = vshll.u32 %v555_v52, 16  ;;  %v4098_v0 = vcombine.low %v1204_v48, %v1207_v58  ;;  %v608_v1 = vrot.slane %v606_v56, 4  ;;  %v2154_v4 = vld [vmem:[#allocation2 + $0x20] sm:$0x1] }
  0x34   : > { %2405 = vrot.lane.b32.xlu0 %v4162_v53, %s4549_s6  ;;  %v611_v2 = vrot.slane %v609_v57, 5  ;;  %v619_v3 = vshrl.u32 %v555_v52, 16  ;;  %v625_v7 = vshll.u32 %v556_v55, 16  ;;  %v4147_v8 = vrot.slane %v2152_v62, 9  ;;  %v557_v9 = vld [vmem:[#allocation2 + $0xc] sm:$0xf] }
  0x35   : > { %v1214_v5 = vsel %vm4667_vm4, %v1212_v60, %v1213_v54  ;;  %v617_v6 = vrot.slane %v615_v61, 5  ;;  %1361 = vrot.lane.b32.xlu1 %v4098_v0, %s4550_s7  ;;  %v2254_v14 = vrot.slane %v2153_v63, 5  ;;  %v558_v15 = vld [vmem:[#allocation2 + $0x10] sm:$0xf]  ;;  %v2257_v18 = vrot.slane %v2154_v4, 5 }
  0x36   : > { %v4099_v10 = vcombine.low %v1211_v59, %v1214_v5  ;;  %v612_v11 = vor.u32 %v611_v2, %v608_v1  ;;  %v621_v13 = vrot.slane %v619_v3, 4  ;;  %v627_v17 = vrot.slane %v625_v7, 5  ;;  %v559_v19 = vld [vmem:[#allocation2 + $0x14] sm:$0x1]  ;;  %v1607_v30 = vld [vmem:[#allocation2 + $0x18] sm:$0xf] }
  0x37   : > { %v630_v20 = vshrl.u32 %v557_v9, 16  ;;  %v633_v21 = vshll.u32 %v557_v9, 16  ;;  %v2255_v24 = vsel %vm4667_vm4, %v4147_v8, %v2254_v14  ;;  %v2256_v25 = vrot.slane %v2254_v14, 4  ;;  %v1608_v35 = vld [vmem:[#allocation2 + $0x1c] sm:$0xf] }
  0x38   : > { %v613_v22 = vrot.slane %v612_v11, 4  ;;  %v622_v23 = vor.u32 %v621_v13, %v617_v6  ;;  %v639_v28 = vshll.u32 %v558_v15, 16  ;;  %v643_v29 = vshrl.u32 %v558_v15, 16  ;;  %v1609_v40 = vld [vmem:[#allocation2 + $0x20] sm:$0x1] }
  0x39   : > { %v632_v26 = vrot.slane %v630_v20, 4  ;;  %v635_v27 = vrot.slane %v633_v21, 5  ;;  %1363 = vrot.lane.b32.xlu1 %v4099_v10, %s4550_s7  ;;  %v2258_v33 = vsel %vm4667_vm4, %v2256_v25, %v2257_v18  ;;  %v649_v34 = vshll.u32 %v559_v19, 16  ;;  %v1604_v45 = vld [vmem:[#allocation2 + $0xc] sm:$0xf] }
  0x3a   : > { %v618_v31 = vsel %vm4718_vm7, %v613_v22, %v617_v6  ;;  %v623_v32 = vrot.slane %v622_v23, 4  ;;  %v4163_v36 = vcombine.low %v2255_v24, %v2258_v33  ;;  %v641_v38 = vrot.slane %v639_v28, 5  ;;  %v1605_v54 = vld [vmem:[#allocation2 + $0x10] sm:$0xf]  ;;  %v1606_v58 = vld [vmem:[#allocation2 + $0x14] sm:$0x1] }
  0x3b   : > { %v636_v37 = vor.u32 %v635_v27, %v632_v26  ;;  %v645_v39 = vrot.slane %v643_v29, 4  ;;  %v651_v42 = vrot.slane %v649_v34, 5  ;;  %v1677_v43 = vshrl.u32 %v1607_v30, 16  ;;  %v2648_v0 = vld [vmem:[#allocation2 + $0x18] sm:$0xf]  ;;  %v4427_v26 = vld [vmem:[%s5671_s2] sm:$0xff]  }
  0x3c   : > { %v628_v41 = vsel %vm4718_vm7, %v623_v32, %v627_v17  ;;  %v1680_v44 = vshll.u32 %v1607_v30, 16  ;;  %v1686_v49 = vshll.u32 %v1608_v35, 16  ;;  %v1690_v52 = vshrl.u32 %v1608_v35, 16  ;;  %v2649_v9 = vld [vmem:[#allocation2 + $0x1c] sm:$0xf]  ;;  %4280 = vmatprep.subr.bf16.mxu0 %v4427_v26  ;;  %4328 = vmatprep.subr.bf16.mxu1 %v4427_v26 }
  0x3d   : > { %v4066_v46 = vcombine.low %v618_v31, %v628_v41  ;;  %v637_v47 = vrot.slane %v636_v37, 4  ;;  %v646_v48 = vor.u32 %v645_v39, %v641_v38  ;;  %2407 = vrot.lane.b32.xlu1 %v4163_v36, %s4549_s6  ;;  %v1679_v50 = vrot.slane %v1677_v43, 4  ;;  %v2650_v19 = vld [vmem:[#allocation2 + $0x20] sm:$0x1]  ;;  %v2651_v25 = vld [vmem:[#allocation2 + $0x24] sm:$0xf]  ;;  %4281 = vmatpush3.bf16.msra.mxu0 %v4427_v26 }
  0x3e   : > { %v1682_v51 = vrot.slane %v1680_v44, 5  ;;  %v1696_v53 = vshll.u32 %v1609_v40, 16  ;;  %v1688_v57 = vrot.slane %v1686_v49, 5  ;;  %v1653_v59 = vshrl.u32 %v1604_v45, 16  ;;  %v2652_v31 = vld [vmem:[#allocation2 + $0x28] sm:$0xf]  ;;  %4336 = vmatpush3.bf16.msra.mxu1 %v4427_v26 }
  0x3f   : > { %1037 = vrot.lane.b32.xlu0 %v4066_v46, %s4551_s8  ;;  %v642_v55 = vsel %vm4718_vm7, %v637_v47, %v641_v38  ;;  %v647_v56 = vrot.slane %v646_v48, 4  ;;  %v1692_v61 = vrot.slane %v1690_v52, 4  ;;  %v1656_v63 = vshll.u32 %v1604_v45, 16  ;;  %v4429_v36 = vld [vmem:[%s5671_s2 + $0x8] sm:$0xff]   ;;  %v3194_v47 = vld [vmem:[#allocation2 + $0x1c] sm:$0xf] }
  0x40   : > { %v1683_v60 = vor.u32 %v1682_v51, %v1679_v50  ;;  %v1698_v62 = vrot.slane %v1696_v53, 5  ;;  %v1655_v2 = vrot.slane %v1653_v59, 4  ;;  %v1662_v3 = vshll.u32 %v1605_v54, 16  ;;  %v2653_v40 = vld [vmem:[#allocation2 + $0x2c] sm:$0x1]  ;;  %4282 = vmatprep.subr.bf16.mxu0 %v4429_v36  ;;  %4329 = vmatprep.subr.bf16.mxu1 %v4429_v36 }
  0x41   : > { %v652_v1 = vsel %vm4718_vm7, %v647_v56, %v651_v42  ;;  %v1666_v4 = vshrl.u32 %v1605_v54, 16  ;;  %v1693_v7 = vor.u32 %v1692_v61, %v1688_v57  ;;  %v1658_v8 = vrot.slane %v1656_v63, 5  ;;  %v3193_v42 = vld [vmem:[#allocation2 + $0x18] sm:$0xe]  ;;  %v3195_v52 = vld [vmem:[#allocation2 + $0x20] sm:$0x1]  ;;  %4283 = vmatpush3.bf16.msra.mxu0 %v4429_v36 }
  0x42   : > { %v4067_v5 = vcombine.low %v642_v55, %v652_v1  ;;  %v1684_v6 = vrot.slane %v1683_v60, 4  ;;  %v1664_v10 = vrot.slane %v1662_v3, 5  ;;  %v1672_v13 = vshll.u32 %v1606_v58, 16  ;;  %v562_v3 = vld [vmem:[#allocation2 + $0x20] sm:$0x1]  ;;  %4337 = vmatpush3.bf16.msra.mxu1 %v4429_v36 }
  0x43   : > { %v1668_v11 = vrot.slane %v1666_v4, 4  ;;  %v2697_v14 = vshrl.u32 %v2648_v0, 16  ;;  %v1694_v17 = vrot.slane %v1693_v7, 4  ;;  %v1659_v18 = vor.u32 %v1658_v8, %v1655_v2  ;;  %v3196_v4 = vld [vmem:[#allocation2 + $0x24] sm:$0xe] }
  0x44   : > { %1039 = vrot.lane.b32.xlu0 %v4067_v5, %s4551_s8  ;;  %v1689_v15 = vsel %vm4718_vm7, %v1684_v6, %v1688_v57  ;;  %v2700_v20 = vshll.u32 %v2648_v0, 16  ;;  %v1674_v22 = vrot.slane %v1672_v13, 5  ;;  %v2706_v24 = vshll.u32 %v2649_v9, 16  ;;  %v560_v57 = vld [vmem:[#allocation2 + $0x18] sm:$0xf] }
  0x45   : > { %v1669_v21 = vor.u32 %v1668_v11, %v1664_v10  ;;  %v2699_v23 = vrot.slane %v2697_v14, 4  ;;  %v1699_v27 = vsel %vm4718_vm7, %v1694_v17, %v1698_v62  ;;  %v1660_v28 = vrot.slane %v1659_v18, 4  ;;  %v561_v62 = vld [vmem:[#allocation2 + $0x1c] sm:$0xf]  ;;  %v3197_v14 = vld [vmem:[#allocation2 + $0x28] sm:$0xf] }
  0x46   : > { %v2702_v29 = vrot.slane %v2700_v20, 5  ;;  %v2710_v30 = vshrl.u32 %v2649_v9, 16  ;;  %v4131_v32 = vcombine.low %v1689_v15, %v1699_v27  ;;  %v2708_v34 = vrot.slane %v2706_v24, 5  ;;  %v3198_v20 = vld [vmem:[#allocation2 + $0x2c] sm:$0x1] }
  0x47   : > { %v1670_v33 = vrot.slane %v1669_v21, 4  ;;  %v2716_v35 = vshll.u32 %v2650_v19, 16  ;;  %v1665_v37 = vsel %vm4718_vm7, %v1660_v28, %v1664_v10  ;;  %v2721_v41 = vshrl.u32 %v2651_v25, 16  ;;  %v4431_v21 = vld [vmem:[%s5671_s2 + $0x10] sm:$0xff]   ;;  %v563_v26 = vld [vmem:[#allocation2 + $0x24] sm:$0xf] }
  0x48   : > { %v2703_v38 = vor.u32 %v2702_v29, %v2699_v23  ;;  %v2712_v39 = vrot.slane %v2710_v30, 4  ;;  %2086 = vrot.lane.b32.xlu1 %v4131_v32, %s4552_s19  ;;  %v2724_v45 = vshll.u32 %v2651_v25, 16  ;;  %v2730_v46 = vshll.u32 %v2652_v31, 16  ;;  %4284 = vmatprep.subr.bf16.mxu0 %v4431_v21 }
  0x49   : > { %v1675_v43 = vsel %vm4718_vm7, %v1670_v33, %v1674_v22  ;;  %v2718_v44 = vrot.slane %v2716_v35, 5  ;;  %v2723_v51 = vrot.slane %v2721_v41, 4  ;;  %v2734_v55 = vshrl.u32 %v2652_v31, 16  ;;  %4330 = vmatprep.subr.bf16.mxu1 %v4431_v21  ;;  %v564_v35 = vld [vmem:[#allocation2 + $0x28] sm:$0xf]  ;;  %4285 = vmatpush3.bf16.msra.mxu0 %v4431_v21 }
  0x4a   : > { %v4130_v48 = vcombine.low %v1665_v37, %v1675_v43  ;;  %v2704_v49 = vrot.slane %v2703_v38, 4  ;;  %v2713_v50 = vor.u32 %v2712_v39, %v2708_v34  ;;  %v2726_v53 = vrot.slane %v2724_v45, 5  ;;  %4338 = vmatpush3.bf16.msra.mxu1 %v4431_v21  ;;  %v565_v39 = vld [vmem:[#allocation2 + $0x2c] sm:$0x1]  ;;  %v1108_v41 = vld [vmem:[#allocation2 + $0x18] sm:$0xe] }
  0x4b   : > { %v2732_v54 = vrot.slane %v2730_v46, 5  ;;  %v2740_v56 = vshll.u32 %v2653_v40, 16  ;;  %v4210_v60 = vrot.slane %v3193_v42, 9  ;;  %v3291_v61 = vrot.slane %v3194_v47, 5  ;;  %v1109_v46 = vld [vmem:[#allocation2 + $0x1c] sm:$0xf] }
  0x4c   : > { %2084 = vrot.lane.b32.xlu0 %v4130_v48, %s4552_s19  ;;  %v2709_v58 = vsel %vm4718_vm7, %v2704_v49, %v2708_v34  ;;  %v2714_v59 = vrot.slane %v2713_v50, 4  ;;  %v2727_v63 = vor.u32 %v2726_v53, %v2723_v51  ;;  %v2736_v0 = vrot.slane %v2734_v55, 4  ;;  %v1110_v47 = vld [vmem:[#allocation2 + $0x20] sm:$0x1]  ;;  %v1111_v48 = vld [vmem:[#allocation2 + $0x24] sm:$0xe] }
  0x4d   : > { %v2742_v1 = vrot.slane %v2740_v56, 5  ;;  %v3294_v2 = vrot.slane %v3195_v52, 5  ;;  %v3292_v6 = vsel %vm4667_vm4, %v4210_v60, %v3291_v61  ;;  %v3293_v7 = vrot.slane %v3291_v61, 4  ;;  %v4432_v49 = vld [vmem:[%s5671_s2 + $0x18] sm:$0xff]   ;;  %v1113_v55 = vld [vmem:[#allocation2 + $0x2c] sm:$0x1] }
  0x4e   : > { %v2719_v5 = vsel %vm4718_vm7, %v2714_v59, %v2718_v44  ;;  %v654_v8 = vshrl.u32 %v560_v57, 16  ;;  %v2728_v10 = vrot.slane %v2727_v63, 4  ;;  %v2737_v11 = vor.u32 %v2736_v0, %v2732_v54  ;;  %v1610_v60 = vld [vmem:[#allocation2 + $0x24] sm:$0xf]  ;;  %4286 = vmatprep.subr.bf16.mxu0 %v4432_v49  ;;  %4331 = vmatprep.subr.bf16.mxu1 %v4432_v49  ;;  %v4436_v21 = vld [vmem:[%s5671_s2 + $0x28] sm:$0xff]  }
  0x4f   : > { %v4194_v9 = vcombine.low %v2709_v58, %v2719_v5  ;;  %v657_v13 = vshll.u32 %v560_v57, 16  ;;  %v3295_v15 = vsel %vm4667_vm4, %v3293_v7, %v3294_v2  ;;  %v663_v18 = vshll.u32 %v561_v62, 16  ;;  %4287 = vmatpush3.bf16.msra.mxu0 %v4432_v49  ;;  %4339 = vmatpush3.bf16.msra.mxu1 %v4432_v49 }
  0x50   : > { %v656_v17 = vrot.slane %v654_v8, 4  ;;  %v667_v19 = vshrl.u32 %v561_v62, 16  ;;  %v2733_v22 = vsel %vm4718_vm7, %v2728_v10, %v2732_v54  ;;  %v2738_v23 = vrot.slane %v2737_v11, 4  ;;  %v1112_v54 = vld [vmem:[#allocation2 + $0x28] sm:$0xf] }
  0x51   : > { %3128 = vrot.lane.b32.xlu0 %v4194_v9, %s4553_s28  ;;  %v4226_v24 = vcombine.low %v3292_v6, %v3295_v15  ;;  %v659_v25 = vrot.slane %v657_v13, 5  ;;  %v665_v27 = vrot.slane %v663_v18, 5  ;;  %v673_v29 = vshll.u32 %v562_v3, 16  ;;  %v4435_v9 = vld [vmem:[%s5671_s2 + $0x20] sm:$0xff]  }
  0x52   : > { %v669_v28 = vrot.slane %v667_v19, 4  ;;  %v4211_v30 = vrot.slane %v3196_v4, 9  ;;  %v2743_v31 = vsel %vm4718_vm7, %v2738_v23, %v2742_v1  ;;  %v3298_v33 = vrot.slane %v3197_v14, 5  ;;  %v1611_v14 = vld [vmem:[#allocation2 + $0x28] sm:$0xf]  ;;  %4288 = vmatprep.subr.bf16.mxu0 %v4435_v9  ;;  %4332 = vmatprep.subr.bf16.mxu1 %v4435_v9 }
  0x53   : > { %v660_v32 = vor.u32 %v659_v25, %v656_v17  ;;  %v3301_v34 = vrot.slane %v3198_v20, 5  ;;  %v4195_v36 = vcombine.low %v2733_v22, %v2743_v31  ;;  %v675_v38 = vrot.slane %v673_v29, 5  ;;  %v1612_v25 = vld [vmem:[#allocation2 + $0x2c] sm:$0x1]  ;;  %4289 = vmatpush3.bf16.msra.mxu0 %v4435_v9  ;;  %4340 = vmatpush3.bf16.msra.mxu1 %v4435_v9  ;;  %v1613_v31 = vld [vmem:[#allocation2 + $0x30] sm:$0xf] }
  0x54   : > { %v670_v37 = vor.u32 %v669_v28, %v665_v27  ;;  %v678_v40 = vshrl.u32 %v563_v26, 16  ;;  %v3299_v43 = vsel %vm4667_vm4, %v4211_v30, %v3298_v33  ;;  %v3300_v44 = vrot.slane %v3298_v33, 4  ;;  %4290 = vmatprep.subr.bf16.mxu0 %v4436_v21  ;;  %4333 = vmatprep.subr.bf16.mxu1 %v4436_v21 }
  0x55   : > { %3449 = vrot.lane.b32.xlu0 %v4226_v24, %s4554_s29  ;;  %v661_v42 = vrot.slane %v660_v32, 4  ;;  %v681_v45 = vshll.u32 %v563_v26, 16  ;;  %3130 = vrot.lane.b32.xlu1 %v4195_v36, %s4553_s28  ;;  %v687_v52 = vshll.u32 %v564_v35, 16  ;;  %v691_v53 = vshrl.u32 %v564_v35, 16  ;;  %v1614_v32 = vld [vmem:[#allocation2 + $0x34] sm:$0xf] }
  0x56   : > { %v671_v50 = vrot.slane %v670_v37, 4  ;;  %v680_v51 = vrot.slane %v678_v40, 4  ;;  %v3302_v57 = vsel %vm4667_vm4, %v3300_v44, %v3301_v34  ;;  %v697_v59 = vshll.u32 %v565_v39, 16  ;;  %v4415_v36 = vld [vmem:[#allocation2 + $0x24] sm:$0xff]  }
  0x57   : > { %v666_v56 = vsel %vm4718_vm7, %v661_v42, %v665_v27  ;;  %v683_v58 = vrot.slane %v681_v45, 5  ;;  %v4227_v62 = vcombine.low %v3299_v43, %v3302_v57  ;;  %v689_v63 = vrot.slane %v687_v52, 5  ;;  %v2155_v39 = vld [vmem:[#allocation2 + $0x24] sm:$0xe]  ;;  %v2156_v44 = vld [vmem:[#allocation2 + $0x28] sm:$0xf]  ;;  %4291 = vmatpush3.bf16.msra.mxu0 %v4436_v21  ;;  %4341 = vmatpush3.bf16.msra.mxu1 %v4436_v21 }
  0x58   : > { %v676_v61 = vsel %vm4718_vm7, %v671_v50, %v675_v38  ;;  %v693_v0 = vrot.slane %v691_v53, 4  ;;  %v699_v3 = vrot.slane %v697_v59, 5  ;;  %v4084_v4 = vrot.slane %v1108_v41, 9  ;;  %v1615_v38 = vld [vmem:[#allocation2 + $0x38] sm:$0x1] }
  0x59   : > { %v4068_v1 = vcombine.low %v666_v56, %v676_v61  ;;  %v684_v2 = vor.u32 %v683_v58, %v680_v51  ;;  %3451 = vrot.lane.b32.xlu0 %v4227_v62, %s4554_s29  ;;  %v1217_v6 = vrot.slane %v1109_v46, 5  ;;  %v1220_v7 = vrot.slane %v1110_v47, 5  ;;  %v2157_v45 = vld [vmem:[#allocation2 + $0x2c] sm:$0x1]  ;;  %v2158_v50 = vld [vmem:[#allocation2 + $0x30] sm:$0xe] }
  0x5a   : > { %v694_v5 = vor.u32 %v693_v0, %v689_v63  ;;  %v4085_v8 = vrot.slane %v1111_v48, 9  ;;  %v1224_v11 = vrot.slane %v1112_v54, 5  ;;  %v1227_v13 = vrot.slane %v1113_v55, 5  ;;  %v2159_v55 = vld [vmem:[#allocation2 + $0x34] sm:$0xf] }
  0x5b   : > { %1041 = vrot.lane.b32.xlu1 %v4068_v1, %s4551_s8  ;;  %v685_v10 = vrot.slane %v684_v2, 4  ;;  %v1701_v15 = vshrl.u32 %v1610_v60, 16  ;;  %v1218_v18 = vsel %vm4667_vm4, %v4084_v4, %v1217_v6  ;;  %v1219_v19 = vrot.slane %v1217_v6, 4  ;;  %v4438_v61 = vld [vmem:[%s5671_s2 + $0x30] sm:$0xff]  }
  0x5c   : > { %v695_v17 = vrot.slane %v694_v5, 4  ;;  %v1704_v20 = vshll.u32 %v1610_v60, 16  ;;  %v1225_v23 = vsel %vm4667_vm4, %v4085_v8, %v1224_v11  ;;  %v1226_v24 = vrot.slane %v1224_v11, 4  ;;  %v2160_v60 = vld [vmem:[#allocation2 + $0x38] sm:$0x1]  ;;  %v4416_v2 = vld [vmem:[#allocation2 + $0x30] sm:$0xff]   ;;  %4292 = vmatprep.subr.bf16.mxu0 %v4438_v61  ;;  %4334 = vmatprep.subr.bf16.mxu1 %v4438_v61 }
  0x5d   : > { %v690_v22 = vsel %vm4718_vm7, %v685_v10, %v689_v63  ;;  %v1703_v26 = vrot.slane %v1701_v15, 4  ;;  %v1221_v28 = vsel %vm4667_vm4, %v1219_v19, %v1220_v7  ;;  %v1710_v30 = vshll.u32 %v1611_v14, 16  ;;  %v4442_v7 = vld [vmem:[%s5671_s2 + $0x38] sm:$0xff]   ;;  %v2655_v19 = vld [vmem:[#allocation2 + $0x34] sm:$0xf]  ;;  %4293 = vmatpush3.bf16.msra.mxu0 %v4438_v61  ;;  %4342 = vmatpush3.bf16.msra.mxu1 %v4438_v61 }
  0x5e   : > { %v700_v27 = vsel %vm4718_vm7, %v695_v17, %v699_v3  ;;  %v1706_v29 = vrot.slane %v1704_v20, 5  ;;  %v4100_v34 = vcombine.low %v1218_v18, %v1221_v28  ;;  %v1228_v35 = vsel %vm4667_vm4, %v1226_v24, %v1227_v13  ;;  %v2654_v13 = vld [vmem:[#allocation2 + $0x30] sm:$0xf]  ;;  %v2656_v24 = vld [vmem:[#allocation2 + $0x38] sm:$0x1]  ;;  %4294 = vmatprep.subr.bf16.mxu0 %v4442_v7  ;;  %4335 = vmatprep.subr.bf16.mxu1 %v4442_v7 }
  0x5f   : > { %v4069_v33 = vcombine.low %v690_v22, %v700_v27  ;;  %v1714_v37 = vshrl.u32 %v1611_v14, 16  ;;  %v4101_v40 = vcombine.low %v1225_v23, %v1228_v35  ;;  %v1712_v42 = vrot.slane %v1710_v30, 5  ;;  %v2658_v30 = vld [vmem:[#allocation2 + $0x40] sm:$0xf] }
  0x60   : > { %v1707_v41 = vor.u32 %v1706_v29, %v1703_v26  ;;  %v1720_v43 = vshll.u32 %v1612_v25, 16  ;;  %1365 = vrot.lane.b32.xlu0 %v4100_v34, %s4550_s7  ;;  %v1725_v47 = vshrl.u32 %v1613_v31, 16  ;;  %v1728_v48 = vshll.u32 %v1613_v31, 16  ;;  %v2657_v25 = vld [vmem:[#allocation2 + $0x3c] sm:$0xf] }
  0x61   : > { %1043 = vrot.lane.b32.xlu1 %v4069_v33, %s4551_s8  ;;  %v1716_v46 = vrot.slane %v1714_v37, 4  ;;  %v1734_v49 = vshll.u32 %v1614_v32, 16  ;;  %v1738_v53 = vshrl.u32 %v1614_v32, 16  ;;  %v1744_v54 = vshll.u32 %v1615_v38, 16  ;;  %v2659_v31 = vld [vmem:[#allocation2 + $0x44] sm:$0x1]  ;;  %4295 = vmatpush3.bf16.msra.mxu0 %v4442_v7 }
  0x62   : > { %v1708_v51 = vrot.slane %v1707_v41, 4  ;;  %v1722_v52 = vrot.slane %v1720_v43, 5  ;;  %v1727_v57 = vrot.slane %v1725_v47, 4  ;;  %v1730_v58 = vrot.slane %v1728_v48, 5  ;;  %4343 = vmatpush3.bf16.msra.mxu1 %v4442_v7 }
  0x63   : > { %v1717_v56 = vor.u32 %v1716_v46, %v1712_v42  ;;  %v1736_v59 = vrot.slane %v1734_v49, 5  ;;  %v1740_v63 = vrot.slane %v1738_v53, 4  ;;  %v1746_v0 = vrot.slane %v1744_v54, 5 }
  0x64   : > { %v1713_v62 = vsel %vm4718_vm7, %v1708_v51, %v1712_v42  ;;  %v4148_v1 = vrot.slane %v2155_v39, 9  ;;  %1543 = vrot.lane.b32.xlu0 %v4415_v36, %s4547_s4  ;;  %v1731_v4 = vor.u32 %v1730_v58, %v1727_v57  ;;  %v2261_v5 = vrot.slane %v2156_v44, 5  ;;  %v3199_v44 = vld [vmem:[#allocation2 + $0x30] sm:$0xe] }
  0x65   : > { %1367 = vrot.lane.b32.xlu1 %v4101_v40, %s4550_s7  ;;  %v1718_v3 = vrot.slane %v1717_v56, 4  ;;  %v2264_v6 = vrot.slane %v2157_v45, 5  ;;  %v1741_v8 = vor.u32 %v1740_v63, %v1736_v59  ;;  %v4149_v9 = vrot.slane %v2158_v50, 9  ;;  %v4417_v45 = vld [vmem:[#allocation2 + $0x30] sm:$0xff]  }
  0x66   : > { %v2268_v10 = vrot.slane %v2159_v55, 5  ;;  %v2271_v11 = vrot.slane %v2160_v60, 5  ;;  %v1732_v15 = vrot.slane %v1731_v4, 4  ;;  %v2262_v17 = vsel %vm4667_vm4, %v4148_v1, %v2261_v5  ;;  %v3200_v50 = vld [vmem:[#allocation2 + $0x34] sm:$0xf] }
  0x67   : > { %v1723_v14 = vsel %vm4718_vm7, %v1718_v3, %v1722_v52  ;;  %v2263_v18 = vrot.slane %v2261_v5, 4  ;;  %v1742_v21 = vrot.slane %v1741_v8, 4  ;;  %v2745_v28 = vshrl.u32 %v2654_v13, 16  ;;  %v3201_v55 = vld [vmem:[#allocation2 + $0x38] sm:$0x1] }
  0x68   : > { %v4132_v20 = vcombine.low %v1713_v62, %v1723_v14  ;;  %v2269_v22 = vsel %vm4667_vm4, %v4149_v9, %v2268_v10  ;;  %v2270_v23 = vrot.slane %v2268_v10, 4  ;;  %v1737_v26 = vsel %vm4718_vm7, %v1732_v15, %v1736_v59  ;;  %v566_v60 = vld [vmem:[#allocation2 + $0x30] sm:$0xf]  ;;  %v567_v1 = vld [vmem:[#allocation2 + $0x34] sm:$0xf] }
  0x69   : > { %1545 = vrot.lane.b32.xlu1 %v4416_v2, %s4547_s4  ;;  %v2265_v27 = vsel %vm4667_vm4, %v2263_v18, %v2264_v6  ;;  %v2748_v29 = vshll.u32 %v2654_v13, 16  ;;  %v1747_v32 = vsel %vm4718_vm7, %v1742_v21, %v1746_v0  ;;  %v2754_v35 = vshll.u32 %v2655_v19, 16  ;;  %v4418_v2 = vld [vmem:[#allocation2 + $0x3c] sm:$0xff]   ;;  %v568_v10 = vld [vmem:[#allocation2 + $0x38] sm:$0x1] }
  0x6a   : > { %2088 = vrot.lane.b32.xlu0 %v4132_v20, %s4552_s19  ;;  %v4164_v33 = vcombine.low %v2262_v17, %v2265_v27  ;;  %v2272_v34 = vsel %vm4667_vm4, %v2270_v23, %v2271_v11  ;;  %v4133_v36 = vcombine.low %v1737_v26, %v1747_v32  ;;  %v2747_v38 = vrot.slane %v2745_v28, 4  ;;  %v3202_v13 = vld [vmem:[#allocation2 + $0x3c] sm:$0xe] }
  0x6b   : > { %v4165_v37 = vcombine.low %v2269_v22, %v2272_v34  ;;  %v2750_v39 = vrot.slane %v2748_v29, 5  ;;  %v2756_v40 = vrot.slane %v2754_v35, 5  ;;  %v2758_v41 = vshrl.u32 %v2655_v19, 16  ;;  %v3203_v19 = vld [vmem:[#allocation2 + $0x40] sm:$0xf] }
  0x6c   : > { %v2764_v42 = vshll.u32 %v2656_v24, 16  ;;  %v2769_v43 = vshrl.u32 %v2657_v25, 16  ;;  %v2772_v47 = vshll.u32 %v2657_v25, 16  ;;  %v2778_v48 = vshll.u32 %v2658_v30, 16  ;;  %v3204_v24 = vld [vmem:[#allocation2 + $0x44] sm:$0x1] }
  0x6d   : > { %2090 = vrot.lane.b32.xlu1 %v4133_v36, %s4552_s19  ;;  %v2751_v46 = vor.u32 %v2750_v39, %v2747_v38  ;;  %v2782_v49 = vshrl.u32 %v2658_v30, 16  ;;  %v2760_v51 = vrot.slane %v2758_v41, 4  ;;  %v2788_v54 = vshll.u32 %v2659_v31, 16  ;;  %v569_v25 = vld [vmem:[#allocation2 + $0x3c] sm:$0xf] }
  0x6e   : > { %2409 = vrot.lane.b32.xlu0 %v4164_v33, %s4549_s6  ;;  %v2766_v52 = vrot.slane %v2764_v42, 5  ;;  %v2771_v53 = vrot.slane %v2769_v43, 4  ;;  %v2774_v57 = vrot.slane %v2772_v47, 5  ;;  %v2780_v58 = vrot.slane %v2778_v48, 5  ;;  %v570_v30 = vld [vmem:[#allocation2 + $0x40] sm:$0xf] }
  0x6f   : > { %v2752_v56 = vrot.slane %v2751_v46, 4  ;;  %v2784_v59 = vrot.slane %v2782_v49, 4  ;;  %v2761_v61 = vor.u32 %v2760_v51, %v2756_v40  ;;  %v2790_v62 = vrot.slane %v2788_v54, 5  ;;  %v571_v41 = vld [vmem:[#allocation2 + $0x44] sm:$0x1] }
  0x70   : > { %v4212_v63 = vrot.slane %v3199_v44, 9  ;;  %v3305_v0 = vrot.slane %v3200_v50, 5  ;;  %v2775_v4 = vor.u32 %v2774_v57, %v2771_v53  ;;  %v3308_v6 = vrot.slane %v3201_v55, 5  ;;  %v1114_v44 = vld [vmem:[#allocation2 + $0x30] sm:$0xe] }
  0x71   : > { %2411 = vrot.lane.b32.xlu1 %v4165_v37, %s4549_s6  ;;  %v2757_v3 = vsel %vm4718_vm7, %v2752_v56, %v2756_v40  ;;  %v2785_v5 = vor.u32 %v2784_v59, %v2780_v58  ;;  %v2762_v7 = vrot.slane %v2761_v61, 4  ;;  %v702_v11 = vshrl.u32 %v566_v60, 16  ;;  %v1115_v49 = vld [vmem:[#allocation2 + $0x34] sm:$0xf]  ;;  %v1116_v54 = vld [vmem:[#allocation2 + $0x38] sm:$0x1] }
  0x72   : > { %2587 = vrot.lane.b32.xlu0 %v4417_v45, %s4548_s5  ;;  %v3306_v8 = vsel %vm4667_vm4, %v4212_v63, %v3305_v0  ;;  %v3307_v9 = vrot.slane %v3305_v0, 4  ;;  %v2776_v14 = vrot.slane %v2775_v4, 4  ;;  %v705_v17 = vshll.u32 %v566_v60, 16  ;;  %v1117_v59 = vld [vmem:[#allocation2 + $0x3c] sm:$0xe] }
  0x73   : > { %v2786_v15 = vrot.slane %v2785_v5, 4  ;;  %v711_v18 = vshll.u32 %v567_v1, 16  ;;  %v2767_v20 = vsel %vm4718_vm7, %v2762_v7, %v2766_v52  ;;  %v704_v22 = vrot.slane %v702_v11, 4  ;;  %v1118_v0 = vld [vmem:[#allocation2 + $0x40] sm:$0xf] }
  0x74   : > { %v3309_v21 = vsel %vm4667_vm4, %v3307_v9, %v3308_v6  ;;  %v715_v23 = vshrl.u32 %v567_v1, 16  ;;  %v4196_v26 = vcombine.low %v2757_v3, %v2767_v20  ;;  %v2781_v27 = vsel %vm4718_vm7, %v2776_v14, %v2780_v58  ;;  %v1119_v1 = vld [vmem:[#allocation2 + $0x44] sm:$0x1] }
  0x75   : > { %2589 = vrot.lane.b32.xlu1 %v4418_v2, %s4548_s5  ;;  %v2791_v28 = vsel %vm4718_vm7, %v2786_v15, %v2790_v62  ;;  %v4228_v29 = vcombine.low %v3306_v8, %v3309_v21  ;;  %v707_v32 = vrot.slane %v705_v17, 5  ;;  %v713_v33 = vrot.slane %v711_v18, 5  ;;  %v1616_v2 = vld [vmem:[#allocation2 + $0x3c] sm:$0xf]  ;;  %v1617_v15 = vld [vmem:[#allocation2 + $0x40] sm:$0xf] }
  0x76   : > { %v4197_v31 = vcombine.low %v2781_v27, %v2791_v28  ;;  %v717_v34 = vrot.slane %v715_v23, 4  ;;  %3132 = vrot.lane.b32.xlu0 %v4196_v26, %s4553_s28  ;;  %v721_v35 = vshll.u32 %v568_v10, 16  ;;  %v4213_v36 = vrot.slane %v3202_v13, 9  ;;  %v1618_v21 = vld [vmem:[#allocation2 + $0x44] sm:$0x1] }
  0x77   : > { %v3312_v37 = vrot.slane %v3203_v19, 5  ;;  %v3315_v38 = vrot.slane %v3204_v24, 5  ;;  %v708_v39 = vor.u32 %v707_v32, %v704_v22  ;;  %v726_v42 = vshrl.u32 %v569_v25, 16  ;;  %v1619_v27 = vld [vmem:[#allocation2 + $0x48] sm:$0xf] }
  0x78   : > { %v718_v40 = vor.u32 %v717_v34, %v713_v33  ;;  %v729_v43 = vshll.u32 %v569_v25, 16  ;;  %v723_v45 = vrot.slane %v721_v35, 5  ;;  %v735_v48 = vshll.u32 %v570_v30, 16  ;;  %v1620_v32 = vld [vmem:[#allocation2 + $0x4c] sm:$0xf] }
  0x79   : > { %3134 = vrot.lane.b32.xlu1 %v4197_v31, %s4553_s28  ;;  %v3313_v46 = vsel %vm4667_vm4, %v4213_v36, %v3312_v37  ;;  %v3314_v47 = vrot.slane %v3312_v37, 4  ;;  %v709_v50 = vrot.slane %v708_v39, 4  ;;  %v728_v52 = vrot.slane %v726_v42, 4  ;;  %v1621_v37 = vld [vmem:[#allocation2 + $0x50] sm:$0x1] }
  0x7a   : > { %v719_v51 = vrot.slane %v718_v40, 4  ;;  %v731_v53 = vrot.slane %v729_v43, 5  ;;  %3453 = vrot.lane.b32.xlu0 %v4228_v29, %s4554_s29  ;;  %v737_v56 = vrot.slane %v735_v48, 5  ;;  %v739_v57 = vshrl.u32 %v570_v30, 16 }
  0x7b   : > { %v3316_v55 = vsel %vm4667_vm4, %v3314_v47, %v3315_v38  ;;  %v745_v58 = vshll.u32 %v571_v41, 16  ;;  %v714_v60 = vsel %vm4718_vm7, %v709_v50, %v713_v33  ;;  %v4086_v6 = vrot.slane %v1114_v44, 9  ;;  %v2161_v38 = vld [vmem:[#allocation2 + $0x3c] sm:$0xe]  ;;  %v2162_v44 = vld [vmem:[#allocation2 + $0x40] sm:$0xf] }
  0x7c   : > { %v724_v61 = vsel %vm4718_vm7, %v719_v51, %v723_v45  ;;  %v4229_v62 = vcombine.low %v3313_v46, %v3316_v55  ;;  %v732_v63 = vor.u32 %v731_v53, %v728_v52  ;;  %v741_v4 = vrot.slane %v739_v57, 4  ;;  %v4419_v41 = vld [vmem:[#allocation2 + $0x3c] sm:$0xff]   ;;  %v2163_v45 = vld [vmem:[#allocation2 + $0x44] sm:$0x1]  ;;  %v2164_v50 = vld [vmem:[#allocation2 + $0x48] sm:$0xe] }
  0x7d   : > { %v4070_v3 = vcombine.low %v714_v60, %v724_v61  ;;  %v747_v5 = vrot.slane %v745_v58, 5  ;;  %v1231_v8 = vrot.slane %v1115_v49, 5  ;;  %v1234_v9 = vrot.slane %v1116_v54, 5  ;;  %v2165_v55 = vld [vmem:[#allocation2 + $0x4c] sm:$0xf] }
  0x7e   : > { %v733_v7 = vrot.slane %v732_v63, 4  ;;  %v4087_v10 = vrot.slane %v1117_v59, 9  ;;  %3455 = vrot.lane.b32.xlu0 %v4229_v62, %s4554_s29  ;;  %v742_v11 = vor.u32 %v741_v4, %v737_v56  ;;  %v1238_v13 = vrot.slane %v1118_v0, 5  ;;  %v2166_v60 = vld [vmem:[#allocation2 + $0x50] sm:$0x1] }
  0x7f   : > { %1045 = vrot.lane.b32.xlu1 %v4070_v3, %s4551_s8  ;;  %v1241_v14 = vrot.slane %v1119_v1, 5  ;;  %v1749_v17 = vshrl.u32 %v1616_v2, 16  ;;  %v1232_v19 = vsel %vm4667_vm4, %v4086_v6, %v1231_v8  ;;  %v1233_v20 = vrot.slane %v1231_v8, 4  ;;  %v2660_v1 = vld [vmem:[#allocation2 + $0x48] sm:$0xf] }
  0x80   : > { %v738_v18 = vsel %vm4718_vm7, %v733_v7, %v737_v56  ;;  %v1752_v22 = vshll.u32 %v1616_v2, 16  ;;  %v743_v23 = vrot.slane %v742_v11, 4  ;;  %v1239_v24 = vsel %vm4667_vm4, %v4087_v10, %v1238_v13  ;;  %v2661_v6 = vld [vmem:[#allocation2 + $0x4c] sm:$0xf] }
  0x81   : > { %v1240_v25 = vrot.slane %v1238_v13, 4  ;;  %v1751_v26 = vrot.slane %v1749_v17, 4  ;;  %v1235_v28 = vsel %vm4667_vm4, %v1233_v20, %v1234_v9  ;;  %v1758_v30 = vshll.u32 %v1617_v15, 16  ;;  %v4420_v7 = vld [vmem:[#allocation2 + $0x48] sm:$0xff]  }
  0x82   : > { %v1754_v29 = vrot.slane %v1752_v22, 5  ;;  %v1762_v31 = vshrl.u32 %v1617_v15, 16  ;;  %v748_v33 = vsel %vm4718_vm7, %v743_v23, %v747_v5  ;;  %v4102_v34 = vcombine.low %v1232_v19, %v1235_v28  ;;  %v2662_v23 = vld [vmem:[#allocation2 + $0x50] sm:$0x1] }
  0x83   : > { %v1242_v35 = vsel %vm4667_vm4, %v1240_v25, %v1241_v14  ;;  %v1768_v36 = vshll.u32 %v1618_v21, 16  ;;  %v4071_v39 = vcombine.low %v738_v18, %v748_v33  ;;  %v1760_v43 = vrot.slane %v1758_v30, 5  ;;  %v305_v18 = vld [vmem:[%s4642_s30 + $0x60] sm:$0xf]  ;;  %v2664_v30 = vld [vmem:[#allocation2 + $0x58] sm:$0xf] }
  0x84   : > { %v4103_v40 = vcombine.low %v1239_v24, %v1242_v35  ;;  %v1755_v42 = vor.u32 %v1754_v29, %v1751_v26  ;;  %1369 = vrot.lane.b32.xlu0 %v4102_v34, %s4550_s7  ;;  %v1764_v46 = vrot.slane %v1762_v31, 4  ;;  %v1773_v48 = vshrl.u32 %v1619_v27, 16  ;;  %v306_v24 = vld [vmem:[%s4642_s30 + $0x64] sm:$0xf]  ;;  %355 = vst.msk [vmem:[#allocation2 + $0x60] sm:$0xf] %vm329_vm0, %v305_v18 }
  0x85   : > { %v1770_v47 = vrot.slane %v1768_v36, 5  ;;  %v1776_v49 = vshll.u32 %v1619_v27, 16  ;;  %1047 = vrot.lane.b32.xlu1 %v4071_v39, %s4551_s8  ;;  %v1782_v52 = vshll.u32 %v1620_v32, 16  ;;  %v1786_v53 = vshrl.u32 %v1620_v32, 16  ;;  %v2663_v29 = vld [vmem:[#allocation2 + $0x54] sm:$0xf] }
  0x86   : > { %v1756_v51 = vrot.slane %v1755_v42, 4  ;;  %v1792_v54 = vshll.u32 %v1621_v37, 16  ;;  %v1765_v56 = vor.u32 %v1764_v46, %v1760_v43  ;;  %v1775_v57 = vrot.slane %v1773_v48, 4  ;;  %356 = vst.msk [vmem:[#allocation2 + $0x64] sm:$0xf] %vm329_vm0, %v306_v24 }
  0x87   : > { %v1778_v58 = vrot.slane %v1776_v49, 5  ;;  %v4150_v59 = vrot.slane %v2161_v38, 9  ;;  %v1784_v62 = vrot.slane %v1782_v52, 5  ;;  %v1788_v63 = vrot.slane %v1786_v53, 4  ;;  %v2665_v35 = vld [vmem:[#allocation2 + $0x5c] sm:$0x1] }
  0x88   : > { %v1761_v61 = vsel %vm4718_vm7, %v1756_v51, %v1760_v43  ;;  %v1794_v0 = vrot.slane %v1792_v54, 5  ;;  %1547 = vrot.lane.b32.xlu0 %v4419_v41, %s4547_s4  ;;  %v1766_v2 = vrot.slane %v1765_v56, 4  ;;  %v2275_v4 = vrot.slane %v2162_v44, 5  ;;  %v307_v36 = vld [vmem:[%s4642_s30 + $0x68] sm:$0x1] }
  0x89   : > { %v1779_v3 = vor.u32 %v1778_v58, %v1775_v57  ;;  %v2278_v5 = vrot.slane %v2163_v45, 5  ;;  %1371 = vrot.lane.b32.xlu1 %v4103_v40, %s4550_s7  ;;  %v1789_v8 = vor.u32 %v1788_v63, %v1784_v62  ;;  %v4151_v9 = vrot.slane %v2164_v50, 9  ;;  %v3205_v41 = vld [vmem:[#allocation2 + $0x48] sm:$0xe]  ;;  %v3206_v42 = vld [vmem:[#allocation2 + $0x4c] sm:$0xf] }
  0x8a   : > { %v2282_v10 = vrot.slane %v2165_v55, 5  ;;  %v2285_v11 = vrot.slane %v2166_v60, 5  ;;  %v1771_v13 = vsel %vm4718_vm7, %v1766_v2, %v1770_v47  ;;  %v2276_v15 = vsel %vm4667_vm4, %v4150_v59, %v2275_v4  ;;  %357 = vst.msk [vmem:[#allocation2 + $0x68] sm:$0x1] %vm332_vm1, %v307_v36  ;;  %v3207_v47 = vld [vmem:[#allocation2 + $0x50] sm:$0x1] }
  0x8b   : > { %v1780_v14 = vrot.slane %v1779_v3, 4  ;;  %v2277_v17 = vrot.slane %v2275_v4, 4  ;;  %v4134_v19 = vcombine.low %v1761_v61, %v1771_v13  ;;  %v1790_v20 = vrot.slane %v1789_v8, 4  ;;  %v308_v48 = vld [vmem:[%s4642_s30 + $0x6c] sm:$0xf] }
  0x8c   : > { %v4886_v21 = vsel %vm4667_vm4, %v4151_v9, %v2282_v10  ;;  %v2284_v22 = vrot.slane %v2282_v10, 4  ;;  %v2793_v27 = vshrl.u32 %v2660_v1, 16  ;;  %v2796_v28 = vshll.u32 %v2660_v1, 16  ;;  %v4421_v49 = vld [vmem:[#allocation2 + $0x48] sm:$0xff]   ;;  %v309_v55 = vld [vmem:[%s4642_s30 + $0x70] sm:$0xf] }
  0x8d   : > { %v1785_v25 = vsel %vm4718_vm7, %v1780_v14, %v1784_v62  ;;  %v2279_v26 = vsel %vm4667_vm4, %v2277_v17, %v2278_v5  ;;  %1549 = vrot.lane.b32.xlu1 %v4420_v7, %s4547_s4  ;;  %2092 = vrot.lane.b32.xlu0 %v4134_v19, %s4552_s19  ;;  %v1795_v31 = vsel %vm4718_vm7, %v1790_v20, %v1794_v0  ;;  %v2802_v34 = vshll.u32 %v2661_v6, 16  ;;  %v572_v54 = vld [vmem:[#allocation2 + $0x48] sm:$0xf]  ;;  %v573_v60 = vld [vmem:[#allocation2 + $0x4c] sm:$0xf]  ;;  %v4422_v10 = vld [vmem:[#allocation2 + $0x54] sm:$0xff]  }
  0x8e   : > { %v4166_v32 = vcombine.low %v2276_v15, %v2279_v26  ;;  %v2286_v33 = vsel %vm4667_vm4, %v2284_v22, %v2285_v11  ;;  %v4135_v37 = vcombine.low %v1785_v25, %v1795_v31  ;;  %v2795_v39 = vrot.slane %v2793_v27, 4  ;;  %358 = vst.msk [vmem:[#allocation2 + $0x6c] sm:$0xf] %vm329_vm0, %v308_v48  ;;  %359 = vst.msk [vmem:[#allocation2 + $0x70] sm:$0xf] %vm329_vm0, %v309_v55 }
  0x8f   : > { %v4167_v38 = vcombine.low %v4886_v21, %v2286_v33  ;;  %v2798_v40 = vrot.slane %v2796_v28, 5  ;;  %v2804_v43 = vrot.slane %v2802_v34, 5  ;;  %v2806_v44 = vshrl.u32 %v2661_v6, 16  ;;  %v310_v61 = vld [vmem:[%s4642_s30 + $0x74] sm:$0x1] }
  0x90   : > { %v2812_v45 = vshll.u32 %v2662_v23, 16  ;;  %v2817_v46 = vshrl.u32 %v2663_v29, 16  ;;  %v2820_v51 = vshll.u32 %v2663_v29, 16  ;;  %v2826_v52 = vshll.u32 %v2664_v30, 16  ;;  %360 = vst.msk [vmem:[#allocation2 + $0x74] sm:$0x1] %vm332_vm1, %v310_v61 }
  0x91   : > { %v2799_v50 = vor.u32 %v2798_v40, %v2795_v39  ;;  %v2830_v53 = vshrl.u32 %v2664_v30, 16  ;;  %2094 = vrot.lane.b32.xlu1 %v4135_v37, %s4552_s19  ;;  %2413 = vrot.lane.b32.xlu0 %v4166_v32, %s4549_s6  ;;  %v2808_v56 = vrot.slane %v2806_v44, 4  ;;  %v2836_v59 = vshll.u32 %v2665_v35, 16  ;;  %v574_v15 = vld [vmem:[#allocation2 + $0x50] sm:$0x1] }
  0x92   : > { %v2814_v57 = vrot.slane %v2812_v45, 5  ;;  %v2819_v58 = vrot.slane %v2817_v46, 4  ;;  %v2822_v63 = vrot.slane %v2820_v51, 5  ;;  %v2828_v0 = vrot.slane %v2826_v52, 5  ;;  %v3208_v18 = vld [vmem:[#allocation2 + $0x54] sm:$0xe] }
  0x93   : > { %v2800_v62 = vrot.slane %v2799_v50, 4  ;;  %v2832_v1 = vrot.slane %v2830_v53, 4  ;;  %v2809_v2 = vor.u32 %v2808_v56, %v2804_v43  ;;  %v2838_v3 = vrot.slane %v2836_v59, 5  ;;  %v3209_v19 = vld [vmem:[#allocation2 + $0x58] sm:$0xf] }
  0x94   : > { %v4214_v4 = vrot.slane %v3205_v41, 9  ;;  %v3319_v5 = vrot.slane %v3206_v42, 5  ;;  %v2823_v7 = vor.u32 %v2822_v63, %v2819_v58  ;;  %v3322_v9 = vrot.slane %v3207_v47, 5  ;;  %v3210_v24 = vld [vmem:[#allocation2 + $0x5c] sm:$0x1] }
  0x95   : > { %v2805_v6 = vsel %vm4718_vm7, %v2800_v62, %v2804_v43  ;;  %v2833_v8 = vor.u32 %v2832_v1, %v2828_v0  ;;  %2415 = vrot.lane.b32.xlu1 %v4167_v38, %s4549_s6  ;;  %2591 = vrot.lane.b32.xlu0 %v4421_v49, %s4548_s5  ;;  %v2810_v11 = vrot.slane %v2809_v2, 4  ;;  %v750_v17 = vshrl.u32 %v572_v54, 16  ;;  %v575_v29 = vld [vmem:[#allocation2 + $0x54] sm:$0xf]  ;;  %v576_v30 = vld [vmem:[#allocation2 + $0x58] sm:$0xf] }
  0x96   : > { %v3320_v13 = vsel %vm4667_vm4, %v4214_v4, %v3319_v5  ;;  %v3321_v14 = vrot.slane %v3319_v5, 4  ;;  %v2824_v20 = vrot.slane %v2823_v7, 4  ;;  %v753_v22 = vshll.u32 %v572_v54, 16  ;;  %v577_v45 = vld [vmem:[#allocation2 + $0x5c] sm:$0x1] }
  0x97   : > { %v2834_v21 = vrot.slane %v2833_v8, 4  ;;  %v759_v23 = vshll.u32 %v573_v60, 16  ;;  %v2815_v25 = vsel %vm4718_vm7, %v2810_v11, %v2814_v57  ;;  %v752_v27 = vrot.slane %v750_v17, 4  ;;  %v1120_v48 = vld [vmem:[#allocation2 + $0x48] sm:$0xe] }
  0x98   : > { %v3323_v26 = vsel %vm4667_vm4, %v3321_v14, %v3322_v9  ;;  %v763_v28 = vshrl.u32 %v573_v60, 16  ;;  %v4198_v31 = vcombine.low %v2805_v6, %v2815_v25  ;;  %v2829_v32 = vsel %vm4718_vm7, %v2824_v20, %v2828_v0  ;;  %v1121_v53 = vld [vmem:[#allocation2 + $0x4c] sm:$0xf]  ;;  %v1122_v58 = vld [vmem:[#allocation2 + $0x50] sm:$0x1] }
  0x99   : > { %v2839_v33 = vsel %vm4718_vm7, %v2834_v21, %v2838_v3  ;;  %v4230_v34 = vcombine.low %v3320_v13, %v3323_v26  ;;  %2593 = vrot.lane.b32.xlu1 %v4422_v10, %s4548_s5  ;;  %v755_v36 = vrot.slane %v753_v22, 5  ;;  %v761_v37 = vrot.slane %v759_v23, 5  ;;  %v1123_v63 = vld [vmem:[#allocation2 + $0x54] sm:$0xe]  ;;  %v1124_v4 = vld [vmem:[#allocation2 + $0x58] sm:$0xf] }
  0x9a   : > { %v4199_v35 = vcombine.low %v2829_v32, %v2839_v33  ;;  %v765_v38 = vrot.slane %v763_v28, 4  ;;  %3136 = vrot.lane.b32.xlu0 %v4198_v31, %s4553_s28  ;;  %v769_v39 = vshll.u32 %v574_v15, 16  ;;  %v4215_v40 = vrot.slane %v3208_v18, 9  ;;  %v1125_v5 = vld [vmem:[#allocation2 + $0x5c] sm:$0x1] }
  0x9b   : > { %v3326_v41 = vrot.slane %v3209_v19, 5  ;;  %v3329_v42 = vrot.slane %v3210_v24, 5  ;;  %v756_v43 = vor.u32 %v755_v36, %v752_v27  ;;  %v774_v46 = vshrl.u32 %v575_v29, 16  ;;  %v1622_v6 = vld [vmem:[#allocation2 + $0x54] sm:$0xf] }
  0x9c   : > { %v766_v44 = vor.u32 %v765_v38, %v761_v37  ;;  %v777_v47 = vshll.u32 %v575_v29, 16  ;;  %v771_v49 = vrot.slane %v769_v39, 5  ;;  %v783_v52 = vshll.u32 %v576_v30, 16  ;;  %v1623_v18 = vld [vmem:[#allocation2 + $0x58] sm:$0xf] }
  0x9d   : > { %v3327_v50 = vsel %vm4667_vm4, %v4215_v40, %v3326_v41  ;;  %v3328_v51 = vrot.slane %v3326_v41, 4  ;;  %3138 = vrot.lane.b32.xlu1 %v4199_v35, %s4553_s28  ;;  %v757_v54 = vrot.slane %v756_v43, 4  ;;  %v776_v56 = vrot.slane %v774_v46, 4  ;;  %v4938_v7 = vpop.permute.xlu0 %1539  ;;  %v1624_v22 = vld [vmem:[#allocation2 + $0x5c] sm:$0x1]  ;;  %v4946_v28 = vpop.permute.xlu1 %1541 }
  0x9e   : > { %v767_v55 = vrot.slane %v766_v44, 4  ;;  %v779_v57 = vrot.slane %v777_v47, 5  ;;  %3457 = vrot.lane.b32.xlu0 %v4230_v34, %s4554_s29  ;;  %v785_v60 = vrot.slane %v783_v52, 5  ;;  %v787_v61 = vshrl.u32 %v576_v30, 16  ;;  %v2167_v38 = vld [vmem:[#allocation2 + $0x54] sm:$0xe] }
  0x9f   : > { %v3330_v59 = vsel %vm4667_vm4, %v3328_v51, %v3329_v42  ;;  %v793_v62 = vshll.u32 %v577_v45, 16  ;;  %v762_v0 = vsel %vm4718_vm7, %v757_v54, %v761_v37  ;;  %v4088_v11 = vrot.slane %v1120_v48, 9  ;;  %v1625_v37 = vld [vmem:[#allocation2 + $0x60] sm:$0xf]  ;;  %v1626_v44 = vld [vmem:[#allocation2 + $0x64] sm:$0xf] }
  0xa0   : > { %v772_v1 = vsel %vm4718_vm7, %v767_v55, %v771_v49  ;;  %v4231_v2 = vcombine.low %v3327_v50, %v3330_v59  ;;  %v780_v3 = vor.u32 %v779_v57, %v776_v56  ;;  %v789_v9 = vrot.slane %v787_v61, 4  ;;  %v1627_v45 = vld [vmem:[#allocation2 + $0x68] sm:$0x1]  ;;  %v4423_v48 = vld [vmem:[#allocation2 + $0x54] sm:$0xff]   ;;  %v2169_v52 = vld [vmem:[#allocation2 + $0x5c] sm:$0x1] }
  0xa1   : > { %v4072_v8 = vcombine.low %v762_v0, %v772_v1  ;;  %v795_v10 = vrot.slane %v793_v62, 5  ;;  %v1245_v14 = vrot.slane %v1121_v53, 5  ;;  %v1248_v15 = vrot.slane %v1122_v58, 5  ;;  %v4952_v39 = vpop.permute.xlu0 %2583  ;;  %v2168_v51 = vld [vmem:[#allocation2 + $0x58] sm:$0xf] }
  0xa2   : > { %v781_v13 = vrot.slane %v780_v3, 4  ;;  %v4089_v17 = vrot.slane %v1123_v63, 9  ;;  %3459 = vrot.lane.b32.xlu0 %v4231_v2, %s4554_s29  ;;  %v790_v19 = vor.u32 %v789_v9, %v785_v60  ;;  %v1252_v20 = vrot.slane %v1124_v4, 5  ;;  %v2170_v57 = vld [vmem:[#allocation2 + $0x60] sm:$0xe]  ;;  %v4960_v63 = vpop.permute.xlu1 %2585 }
  0xa3   : > { %1049 = vrot.lane.b32.xlu1 %v4072_v8, %s4551_s8  ;;  %v1255_v21 = vrot.slane %v1125_v5, 5  ;;  %v1797_v23 = vshrl.u32 %v1622_v6, 16  ;;  %v1246_v25 = vsel %vm4667_vm4, %v4088_v11, %v1245_v14  ;;  %v1247_v26 = vrot.slane %v1245_v14, 4  ;;  %v2171_v58 = vld [vmem:[#allocation2 + $0x64] sm:$0xf] }
  0xa4   : > { %v786_v24 = vsel %vm4718_vm7, %v781_v13, %v785_v60  ;;  %v1800_v27 = vshll.u32 %v1622_v6, 16  ;;  %v791_v29 = vrot.slane %v790_v19, 4  ;;  %v1253_v30 = vsel %vm4667_vm4, %v4089_v17, %v1252_v20  ;;  %v2172_v4 = vld [vmem:[#allocation2 + $0x68] sm:$0x1]  ;;  %v2666_v17 = vld [vmem:[#allocation2 + $0x60] sm:$0xf] }
  0xa5   : > { %v1254_v31 = vrot.slane %v1252_v20, 4  ;;  %v1799_v32 = vrot.slane %v1797_v23, 4  ;;  %v1249_v33 = vsel %vm4667_vm4, %v1247_v26, %v1248_v15  ;;  %v1806_v35 = vshll.u32 %v1623_v18, 16  ;;  %v2667_v23 = vld [vmem:[#allocation2 + $0x64] sm:$0xf] }
  0xa6   : > { %v1802_v34 = vrot.slane %v1800_v27, 5  ;;  %v1810_v36 = vshrl.u32 %v1623_v18, 16  ;;  %v796_v40 = vsel %vm4718_vm7, %v791_v29, %v795_v10  ;;  %v4104_v41 = vcombine.low %v1246_v25, %v1249_v33  ;;  %v4964_v10 = vpop.permute.xlu0 %2405  ;;  %v4424_v18 = vld [vmem:[#allocation2 + $0x60] sm:$0xff]   ;;  %v2668_v29 = vld [vmem:[#allocation2 + $0x68] sm:$0x1] }
  0xa7   : > { %v1256_v42 = vsel %vm4667_vm4, %v1254_v31, %v1255_v21  ;;  %v1816_v43 = vshll.u32 %v1624_v22, 16  ;;  %v4073_v46 = vcombine.low %v786_v24, %v796_v40  ;;  %v1808_v50 = vrot.slane %v1806_v35, 5  ;;  %v4974_v35 = vpop.permute.xlu1 %1361 }
  0xa8   : > { %v4105_v47 = vcombine.low %v1253_v30, %v1256_v42  ;;  %v1803_v49 = vor.u32 %v1802_v34, %v1799_v32  ;;  %1373 = vrot.lane.b32.xlu0 %v4104_v41, %s4550_s7  ;;  %v1812_v53 = vrot.slane %v1810_v36, 4  ;;  %v1821_v55 = vshrl.u32 %v1625_v37, 16  ;;  %v2669_v30 = vld [vmem:[#allocation2 + $0x6c] sm:$0xf]  ;;  %v311_v41 = vld [vmem:[%s4642_s30 + $0x78] sm:$0xf] }
  0xa9   : > { %v1818_v54 = vrot.slane %v1816_v43, 5  ;;  %v1824_v56 = vshll.u32 %v1625_v37, 16  ;;  %1051 = vrot.lane.b32.xlu1 %v4073_v46, %s4551_s8  ;;  %v1830_v60 = vshll.u32 %v1626_v44, 16  ;;  %v1834_v61 = vshrl.u32 %v1626_v44, 16  ;;  %v312_v42 = vld [vmem:[%s4642_s30 + $0x7c] sm:$0xf] }
  0xaa   : > { %v1804_v59 = vrot.slane %v1803_v49, 4  ;;  %v1840_v62 = vshll.u32 %v1627_v45, 16  ;;  %v1813_v0 = vor.u32 %v1812_v53, %v1808_v50  ;;  %v1823_v1 = vrot.slane %v1821_v55, 4  ;;  %361 = vst.msk [vmem:[#allocation2 + $0x78] sm:$0xf] %vm329_vm0, %v311_v41  ;;  %v4428_v41 = vld [vmem:[#allocation2] sm:$0xff]  }
  0xab   : > { %v1826_v2 = vrot.slane %v1824_v56, 5  ;;  %v4152_v3 = vrot.slane %v2167_v38, 9  ;;  %v1832_v6 = vrot.slane %v1830_v60, 5  ;;  %v1836_v8 = vrot.slane %v1834_v61, 4  ;;  %362 = vst.msk [vmem:[#allocation2 + $0x7c] sm:$0xf] %vm329_vm0, %v312_v42 }
  0xac   : > { %v1809_v5 = vsel %vm4718_vm7, %v1804_v59, %v1808_v50  ;;  %v1842_v9 = vrot.slane %v1840_v62, 5  ;;  %1551 = vrot.lane.b32.xlu0 %v4423_v48, %s4547_s4  ;;  %v1814_v11 = vrot.slane %v1813_v0, 4  ;;  %v2289_v14 = vrot.slane %v2168_v51, 5  ;;  %v2671_v48 = vld [vmem:[#allocation2 + $0x74] sm:$0x1]  ;;  %v4425_v62 = vld [vmem:[#allocation2 + $0x60] sm:$0xff]  }
  0xad   : > { %v1827_v13 = vor.u32 %v1826_v2, %v1823_v1  ;;  %v2292_v15 = vrot.slane %v2169_v52, 5  ;;  %1375 = vrot.lane.b32.xlu1 %v4105_v47, %s4550_s7  ;;  %v1837_v19 = vor.u32 %v1836_v8, %v1832_v6  ;;  %v4153_v20 = vrot.slane %v2170_v57, 9  ;;  %v2670_v47 = vld [vmem:[#allocation2 + $0x70] sm:$0xf]  ;;  %v3212_v55 = vld [vmem:[#allocation2 + $0x64] sm:$0xf] }
  0xae   : > { %v2296_v21 = vrot.slane %v2171_v58, 5  ;;  %v2299_v22 = vrot.slane %v2172_v4, 5  ;;  %v1819_v24 = vsel %vm4718_vm7, %v1814_v11, %v1818_v54  ;;  %v2290_v26 = vsel %vm4667_vm4, %v4152_v3, %v2289_v14  ;;  %v3211_v54 = vld [vmem:[#allocation2 + $0x60] sm:$0xe]  ;;  %v313_v56 = vld [vmem:[%s4642_s30 + $0x80] sm:$0x1]  ;;  %v4996_v11 = vpop.permute.xlu1 %1363 }
  0xaf   : > { %v1828_v25 = vrot.slane %v1827_v13, 4  ;;  %v2291_v27 = vrot.slane %v2289_v14, 4  ;;  %v4136_v31 = vcombine.low %v1809_v5, %v1819_v24  ;;  %v1838_v32 = vrot.slane %v1837_v19, 4  ;;  %v3213_v61 = vld [vmem:[#allocation2 + $0x68] sm:$0x1]  ;;  %v4430_v42 = vld [vmem:[#allocation2 + $0xc] sm:$0xff]  }
  0xb0   : > { %v2297_v33 = vsel %vm4667_vm4, %v4153_v20, %v2296_v21  ;;  %v2298_v34 = vrot.slane %v2296_v21, 4  ;;  %v2841_v38 = vshrl.u32 %v2666_v17, 16  ;;  %v2844_v40 = vshll.u32 %v2666_v17, 16  ;;  %363 = vst.msk [vmem:[#allocation2 + $0x80] sm:$0x1] %vm332_vm1, %v313_v56 }
  0xb1   : > { %v1833_v36 = vsel %vm4718_vm7, %v1828_v25, %v1832_v6  ;;  %v2293_v37 = vsel %vm4667_vm4, %v2291_v27, %v2292_v15  ;;  %1553 = vrot.lane.b32.xlu1 %v4424_v18, %s4547_s4  ;;  %2096 = vrot.lane.b32.xlu0 %v4136_v31, %s4552_s19  ;;  %v1843_v43 = vsel %vm4718_vm7, %v1838_v32, %v1842_v9  ;;  %v2850_v46 = vshll.u32 %v2667_v23, 16  ;;  %v4988_v49 = vpop.permute.xlu0 %1037  ;;  %v578_v4 = vld [vmem:[#allocation2 + $0x60] sm:$0xf] }
  0xb2   : > { %v4168_v44 = vcombine.low %v2290_v26, %v2293_v37  ;;  %v2300_v45 = vsel %vm4667_vm4, %v2298_v34, %v2299_v22  ;;  %v4137_v50 = vcombine.low %v1833_v36, %v1843_v43  ;;  %v2843_v52 = vrot.slane %v2841_v38, 4  ;;  %v579_v22 = vld [vmem:[#allocation2 + $0x64] sm:$0xf]  ;;  %v580_v37 = vld [vmem:[#allocation2 + $0x68] sm:$0x1]  ;;  %v4437_v43 = vld [vmem:[#allocation2 + $0x18] sm:$0xff]  }
  0xb3   : > { %v4169_v51 = vcombine.low %v2297_v33, %v2300_v45  ;;  %v2846_v53 = vrot.slane %v2844_v40, 5  ;;  %v2852_v57 = vrot.slane %v2850_v46, 5  ;;  %v2854_v58 = vshrl.u32 %v2667_v23, 16  ;;  %v4445_v45 = vld [vmem:[#allocation2 + $0x30] sm:$0xff]  }
  0xb4   : > { %v2860_v59 = vshll.u32 %v2668_v29, 16  ;;  %v2865_v60 = vshrl.u32 %v2669_v30, 16  ;;  %v2868_v1 = vshll.u32 %v2669_v30, 16  ;;  %v2874_v2 = vshll.u32 %v2670_v47, 16  ;;  %v4426_v29 = vld [vmem:[#allocation2 + $0x6c] sm:$0xff]  }
  0xb5   : > { %v2847_v0 = vor.u32 %v2846_v53, %v2843_v52  ;;  %v2878_v3 = vshrl.u32 %v2670_v47, 16  ;;  %2098 = vrot.lane.b32.xlu1 %v4137_v50, %s4552_s19  ;;  %2417 = vrot.lane.b32.xlu0 %v4168_v44, %s4549_s6  ;;  %v2856_v5 = vrot.slane %v2854_v58, 4  ;;  %v2884_v9 = vshll.u32 %v2671_v48, 16  ;;  %v4439_v44 = vld [vmem:[#allocation2 + $0x24] sm:$0xff]   ;;  %v5016_v52 = vld [vmem:[#allocation2 + $0x70] sm:$0xf]  ;;  %v5018_v53 = vpop.permute.xlu1 %2407 }
  0xb6   : > { %v2862_v6 = vrot.slane %v2860_v59, 5  ;;  %v2867_v8 = vrot.slane %v2865_v60, 4  ;;  %v2870_v14 = vrot.slane %v2868_v1, 5  ;;  %v2876_v15 = vrot.slane %v2874_v2, 5  ;;  %v4998_v23 = vpop.permute.xlu0 %1039  ;;  %v5026_v60 = vld [vmem:[#allocation2 + $0x74] sm:$0x1] }
  0xb7   : > { %v2848_v13 = vrot.slane %v2847_v0, 4  ;;  %v2880_v17 = vrot.slane %v2878_v3, 4  ;;  %v2857_v18 = vor.u32 %v2856_v5, %v2852_v57  ;;  %v2886_v19 = vrot.slane %v2884_v9, 5 }
  0xb8   : > { %v4216_v20 = vrot.slane %v3211_v54, 9  ;;  %v3333_v21 = vrot.slane %v3212_v55, 5  ;;  %v2871_v25 = vor.u32 %v2870_v14, %v2867_v8  ;;  %v3336_v27 = vrot.slane %v3213_v61, 5  ;;  %v4446_v54 = vld [vmem:[#allocation2 + $0x3c] sm:$0xff]   ;;  %v4451_v55 = vld [vmem:[#allocation2 + $0x48] sm:$0xff]  }
  0xb9   : > { %v2853_v24 = vsel %vm4718_vm7, %v2848_v13, %v2852_v57  ;;  %v2881_v26 = vor.u32 %v2880_v17, %v2876_v15  ;;  %2419 = vrot.lane.b32.xlu1 %v4169_v51, %s4549_s6  ;;  %2595 = vrot.lane.b32.xlu0 %v4425_v62, %s4548_s5  ;;  %v2858_v30 = vrot.slane %v2857_v18, 4  ;;  %v798_v33 = vshrl.u32 %v578_v4, 16  ;;  %v5014_v51 = vld [vmem:[#allocation2 + $0x6c] sm:$0xe]  ;;  %v4452_v62 = vld [vmem:[#allocation2 + $0x54] sm:$0xff]  }
  0xba   : > { %v5006_v31 = vsel %vm4667_vm4, %v4216_v20, %v3333_v21  ;;  %v3335_v32 = vrot.slane %v3333_v21, 4  ;;  %v2872_v34 = vrot.slane %v2871_v25, 4  ;;  %v801_v38 = vshll.u32 %v578_v4, 16  ;;  %v5028_v61 = vld [vmem:[#allocation2 + $0x6c] sm:$0xf] }
  0xbb   : > { %v2882_v36 = vrot.slane %v2881_v26, 4  ;;  %v807_v40 = vshll.u32 %v579_v22, 16  ;;  %v2863_v46 = vsel %vm4718_vm7, %v2858_v30, %v2862_v6  ;;  %v800_v48 = vrot.slane %v798_v33, 4  ;;  %v5033_v4 = vld [vmem:[#allocation2 + $0x70] sm:$0xf]  ;;  %v2087_v30 = vpop.permute.xlu1 %2086 }
  0xbc   : > { %v5012_v47 = vsel %vm4667_vm4, %v3335_v32, %v3336_v27  ;;  %v811_v50 = vshrl.u32 %v579_v22, 16  ;;  %v4200_v56 = vcombine.low %v2853_v24, %v2863_v46  ;;  %v2877_v57 = vsel %vm4718_vm7, %v2872_v34, %v2876_v15  ;;  %v1126_v20 = vld [vmem:[#allocation2 + $0x60] sm:$0xe]  ;;  %v1127_v26 = vld [vmem:[#allocation2 + $0x64] sm:$0xf] }
  0xbd   : > { %v2887_v58 = vsel %vm4718_vm7, %v2882_v36, %v2886_v19  ;;  %v4232_v59 = vcombine.low %v5006_v31, %v5012_v47  ;;  %2597 = vrot.lane.b32.xlu1 %v4426_v29, %s4548_s5  ;;  %v803_v1 = vrot.slane %v801_v38, 5  ;;  %v5031_v2 = vrot.slane %v807_v40, 5  ;;  %v583_v19 = vld [vmem:[#allocation2 + $0x74] sm:$0x1]  ;;  %v1128_v27 = vld [vmem:[#allocation2 + $0x68] sm:$0x1] }
  0xbe   : > { %v4201_v0 = vcombine.low %v2877_v57, %v2887_v58  ;;  %v813_v3 = vrot.slane %v811_v50, 4  ;;  %v5035_v5 = vpop.permute.xlu0 %2084  ;;  %3140 = vrot.lane.b32.xlu0 %v4200_v56, %s4553_s28  ;;  %v817_v6 = vshll.u32 %v580_v37, 16  ;;  %v4555_v13 = vmov 0   ;;  %v1129_v29 = vld [vmem:[#allocation2 + $0x6c] sm:$0xe] }
  0xbf   : > { %v804_v8 = vor.u32 %v803_v1, %v800_v48  ;;  %393 = vst.msk [vmem:[#allocation3] sm:$0xff] %vm392_vm8, %v4555_v13  ;;  %394 = vst.msk [vmem:[#allocation3 + $0x8] sm:$0xff] %vm392_vm8, %v4555_v13  ;;  %v4217_v15 = vrot.slane %v5014_v51, 9  ;;  %v3340_v17 = vrot.slane %v5016_v52, 5  ;;  %v3343_v18 = vrot.slane %v5026_v60, 5 }
  0xc0   : > { %v814_v9 = vor.u32 %v813_v3, %v5031_v2  ;;  %395 = vst.msk [vmem:[#allocation3 + $0x10] sm:$0xff] %vm392_vm8, %v4555_v13  ;;  %396 = vst.msk [vmem:[#allocation3 + $0x18] sm:$0xff] %vm392_vm8, %v4555_v13  ;;  %v819_v14 = vrot.slane %v817_v6, 5  ;;  %v822_v24 = vshrl.u32 %v5028_v61, 16  ;;  %v825_v25 = vshll.u32 %v5028_v61, 16 }
  0xc1   : > { %397 = vst.msk [vmem:[#allocation3 + $0x20] sm:$0xff] %vm392_vm8, %v4555_v13  ;;  %398 = vst.msk [vmem:[#allocation3 + $0x28] sm:$0xff] %vm392_vm8, %v4555_v13  ;;  %3142 = vrot.lane.b32.xlu1 %v4201_v0, %s4553_s28  ;;  %v805_v21 = vrot.slane %v804_v8, 4  ;;  %v3342_v31 = vrot.slane %v3340_v17, 4  ;;  %v831_v32 = vshll.u32 %v5033_v4, 16  ;;  %v835_v33 = vshrl.u32 %v5033_v4, 16 }
  0xc2   : > { %399 = vst.msk [vmem:[#allocation3 + $0x30] sm:$0xff] %vm392_vm8, %v4555_v13  ;;  %400 = vst.msk [vmem:[#allocation3 + $0x38] sm:$0xff] %vm392_vm8, %v4555_v13  ;;  %v815_v22 = vrot.slane %v814_v9, 4  ;;  %3461 = vrot.lane.b32.xlu0 %v4232_v59, %s4554_s29  ;;  %v1131_v34 = vld [vmem:[#allocation2 + $0x74] sm:$0x1]  ;;  %v824_v38 = vrot.slane %v822_v24, 4 }
  0xc3   : > { %401 = vst.msk [vmem:[#allocation3 + $0x40] sm:$0xff] %vm392_vm8, %v4555_v13  ;;  %402 = vst.msk [vmem:[#allocation3 + $0x48] sm:$0xff] %vm392_vm8, %v4555_v13  ;;  %v5082_v36 = vpop.permute.xlu0 %3128  ;;  %v810_v37 = vsel %vm4718_vm7, %v805_v21, %v5031_v2  ;;  %v827_v40 = vrot.slane %v825_v25, 5  ;;  %v841_v48 = vshll.u32 %v583_v19, 16  ;;  %v4090_v50 = vrot.slane %v1126_v20, 9  ;;  %v4457_v4 = vld [vmem:[#allocation2 + $0x60] sm:$0xff]  }
  0xc4   : > { %403 = vst.msk [vmem:[#allocation3 + $0x50] sm:$0xff] %vm392_vm8, %v4555_v13  ;;  %404 = vst.msk [vmem:[#allocation3 + $0x58] sm:$0xff] %vm392_vm8, %v4555_v13  ;;  %v1259_v52 = vrot.slane %v1127_v26, 5  ;;  %v1269_v60 = vrot.slane %v1131_v34, 5  ;;  %v1628_v3 = vld [vmem:[#allocation2 + $0x6c] sm:$0xf] }
  0xc5   : > { %405 = vst.msk [vmem:[#allocation3 + $0x60] sm:$0xff] %vm392_vm8, %v4555_v13  ;;  %406 = vst.msk [vmem:[#allocation3 + $0x68] sm:$0xff] %vm392_vm8, %v4555_v13  ;;  %v828_v47 = vor.u32 %v827_v40, %v824_v38  ;;  %v843_v58 = vrot.slane %v841_v48, 5  ;;  %v1848_v24 = vshll.u32 %v1628_v3, 16  ;;  %v2175_v40 = vld [vmem:[#allocation2 + $0x74] sm:$0x1] }
  0xc6   : > { %407 = vst.msk [vmem:[#allocation3 + $0x70] sm:$0xff] %vm392_vm8, %v4555_v13  ;;  %408 = vst.msk [vmem:[#allocation3 + $0x78] sm:$0xff] %vm392_vm8, %v4555_v13  ;;  %v1260_v1 = vsel %vm4667_vm4, %v4090_v50, %v1259_v52  ;;  %v1261_v2 = vrot.slane %v1259_v52, 4  ;;  %v1629_v13 = vld [vmem:[#allocation2 + $0x70] sm:$0xf] }
  0xc7   : > { %538 = vst.msk [vmem:[#allocation3] sm:$0xff] %vm537_vm9, %v4428_v41  ;;  %539 = vst.msk [vmem:[#allocation3 + $0x8] sm:$0xff] %vm537_vm9, %v4430_v42  ;;  %v314_v41 = vld [vmem:[%s4642_s30 + $0x84] sm:$0xf]  ;;  %v315_v42 = vld [vmem:[%s4642_s30 + $0x88] sm:$0xf]  ;;  %v5096_v56 = vpop.permute.xlu0 %3449  ;;  %v3131_v61 = vpop.permute.xlu1 %3130 }
  0xc8   : > { %540 = vst.msk [vmem:[#allocation3 + $0x10] sm:$0xff] %vm537_vm9, %v4437_v43  ;;  %541 = vst.msk [vmem:[#allocation3 + $0x18] sm:$0xff] %vm537_vm9, %v4439_v44  ;;  %v3344_v44 = vsel %vm4667_vm4, %v3342_v31, %v3343_v18  ;;  %v829_v57 = vrot.slane %v828_v47, 4  ;;  %v1631_v18 = vld [vmem:[#allocation2 + $0x78] sm:$0xf]  ;;  %v1854_v25 = vshll.u32 %v1629_v13, 16 }
  0xc9   : > { %542 = vst.msk [vmem:[#allocation3 + $0x20] sm:$0xff] %vm537_vm9, %v4445_v45  ;;  %543 = vst.msk [vmem:[#allocation3 + $0x28] sm:$0xff] %vm537_vm9, %v4446_v54  ;;  %v837_v45 = vrot.slane %v835_v33, 4  ;;  %v1262_v54 = vrot.slane %v1128_v27, 5  ;;  %v2173_v27 = vld [vmem:[#allocation2 + $0x6c] sm:$0xe] }
  0xca   : > { %544 = vst.msk [vmem:[#allocation3 + $0x30] sm:$0xff] %vm537_vm9, %v4451_v55  ;;  %545 = vst.msk [vmem:[#allocation3 + $0x38] sm:$0xff] %vm537_vm9, %v4452_v62  ;;  %v4091_v55 = vrot.slane %v1129_v29, 9  ;;  %v316_v62 = vld [vmem:[%s4642_s30 + $0x8c] sm:$0x1]  ;;  %v1850_v31 = vrot.slane %v1848_v24, 5 }
  0xcb   : > { %1086 = vst.msk [vmem:[#allocation3] sm:$0xff] %vm1085_vm10, %v4988_v49  ;;  %1087 = vst.msk [vmem:[#allocation3 + $0x8] sm:$0xff] %vm1085_vm10, %v4998_v23  ;;  %v3341_v49 = vsel %vm4667_vm4, %v4217_v15, %v3340_v17  ;;  %v1130_v23 = vld [vmem:[#allocation2 + $0x70] sm:$0xf]  ;;  %v1263_v17 = vsel %vm4667_vm4, %v1261_v2, %v1262_v54  ;;  %v3452_v29 = vpop.permute.xlu0 %3451  ;;  %v4154_v48 = vrot.slane %v2173_v27, 9 }
  0xcc   : > { %1410 = vst.msk [vmem:[#allocation3] sm:$0xff] %vm1409_vm11, %v4974_v35  ;;  %1411 = vst.msk [vmem:[#allocation3 + $0x8] sm:$0xff] %vm1409_vm11, %v4996_v11  ;;  %v820_v35 = vsel %vm4718_vm7, %v815_v22, %v819_v14  ;;  %v833_v11 = vrot.slane %v831_v32, 5  ;;  %v4233_v46 = vcombine.low %v3341_v49, %v3344_v44  ;;  %v1266_v59 = vrot.slane %v1130_v23, 5  ;;  %v1630_v14 = vld [vmem:[#allocation2 + $0x74] sm:$0x1] }
  0xcd   : > { %v4074_v43 = vcombine.low %v810_v37, %v820_v35  ;;  %364 = vst.msk [vmem:[#allocation2 + $0x84] sm:$0xf] %vm329_vm0, %v314_v41  ;;  %365 = vst.msk [vmem:[#allocation2 + $0x88] sm:$0xf] %vm329_vm0, %v315_v42  ;;  %v4106_v19 = vcombine.low %v1260_v1, %v1263_v17  ;;  %v4433_v22 = vld [vmem:[#allocation2 + $0x6c] sm:$0xff]   ;;  %v1042_v26 = vpop.permute.xlu1 %1041  ;;  %v1856_v32 = vrot.slane %v1854_v25, 5 }
  0xce   : > { %v838_v51 = vor.u32 %v837_v45, %v833_v11  ;;  %3463 = vrot.lane.b32.xlu0 %v4233_v46, %s4554_s29  ;;  %366 = vst.msk [vmem:[#allocation2 + $0x8c] sm:$0x1] %vm332_vm1, %v316_v62  ;;  %v834_v6 = vsel %vm4718_vm7, %v829_v57, %v833_v11  ;;  %v1267_v8 = vsel %vm4667_vm4, %v4091_v55, %v1266_v59  ;;  %v1268_v9 = vrot.slane %v1266_v59, 4  ;;  %v2174_v23 = vld [vmem:[#allocation2 + $0x70] sm:$0xf]  ;;  %v4434_v45 = vld [vmem:[#allocation2 + $0x78] sm:$0xff]  }
  0xcf   : > { %1053 = vrot.lane.b32.xlu1 %v4074_v43, %s4551_s8  ;;  %1589 = vst.msk [vmem:[#allocation3 + $0x8] sm:$0xff] %vm1587_vm12, %v4946_v28  ;;  %1588 = vst.msk [vmem:[#allocation3] sm:$0xff] %vm1587_vm12, %v4938_v7  ;;  %v1632_v28 = vld [vmem:[#allocation2 + $0x7c] sm:$0xf]  ;;  %v2176_v44 = vld [vmem:[#allocation2 + $0x78] sm:$0xe] }
  0xd0   : > { %v839_v0 = vrot.slane %v838_v51, 4  ;;  %2134 = vst.msk [vmem:[#allocation3 + $0x8] sm:$0xff] %vm2132_vm13, %v2087_v30  ;;  %2133 = vst.msk [vmem:[#allocation3] sm:$0xff] %vm2132_vm13, %v5035_v5  ;;  %v1270_v20 = vsel %vm4667_vm4, %v1268_v9, %v1269_v60  ;;  %v1845_v5 = vshrl.u32 %v1628_v3, 16  ;;  %v1869_v30 = vshrl.u32 %v1631_v18, 16  ;;  %v4458_v11 = vld [vmem:[#allocation2 + $0x6c] sm:$0xff]  }
  0xd1   : > { %546 = vst.msk [vmem:[#allocation3 + $0x40] sm:$0xff] %vm537_vm9, %v4457_v4  ;;  %v4107_v21 = vcombine.low %v1267_v8, %v1270_v20  ;;  %v1878_v33 = vshll.u32 %v1632_v28, 16  ;;  %v1882_v42 = vshrl.u32 %v1632_v28, 16  ;;  %v2177_v50 = vld [vmem:[#allocation2 + $0x7c] sm:$0xf]  ;;  %v2303_v55 = vrot.slane %v2174_v23, 5 }
  0xd2   : > { %v844_v15 = vsel %vm4718_vm7, %v839_v0, %v843_v58  ;;  %2455 = vst.msk [vmem:[#allocation3 + $0x8] sm:$0xff] %vm2453_vm14, %v5018_v53  ;;  %2454 = vst.msk [vmem:[#allocation3] sm:$0xff] %vm2453_vm14, %v4964_v10  ;;  %1377 = vrot.lane.b32.xlu0 %v4106_v19, %s4550_s7  ;;  %v1858_v10 = vshrl.u32 %v1629_v13, 16  ;;  %v1633_v53 = vld [vmem:[#allocation2 + $0x80] sm:$0x1]  ;;  %v1847_v49 = vrot.slane %v1845_v5, 4  ;;  %v1366_v59 = vpop.permute.xlu0 %1365 }
  0xd3   : > { %v4075_v7 = vcombine.low %v834_v6, %v844_v15  ;;  %2632 = vst.msk [vmem:[#allocation3] sm:$0xff] %vm2631_vm15, %v4952_v39  ;;  %2633 = vst.msk [vmem:[#allocation3 + $0x8] sm:$0xff] %vm2631_vm15, %v4960_v63  ;;  %v1864_v39 = vshll.u32 %v1630_v14, 16  ;;  %v1872_v63 = vshll.u32 %v1631_v18, 16  ;;  %v1871_v35 = vrot.slane %v1869_v30, 4  ;;  %v1044_v58 = vpop.permute.xlu1 %1043 }
  0xd4   : > { %3177 = vst.msk [vmem:[#allocation3] sm:$0xff] %vm3176_vm2, %v5082_v36  ;;  %3178 = vst.msk [vmem:[#allocation3 + $0x8] sm:$0xff] %vm3176_vm2, %v3131_v61  ;;  %v1860_v34 = vrot.slane %v1858_v10, 4  ;;  %v1851_v36 = vor.u32 %v1850_v31, %v1847_v49  ;;  %v5135_v41 = vrot.slane %v1878_v33, 5  ;;  %v1888_v43 = vshll.u32 %v1633_v53, 16 }
  0xd5   : > { %1055 = vrot.lane.b32.xlu1 %v4075_v7, %s4551_s8  ;;  %1088 = vst.msk [vmem:[#allocation3 + $0x10] sm:$0xff] %vm1085_vm10, %v1042_v26  ;;  %v1866_v37 = vrot.slane %v1864_v39, 5  ;;  %v1874_v38 = vrot.slane %v1872_v63, 5  ;;  %v1884_v52 = vrot.slane %v1882_v42, 4  ;;  %v2178_v57 = vld [vmem:[#allocation2 + $0x80] sm:$0x1]  ;;  %v2304_v3 = vsel %vm4667_vm4, %v4154_v48, %v2303_v55 }
  0xd6   : > { %1555 = vrot.lane.b32.xlu0 %v4433_v22, %s4547_s4  ;;  %v1861_v46 = vor.u32 %v1860_v34, %v1856_v32  ;;  %v1852_v51 = vrot.slane %v1851_v36, 4  ;;  %v1890_v54 = vrot.slane %v1888_v43, 5  ;;  %3498 = vst.msk [vmem:[#allocation3] sm:$0xff] %vm3497_vm3, %v5096_v56  ;;  %3499 = vst.msk [vmem:[#allocation3 + $0x8] sm:$0xff] %vm3497_vm3, %v3452_v29  ;;  %v2306_v62 = vrot.slane %v2175_v40, 5  ;;  %v1544_v22 = vpop.permute.xlu0 %1543  ;;  %v4461_v48 = vld [vmem:[#allocation2 + $0x78] sm:$0xff]  }
  0xd7   : > { %v1875_v47 = vor.u32 %v1874_v38, %v1871_v35  ;;  %547 = vst.msk [vmem:[#allocation3 + $0x48] sm:$0xff] %vm537_vm9, %v4458_v11  ;;  %v4155_v0 = vrot.slane %v2176_v44, 9  ;;  %v2672_v1 = vld [vmem:[#allocation2 + $0x78] sm:$0xf]  ;;  %v1885_v2 = vor.u32 %v1884_v52, %v5135_v41  ;;  %v2305_v4 = vrot.slane %v2303_v55, 4  ;;  %v1368_v7 = vpop.permute.xlu1 %1367  ;;  %548 = vst.msk [vmem:[#allocation3 + $0x50] sm:$0xff] %vm537_vm9, %v4461_v48 }
  0xd8   : > { %v1862_v60 = vrot.slane %v1861_v46, 4  ;;  %1089 = vst.msk [vmem:[#allocation3 + $0x18] sm:$0xff] %vm1085_vm10, %v1044_v58  ;;  %v1857_v56 = vsel %vm4718_vm7, %v1852_v51, %v1856_v32  ;;  %v2310_v9 = vrot.slane %v2177_v50, 5  ;;  %v2313_v13 = vrot.slane %v2178_v57, 5  ;;  %v2673_v14 = vld [vmem:[#allocation2 + $0x7c] sm:$0xf] }
  0xd9   : > { %1379 = vrot.lane.b32.xlu1 %v4107_v21, %s4550_s7  ;;  %v1876_v61 = vrot.slane %v1875_v47, 4  ;;  %1412 = vst.msk [vmem:[#allocation3 + $0x10] sm:$0xff] %vm1409_vm11, %v1366_v59  ;;  %v2674_v15 = vld [vmem:[#allocation2 + $0x80] sm:$0x1]  ;;  %v1886_v18 = vrot.slane %v1885_v2, 4  ;;  %v2307_v28 = vsel %vm4667_vm4, %v2305_v4, %v2306_v62  ;;  %v2889_v19 = vshrl.u32 %v2672_v1, 16 }
  0xda   : > { %v1867_v6 = vsel %vm4718_vm7, %v1862_v60, %v1866_v37  ;;  %v2675_v20 = vld [vmem:[#allocation2 + $0x84] sm:$0xf]  ;;  %v2676_v21 = vld [vmem:[#allocation2 + $0x88] sm:$0xf]  ;;  %v4170_v5 = vcombine.low %v2304_v3, %v2307_v28  ;;  %v2311_v24 = vsel %vm4667_vm4, %v4155_v0, %v2310_v9  ;;  %v2312_v25 = vrot.slane %v2310_v9, 4  ;;  %1413 = vst.msk [vmem:[#allocation3 + $0x18] sm:$0xff] %vm1409_vm11, %v1368_v7 }
  0xdb   : > { %v1881_v8 = vsel %vm4718_vm7, %v1876_v61, %v5135_v41  ;;  %v4138_v17 = vcombine.low %v1857_v56, %v1867_v6  ;;  %v2892_v26 = vshll.u32 %v2672_v1, 16  ;;  %v2677_v27 = vld [vmem:[#allocation2 + $0x8c] sm:$0x1]  ;;  %1590 = vst.msk [vmem:[#allocation3 + $0x10] sm:$0xff] %vm1587_vm12, %v1544_v22  ;;  %v1891_v29 = vsel %vm4718_vm7, %v1886_v18, %v1890_v54  ;;  %v5165_v30 = vld [vmem:[#allocation2 + $0x78] sm:$0xe]  ;;  %v1546_v41 = vpop.permute.xlu1 %1545 }
  0xdc   : > { %v2891_v10 = vrot.slane %v2889_v19, 4  ;;  %v2898_v39 = vshll.u32 %v2673_v14, 16  ;;  %v2902_v53 = vshrl.u32 %v2673_v14, 16  ;;  %v4139_v63 = vcombine.low %v1881_v8, %v1891_v29  ;;  %v3218_v34 = vld [vmem:[#allocation2 + $0x7c] sm:$0xf]  ;;  %1591 = vst.msk [vmem:[#allocation3 + $0x18] sm:$0xff] %vm1587_vm12, %v1546_v41  ;;  %v2089_v47 = vpop.permute.xlu0 %2088 }
  0xdd   : > { %1557 = vrot.lane.b32.xlu1 %v4434_v45, %s4547_s4  ;;  %2100 = vrot.lane.b32.xlu0 %v4138_v17, %s4552_s19  ;;  %v2314_v49 = vsel %vm4667_vm4, %v2312_v25, %v2313_v13  ;;  %v3514_v31 = vld [vmem:[#allocation3] sm:$0xff]  ;;  %v2894_v32 = vrot.slane %v2892_v26, 5  ;;  %v2908_v33 = vshll.u32 %v2674_v15, 16  ;;  %v3515_v23 = vld [vmem:[#allocation3 + $0x8] sm:$0xff]  ;;  %v317_v37 = vld [vmem:[%s4642_s30 + $0x90] sm:$0xf] }
  0xde   : > { %v4171_v35 = vcombine.low %v2311_v24, %v2314_v49  ;;  %4296 = vmatprep.mubr.bf16.mxu0 %v3514_v31  ;;  %v2900_v38 = vrot.slane %v2898_v39, 5  ;;  %v2904_v40 = vrot.slane %v2902_v53, 4  ;;  %v2913_v36 = vshrl.u32 %v2675_v20, 16  ;;  %v318_v42 = vld [vmem:[%s4642_s30 + $0x94] sm:$0xf]  ;;  %v4440_v50 = vld [vmem:[#allocation2 + $0x78] sm:$0xff]  }
  0xdf   : > { %367 = vst.msk [vmem:[#allocation2 + $0x90] sm:$0xf] %vm329_vm0, %v317_v37  ;;  %v2895_v43 = vor.u32 %v2894_v32, %v2891_v10  ;;  %v2910_v44 = vrot.slane %v2908_v33, 5  ;;  %v2916_v11 = vshll.u32 %v2675_v20, 16  ;;  %v2922_v45 = vshll.u32 %v2676_v21, 16  ;;  %4297 = vmatmul.mubr.bf16.vlgmr.msra.gmra.mrb[0].mxu0 %v3515_v23  ;;  %v4441_v58 = vld [vmem:[#allocation2 + $0x84] sm:$0xff]   ;;  %v2091_v6 = vpop.permute.xlu1 %2090 }
  0xe0   : > { %v3219_v46 = vld [vmem:[#allocation2 + $0x80] sm:$0x1]  ;;  %368 = vst.msk [vmem:[#allocation2 + $0x94] sm:$0xf] %vm329_vm0, %v318_v42  ;;  %v2905_v51 = vor.u32 %v2904_v40, %v2900_v38  ;;  %v2915_v52 = vrot.slane %v2913_v36, 4  ;;  %v2926_v54 = vshrl.u32 %v2676_v21, 16  ;;  %v2410_v17 = vpop.permute.xlu0 %2409 }
  0xe1   : > { %2102 = vrot.lane.b32.xlu1 %v4139_v63, %s4552_s19  ;;  %2421 = vrot.lane.b32.xlu0 %v4170_v5, %s4549_s6  ;;  %v2932_v55 = vshll.u32 %v2677_v27, 16  ;;  %v584_v57 = vld [vmem:[#allocation2 + $0x78] sm:$0xf]  ;;  %2135 = vst.msk [vmem:[#allocation3 + $0x10] sm:$0xff] %vm2132_vm13, %v2089_v47  ;;  %v2896_v59 = vrot.slane %v2895_v43, 4  ;;  %v2918_v60 = vrot.slane %v2916_v11, 5 }
  0xe2   : > { %v2924_v61 = vrot.slane %v2922_v45, 5  ;;  %v4218_v62 = vrot.slane %v5165_v30, 9  ;;  %v585_v0 = vld [vmem:[#allocation2 + $0x7c] sm:$0xf]  ;;  %v2906_v1 = vrot.slane %v2905_v51, 4  ;;  %v2928_v56 = vrot.slane %v2926_v54, 4 }
  0xe3   : > { %v2934_v2 = vrot.slane %v2932_v55, 5  ;;  %v3347_v3 = vrot.slane %v3218_v34, 5  ;;  %v586_v4 = vld [vmem:[#allocation2 + $0x80] sm:$0x1]  ;;  %v319_v8 = vld [vmem:[%s4642_s30 + $0x98] sm:$0x1]  ;;  %v2901_v9 = vsel %vm4718_vm7, %v2896_v59, %v2900_v38  ;;  %v2919_v13 = vor.u32 %v2918_v60, %v2915_v52  ;;  %v2412_v53 = vpop.permute.xlu1 %2411 }
  0xe4   : > { %v3350_v14 = vrot.slane %v3219_v46, 5  ;;  %v846_v15 = vshrl.u32 %v584_v57, 16  ;;  %2136 = vst.msk [vmem:[#allocation3 + $0x18] sm:$0xff] %vm2132_vm13, %v2091_v6  ;;  %v2911_v18 = vsel %vm4718_vm7, %v2906_v1, %v2910_v44  ;;  %v2929_v28 = vor.u32 %v2928_v56, %v2924_v61  ;;  %v3220_v20 = vld [vmem:[#allocation2 + $0x84] sm:$0xe]  ;;  %v2588_v23 = vpop.permute.xlu0 %2587 }
  0xe5   : > { %2423 = vrot.lane.b32.xlu1 %v4171_v35, %s4549_s6  ;;  %369 = vst.msk [vmem:[#allocation2 + $0x98] sm:$0x1] %vm332_vm1, %v319_v8  ;;  %2599 = vrot.lane.b32.xlu0 %v4440_v50, %s4548_s5  ;;  %v3348_v7 = vsel %vm4667_vm4, %v4218_v62, %v3347_v3  ;;  %v3349_v19 = vrot.slane %v3347_v3, 4  ;;  %v3221_v21 = vld [vmem:[#allocation2 + $0x88] sm:$0xf]  ;;  %v4202_v5 = vcombine.low %v2901_v9, %v2911_v18  ;;  %v2920_v24 = vrot.slane %v2919_v13, 4 }
  0xe6   : > { %2456 = vst.msk [vmem:[#allocation3 + $0x10] sm:$0xff] %vm2453_vm14, %v2410_v17  ;;  %v4462_v22 = vld [vmem:[#allocation2 + $0x84] sm:$0xff]   ;;  %v848_v25 = vrot.slane %v846_v15, 4  ;;  %v849_v26 = vshll.u32 %v584_v57, 16  ;;  %v2930_v27 = vrot.slane %v2929_v28, 4  ;;  %v855_v10 = vshll.u32 %v585_v0, 16 }
  0xe7   : > { %v3351_v29 = vsel %vm4667_vm4, %v3349_v19, %v3350_v14  ;;  %v859_v39 = vshrl.u32 %v585_v0, 16  ;;  %549 = vst.msk [vmem:[#allocation3 + $0x58] sm:$0xff] %vm537_vm9, %v4462_v22  ;;  %v2925_v30 = vsel %vm4718_vm7, %v2920_v24, %v2924_v61  ;;  %v865_v31 = vshll.u32 %v586_v4, 16  ;;  %v3222_v32 = vld [vmem:[#allocation2 + $0x8c] sm:$0x1]  ;;  %v2590_v51 = vpop.permute.xlu1 %2589 }
  0xe8   : > { %v4234_v63 = vcombine.low %v3348_v7, %v3351_v29  ;;  %v851_v49 = vrot.slane %v849_v26, 5  ;;  %v587_v33 = vld [vmem:[#allocation2 + $0x84] sm:$0xf]  ;;  %2457 = vst.msk [vmem:[#allocation3 + $0x18] sm:$0xff] %vm2453_vm14, %v2412_v53  ;;  %v2935_v34 = vsel %vm4718_vm7, %v2930_v27, %v2934_v2  ;;  %v857_v37 = vrot.slane %v855_v10, 5  ;;  %v3133_v2 = vpop.permute.xlu0 %3132 }
  0xe9   : > { %2601 = vrot.lane.b32.xlu1 %v4441_v58, %s4548_s5  ;;  %3144 = vrot.lane.b32.xlu0 %v4202_v5, %s4553_s28  ;;  %v861_v35 = vrot.slane %v859_v39, 4  ;;  %v4219_v38 = vrot.slane %v3220_v20, 9  ;;  %v588_v40 = vld [vmem:[#allocation2 + $0x88] sm:$0xf]  ;;  %2634 = vst.msk [vmem:[#allocation3 + $0x10] sm:$0xff] %vm2631_vm15, %v2588_v23  ;;  %v4203_v36 = vcombine.low %v2925_v30, %v2935_v34  ;;  %v867_v42 = vrot.slane %v865_v31, 5 }
  0xea   : > { %v852_v41 = vor.u32 %v851_v49, %v848_v25  ;;  %v3354_v43 = vrot.slane %v3221_v21, 5  ;;  %v589_v44 = vld [vmem:[#allocation2 + $0x8c] sm:$0x1]  ;;  %v3357_v45 = vrot.slane %v3222_v32, 5  ;;  %v870_v46 = vshrl.u32 %v587_v33, 16  ;;  %2635 = vst.msk [vmem:[#allocation3 + $0x18] sm:$0xff] %vm2631_vm15, %v2590_v51 }
  0xeb   : > { %v862_v11 = vor.u32 %v861_v35, %v857_v37  ;;  %v873_v47 = vshll.u32 %v587_v33, 16  ;;  %v1132_v48 = vld [vmem:[#allocation2 + $0x78] sm:$0xe]  ;;  %v1133_v50 = vld [vmem:[#allocation2 + $0x7c] sm:$0xf]  ;;  %v879_v57 = vshll.u32 %v588_v40, 16  ;;  %v3135_v18 = vpop.permute.xlu1 %3134 }
  0xec   : > { %v853_v52 = vrot.slane %v852_v41, 4  ;;  %v3355_v54 = vsel %vm4667_vm4, %v4219_v38, %v3354_v43  ;;  %v3356_v55 = vrot.slane %v3354_v43, 4  ;;  %v1134_v58 = vld [vmem:[#allocation2 + $0x80] sm:$0x1]  ;;  %v1135_v59 = vld [vmem:[#allocation2 + $0x84] sm:$0xe]  ;;  %v3454_v29 = vpop.permute.xlu0 %3453 }
  0xed   : > { %3146 = vrot.lane.b32.xlu1 %v4203_v36, %s4553_s28  ;;  %3465 = vrot.lane.b32.xlu0 %v4234_v63, %s4554_s29  ;;  %v863_v60 = vrot.slane %v862_v11, 4  ;;  %v872_v61 = vrot.slane %v870_v46, 4  ;;  %v875_v62 = vrot.slane %v873_v47, 5  ;;  %v883_v0 = vshrl.u32 %v588_v40, 16  ;;  %v1136_v1 = vld [vmem:[#allocation2 + $0x88] sm:$0xf] }
  0xee   : > { %v1137_v56 = vld [vmem:[#allocation2 + $0x8c] sm:$0x1]  ;;  %v858_v3 = vsel %vm4718_vm7, %v853_v52, %v857_v37  ;;  %v3358_v4 = vsel %vm4667_vm4, %v3356_v55, %v3357_v45  ;;  %v881_v6 = vrot.slane %v879_v57, 5  ;;  %v889_v8 = vshll.u32 %v589_v44, 16  ;;  %3179 = vst.msk [vmem:[#allocation3 + $0x10] sm:$0xff] %vm3176_vm2, %v3133_v2  ;;  %3180 = vst.msk [vmem:[#allocation3 + $0x18] sm:$0xff] %vm3176_vm2, %v3135_v18 }
  0xef   : > { %v1634_v9 = vld [vmem:[#allocation2 + $0x84] sm:$0xf]  ;;  %v868_v13 = vsel %vm4718_vm7, %v863_v60, %v867_v42  ;;  %v4235_v14 = vcombine.low %v3355_v54, %v3358_v4  ;;  %v876_v15 = vor.u32 %v875_v62, %v872_v61  ;;  %v885_v17 = vrot.slane %v883_v0, 4  ;;  %v320_v28 = vld [vmem:[%s4642_s30 + $0x9c] sm:$0xf]  ;;  %3500 = vst.msk [vmem:[#allocation3 + $0x10] sm:$0xff] %vm3497_vm3, %v3454_v29 }
  0xf0   : > { %v4076_v7 = vcombine.low %v858_v3, %v868_v13  ;;  %v891_v19 = vrot.slane %v889_v8, 5  ;;  %v4092_v20 = vrot.slane %v1132_v48, 9  ;;  %v1273_v21 = vrot.slane %v1133_v50, 5  ;;  %v321_v22 = vld [vmem:[%s4642_s30 + $0xa0] sm:$0xf]  ;;  %v4443_v42 = vld [vmem:[#allocation2 + $0x84] sm:$0xff]   ;;  %v3456_v46 = vpop.permute.xlu0 %3455 }
  0xf1   : > { %370 = vst.msk [vmem:[#allocation2 + $0x9c] sm:$0xf] %vm329_vm0, %v320_v28  ;;  %3467 = vrot.lane.b32.xlu0 %v4235_v14, %s4554_s29  ;;  %v877_v5 = vrot.slane %v876_v15, 4  ;;  %v886_v24 = vor.u32 %v885_v17, %v881_v6  ;;  %v1276_v25 = vrot.slane %v1134_v58, 5  ;;  %v4093_v26 = vrot.slane %v1135_v59, 9  ;;  %v1046_v45 = vpop.permute.xlu1 %1045 }
  0xf2   : > { %v1635_v27 = vld [vmem:[#allocation2 + $0x88] sm:$0xf]  ;;  %371 = vst.msk [vmem:[#allocation2 + $0xa0] sm:$0xf] %vm329_vm0, %v321_v22  ;;  %1057 = vrot.lane.b32.xlu1 %v4076_v7, %s4551_s8  ;;  %v1274_v10 = vsel %vm4667_vm4, %v4092_v20, %v1273_v21  ;;  %v1275_v39 = vrot.slane %v1273_v21, 4  ;;  %v1280_v53 = vrot.slane %v1136_v1, 5 }
  0xf3   : > { %v1283_v30 = vrot.slane %v1137_v56, 5  ;;  %v882_v63 = vsel %vm4718_vm7, %v877_v5, %v881_v6  ;;  %v887_v49 = vrot.slane %v886_v24, 4  ;;  %v1636_v31 = vld [vmem:[#allocation2 + $0x8c] sm:$0x1]  ;;  %v1893_v32 = vshrl.u32 %v1634_v9, 16  ;;  %1090 = vst.msk [vmem:[#allocation3 + $0x20] sm:$0xff] %vm1085_vm10, %v1046_v45 }
  0xf4   : > { %v1896_v33 = vshll.u32 %v1634_v9, 16  ;;  %v1277_v23 = vsel %vm4667_vm4, %v1275_v39, %v1276_v25  ;;  %v1281_v34 = vsel %vm4667_vm4, %v4093_v26, %v1280_v53  ;;  %v1282_v37 = vrot.slane %v1280_v53, 4  ;;  %v1637_v38 = vld [vmem:[#allocation2 + $0x90] sm:$0xf]  ;;  %v322_v40 = vld [vmem:[%s4642_s30 + $0xa4] sm:$0x1] }
  0xf5   : > { %v1902_v35 = vshll.u32 %v1635_v27, 16  ;;  %v892_v36 = vsel %vm4718_vm7, %v887_v49, %v891_v19  ;;  %v4108_v41 = vcombine.low %v1274_v10, %v1277_v23  ;;  %v1895_v43 = vrot.slane %v1893_v32, 4  ;;  %v1638_v11 = vld [vmem:[#allocation2 + $0x94] sm:$0xf]  ;;  %372 = vst.msk [vmem:[#allocation2 + $0xa4] sm:$0x1] %vm332_vm1, %v322_v40 }
  0xf6   : > { %v1898_v44 = vrot.slane %v1896_v33, 5  ;;  %v4077_v47 = vcombine.low %v882_v63, %v892_v36  ;;  %v1284_v48 = vsel %vm4667_vm4, %v1282_v37, %v1283_v30  ;;  %v1906_v51 = vshrl.u32 %v1635_v27, 16  ;;  %v1639_v52 = vld [vmem:[#allocation2 + $0x98] sm:$0x1]  ;;  %v2179_v54 = vld [vmem:[#allocation2 + $0x84] sm:$0xe]  ;;  %v1370_v22 = vpop.permute.xlu0 %1369 }
  0xf7   : > { %v1904_v50 = vrot.slane %v1902_v35, 5  ;;  %v2180_v55 = vld [vmem:[#allocation2 + $0x88] sm:$0xf]  ;;  %3501 = vst.msk [vmem:[#allocation3 + $0x18] sm:$0xff] %vm3497_vm3, %v3456_v46  ;;  %1381 = vrot.lane.b32.xlu0 %v4108_v41, %s4550_s7  ;;  %v4109_v57 = vcombine.low %v1281_v34, %v1284_v48  ;;  %v1912_v59 = vshll.u32 %v1636_v31, 16  ;;  %v1917_v60 = vshrl.u32 %v1637_v38, 16  ;;  %v1048_v29 = vpop.permute.xlu1 %1047 }
  0xf8   : > { %v1899_v58 = vor.u32 %v1898_v44, %v1895_v43  ;;  %v2181_v61 = vld [vmem:[#allocation2 + $0x8c] sm:$0x1]  ;;  %1059 = vrot.lane.b32.xlu1 %v4077_v47, %s4551_s8  ;;  %v1908_v62 = vrot.slane %v1906_v51, 4  ;;  %v1920_v0 = vshll.u32 %v1637_v38, 16  ;;  %v1926_v1 = vshll.u32 %v1638_v11, 16  ;;  %v4444_v5 = vld [vmem:[#allocation2 + $0x90] sm:$0xff]  }
  0xf9   : > { %v1930_v56 = vshrl.u32 %v1638_v11, 16  ;;  %v2182_v2 = vld [vmem:[#allocation2 + $0x90] sm:$0xe]  ;;  %v1914_v4 = vrot.slane %v1912_v59, 5  ;;  %v1919_v6 = vrot.slane %v1917_v60, 4  ;;  %v1936_v8 = vshll.u32 %v1639_v52, 16 }
  0xfa   : > { %v1900_v3 = vrot.slane %v1899_v58, 4  ;;  %v3516_v9 = vld [vmem:[#allocation3 + $0x10] sm:$0xff]  ;;  %v1909_v13 = vor.u32 %v1908_v62, %v1904_v50  ;;  %v1922_v14 = vrot.slane %v1920_v0, 5  ;;  %v1928_v15 = vrot.slane %v1926_v1, 5  ;;  %v2183_v18 = vld [vmem:[#allocation2 + $0x94] sm:$0xf]  ;;  %v1548_v41 = vpop.permute.xlu0 %1547 }
  0xfb   : > { %v1932_v17 = vrot.slane %v1930_v56, 4  ;;  %4300 = vmatprep.mubr.bf16.mxu0 %v3516_v9  ;;  %1559 = vrot.lane.b32.xlu0 %v4443_v42, %s4547_s4  ;;  %v1938_v7 = vrot.slane %v1936_v8, 5  ;;  %v4156_v19 = vrot.slane %v2179_v54, 9  ;;  %v2317_v20 = vrot.slane %v2180_v55, 5  ;;  %v2184_v21 = vld [vmem:[#allocation2 + $0x98] sm:$0x1]  ;;  %v1372_v11 = vpop.permute.xlu1 %1371 }
  0xfc   : > { %v1905_v28 = vsel %vm4718_vm7, %v1900_v3, %v1904_v50  ;;  %1383 = vrot.lane.b32.xlu1 %v4109_v57, %s4550_s7  ;;  %v1910_v24 = vrot.slane %v1909_v13, 4  ;;  %v1923_v25 = vor.u32 %v1922_v14, %v1919_v6  ;;  %v2320_v27 = vrot.slane %v2181_v61, 5  ;;  %1414 = vst.msk [vmem:[#allocation3 + $0x20] sm:$0xff] %vm1409_vm11, %v1370_v22  ;;  %v2678_v63 = vld [vmem:[#allocation2 + $0x90] sm:$0xf] }
  0xfd   : > { %v1933_v26 = vor.u32 %v1932_v17, %v1928_v15  ;;  %v2318_v10 = vsel %vm4667_vm4, %v4156_v19, %v2317_v20  ;;  %v2319_v39 = vrot.slane %v2317_v20, 4  ;;  %v4157_v53 = vrot.slane %v2182_v2, 9  ;;  %1091 = vst.msk [vmem:[#allocation3 + $0x28] sm:$0xff] %vm1085_vm10, %v1048_v29  ;;  %v2679_v34 = vld [vmem:[#allocation2 + $0x94] sm:$0xf] }
  0xfe   : > { %v2324_v30 = vrot.slane %v2183_v18, 5  ;;  %v3517_v49 = vld [vmem:[#allocation3 + $0x18] sm:$0xff]  ;;  %v1915_v31 = vsel %vm4718_vm7, %v1910_v24, %v1914_v4  ;;  %v1924_v32 = vrot.slane %v1923_v25, 4  ;;  %v2327_v23 = vrot.slane %v2184_v21, 5  ;;  %v2680_v36 = vld [vmem:[#allocation2 + $0x98] sm:$0x1] }
  0xff   : > { %v1934_v33 = vrot.slane %v1933_v26, 4  ;;  %4301 = vmatmul.mubr.bf16.gmra.mrb[4].mxu0 %v3517_v49  ;;  %v4140_v37 = vcombine.low %v1905_v28, %v1915_v31  ;;  %v2321_v35 = vsel %vm4667_vm4, %v2319_v39, %v2320_v27  ;;  %v2937_v45 = vshrl.u32 %v2678_v63, 16  ;;  %v2681_v46 = vld [vmem:[#allocation2 + $0x9c] sm:$0xf]  ;;  %1592 = vst.msk [vmem:[#allocation3 + $0x20] sm:$0xff] %vm1587_vm12, %v1548_v41  ;;  %v4447_v62 = vld [vmem:[#allocation2 + $0x90] sm:$0xff]   ;;  %v1550_v13 = vpop.permute.xlu1 %1549 }
 0x100   : > { %v2325_v38 = vsel %vm4667_vm4, %v4157_v53, %v2324_v30  ;;  %v2326_v40 = vrot.slane %v2324_v30, 4  ;;  %1561 = vrot.lane.b32.xlu1 %v4444_v5, %s4547_s4  ;;  %v1929_v42 = vsel %vm4718_vm7, %v1924_v32, %v1928_v15  ;;  %v4172_v44 = vcombine.low %v2318_v10, %v2321_v35  ;;  %1415 = vst.msk [vmem:[#allocation3 + $0x28] sm:$0xff] %vm1409_vm11, %v1372_v11  ;;  %v2682_v52 = vld [vmem:[#allocation2 + $0xa0] sm:$0xf]  ;;  %v3223_v54 = vld [vmem:[#allocation2 + $0x90] sm:$0xe]  ;;  %v2093_v15 = vpop.permute.xlu0 %2092 }
 0x101   : > { %v1939_v43 = vsel %vm4718_vm7, %v1934_v33, %v1938_v7  ;;  %2104 = vrot.lane.b32.xlu0 %v4140_v37, %s4552_s19  ;;  %v2940_v50 = vshll.u32 %v2678_v63, 16  ;;  %v2946_v51 = vshll.u32 %v2679_v34, 16  ;;  %v2939_v57 = vrot.slane %v2937_v45, 4  ;;  %v2683_v60 = vld [vmem:[#allocation2 + $0xa4] sm:$0x1]  ;;  %1593 = vst.msk [vmem:[#allocation3 + $0x28] sm:$0xff] %vm1587_vm12, %v1550_v13 }
 0x102   : > { %v4141_v47 = vcombine.low %v1929_v42, %v1939_v43  ;;  %v2328_v48 = vsel %vm4667_vm4, %v2326_v40, %v2327_v23  ;;  %v2950_v58 = vshrl.u32 %v2679_v34, 16  ;;  %v2956_v59 = vshll.u32 %v2680_v36, 16  ;;  %v3224_v61 = vld [vmem:[#allocation2 + $0x94] sm:$0xf]  ;;  %v3225_v3 = vld [vmem:[#allocation2 + $0x98] sm:$0x1] }
 0x103   : > { %v4173_v55 = vcombine.low %v2325_v38, %v2328_v48  ;;  %v2942_v0 = vrot.slane %v2940_v50, 5  ;;  %v2948_v1 = vrot.slane %v2946_v51, 5  ;;  %v2961_v56 = vshrl.u32 %v2681_v46, 16  ;;  %v590_v14 = vld [vmem:[#allocation2 + $0x90] sm:$0xf]  ;;  %2137 = vst.msk [vmem:[#allocation3 + $0x20] sm:$0xff] %vm2132_vm13, %v2093_v15  ;;  %v2095_v32 = vpop.permute.xlu1 %2094 }
 0x104   : > { %v2964_v2 = vshll.u32 %v2681_v46, 16  ;;  %2106 = vrot.lane.b32.xlu1 %v4141_v47, %s4552_s19  ;;  %v2952_v4 = vrot.slane %v2950_v58, 4  ;;  %v2958_v6 = vrot.slane %v2956_v59, 5  ;;  %v2970_v8 = vshll.u32 %v2682_v52, 16  ;;  %v4463_v19 = vld [vmem:[#allocation2 + $0x90] sm:$0xff]   ;;  %v4448_v39 = vld [vmem:[#allocation2 + $0x9c] sm:$0xff]   ;;  %v2414_v23 = vpop.permute.xlu0 %2413 }
 0x105   : > { %v2974_v9 = vshrl.u32 %v2682_v52, 16  ;;  %2425 = vrot.lane.b32.xlu0 %v4172_v44, %s4549_s6  ;;  %v2943_v17 = vor.u32 %v2942_v0, %v2939_v57  ;;  %v2963_v18 = vrot.slane %v2961_v56, 4  ;;  %v2980_v7 = vshll.u32 %v2683_v60, 16  ;;  %v591_v24 = vld [vmem:[#allocation2 + $0x94] sm:$0xf]  ;;  %550 = vst.msk [vmem:[#allocation3 + $0x60] sm:$0xff] %vm537_vm9, %v4463_v19 }
 0x106   : > { %v2966_v28 = vrot.slane %v2964_v2, 5  ;;  %v2953_v20 = vor.u32 %v2952_v4, %v2948_v1  ;;  %v2972_v21 = vrot.slane %v2970_v8, 5  ;;  %v4220_v5 = vrot.slane %v3223_v54, 9  ;;  %v323_v10 = vld [vmem:[%s4642_s30 + $0xa8] sm:$0xf]  ;;  %2138 = vst.msk [vmem:[#allocation3 + $0x28] sm:$0xff] %vm2132_vm13, %v2095_v32 }
 0x107   : > { %v2976_v22 = vrot.slane %v2974_v9, 4  ;;  %v2944_v25 = vrot.slane %v2943_v17, 4  ;;  %v2982_v27 = vrot.slane %v2980_v7, 5  ;;  %v3361_v29 = vrot.slane %v3224_v61, 5  ;;  %v592_v49 = vld [vmem:[#allocation2 + $0x98] sm:$0x1]  ;;  %v2416_v60 = vpop.permute.xlu1 %2415 }
 0x108   : > { %v2967_v26 = vor.u32 %v2966_v28, %v2963_v18  ;;  %2427 = vrot.lane.b32.xlu1 %v4173_v55, %s4549_s6  ;;  %v2954_v53 = vrot.slane %v2953_v20, 4  ;;  %v3364_v63 = vrot.slane %v3225_v3, 5  ;;  %v894_v31 = vshrl.u32 %v590_v14, 16  ;;  %v3226_v33 = vld [vmem:[#allocation2 + $0x9c] sm:$0xe]  ;;  %2458 = vst.msk [vmem:[#allocation3 + $0x20] sm:$0xff] %vm2453_vm14, %v2414_v23  ;;  %v2592_v61 = vpop.permute.xlu0 %2591 }
 0x109   : > { %v2977_v30 = vor.u32 %v2976_v22, %v2972_v21  ;;  %v324_v34 = vld [vmem:[%s4642_s30 + $0xac] sm:$0xf]  ;;  %373 = vst.msk [vmem:[#allocation2 + $0xa8] sm:$0xf] %vm329_vm0, %v323_v10  ;;  %2603 = vrot.lane.b32.xlu0 %v4447_v62, %s4548_s5  ;;  %v2949_v37 = vsel %vm4718_vm7, %v2944_v25, %v2948_v1  ;;  %v3362_v38 = vsel %vm4667_vm4, %v4220_v5, %v3361_v29  ;;  %v3363_v40 = vrot.slane %v3361_v29, 4  ;;  %v4464_v46 = vld [vmem:[#allocation2 + $0x9c] sm:$0xff]  }
 0x10a   : > { %v2968_v35 = vrot.slane %v2967_v26, 4  ;;  %v3227_v36 = vld [vmem:[#allocation2 + $0xa0] sm:$0xf]  ;;  %v3228_v41 = vld [vmem:[#allocation2 + $0xa4] sm:$0x1]  ;;  %v2959_v42 = vsel %vm4718_vm7, %v2954_v53, %v2958_v6  ;;  %v896_v44 = vrot.slane %v894_v31, 4 }
 0x10b   : > { %374 = vst.msk [vmem:[#allocation2 + $0xac] sm:$0xf] %vm329_vm0, %v324_v34  ;;  %v2978_v43 = vrot.slane %v2977_v30, 4  ;;  %v897_v11 = vshll.u32 %v590_v14, 16  ;;  %v593_v45 = vld [vmem:[#allocation2 + $0x9c] sm:$0xf]  ;;  %v4204_v47 = vcombine.low %v2949_v37, %v2959_v42  ;;  %v3365_v50 = vsel %vm4667_vm4, %v3363_v40, %v3364_v63 }
 0x10c   : > { %v2973_v48 = vsel %vm4718_vm7, %v2968_v35, %v2972_v21  ;;  %v903_v51 = vshll.u32 %v591_v24, 16  ;;  %v325_v52 = vld [vmem:[%s4642_s30 + $0xb0] sm:$0x1]  ;;  %2605 = vrot.lane.b32.xlu1 %v4448_v39, %s4548_s5  ;;  %v4236_v55 = vcombine.low %v3362_v38, %v3365_v50  ;;  %v907_v58 = vshrl.u32 %v591_v24, 16  ;;  %v594_v59 = vld [vmem:[#allocation2 + $0xa0] sm:$0xf]  ;;  %v2594_v21 = vpop.permute.xlu1 %2593 }
 0x10d   : > { %v2983_v54 = vsel %vm4718_vm7, %v2978_v43, %v2982_v27  ;;  %v899_v57 = vrot.slane %v897_v11, 5  ;;  %375 = vst.msk [vmem:[#allocation2 + $0xb0] sm:$0x1] %vm332_vm1, %v325_v52  ;;  %3148 = vrot.lane.b32.xlu0 %v4204_v47, %s4553_s28  ;;  %v913_v1 = vshll.u32 %v592_v49, 16  ;;  %v4221_v56 = vrot.slane %v3226_v33, 9  ;;  %v3137_v27 = vpop.permute.xlu0 %3136 }
 0x10e   : > { %551 = vst.msk [vmem:[#allocation3 + $0x68] sm:$0xff] %vm537_vm9, %v4464_v46  ;;  %v4205_v62 = vcombine.low %v2973_v48, %v2983_v54  ;;  %v905_v0 = vrot.slane %v903_v51, 5  ;;  %v595_v2 = vld [vmem:[#allocation2 + $0xa4] sm:$0x1]  ;;  %v909_v4 = vrot.slane %v907_v58, 4  ;;  %v3368_v6 = vrot.slane %v3227_v36, 5 }
 0x10f   : > { %2459 = vst.msk [vmem:[#allocation3 + $0x28] sm:$0xff] %vm2453_vm14, %v2416_v60  ;;  %v900_v3 = vor.u32 %v899_v57, %v896_v44  ;;  %v3371_v8 = vrot.slane %v3228_v41, 5  ;;  %v1138_v9 = vld [vmem:[#allocation2 + $0x90] sm:$0xe]  ;;  %v915_v13 = vrot.slane %v913_v1, 5  ;;  %v918_v14 = vshrl.u32 %v593_v45, 16 }
 0x110   : > { %2636 = vst.msk [vmem:[#allocation3 + $0x20] sm:$0xff] %vm2631_vm15, %v2592_v61  ;;  %v921_v15 = vshll.u32 %v593_v45, 16  ;;  %v927_v17 = vshll.u32 %v594_v59, 16  ;;  %3150 = vrot.lane.b32.xlu1 %v4205_v62, %s4553_s28  ;;  %v910_v28 = vor.u32 %v909_v4, %v905_v0  ;;  %v3369_v7 = vsel %vm4667_vm4, %v4221_v56, %v3368_v6  ;;  %v1139_v20 = vld [vmem:[#allocation2 + $0x94] sm:$0xf]  ;;  %2637 = vst.msk [vmem:[#allocation3 + $0x28] sm:$0xff] %vm2631_vm15, %v2594_v21  ;;  %v3139_v36 = vpop.permute.xlu1 %3138 }
 0x111   : > { %v901_v18 = vrot.slane %v900_v3, 4  ;;  %v3370_v19 = vrot.slane %v3368_v6, 4  ;;  %3469 = vrot.lane.b32.xlu0 %v4236_v55, %s4554_s29  ;;  %v920_v22 = vrot.slane %v918_v14, 4  ;;  %v931_v25 = vshrl.u32 %v594_v59, 16  ;;  %v1140_v26 = vld [vmem:[#allocation2 + $0x98] sm:$0x1]  ;;  %v3458_v45 = vpop.permute.xlu0 %3457 }
 0x112   : > { %v923_v5 = vrot.slane %v921_v15, 5  ;;  %v929_v24 = vrot.slane %v927_v17, 5  ;;  %v911_v10 = vrot.slane %v910_v28, 4  ;;  %v937_v53 = vshll.u32 %v595_v2, 16  ;;  %v1141_v30 = vld [vmem:[#allocation2 + $0x9c] sm:$0xe] }
 0x113   : > { %v906_v29 = vsel %vm4718_vm7, %v901_v18, %v905_v0  ;;  %v3372_v39 = vsel %vm4667_vm4, %v3370_v19, %v3371_v8  ;;  %v1142_v63 = vld [vmem:[#allocation2 + $0xa0] sm:$0xf]  ;;  %3181 = vst.msk [vmem:[#allocation3 + $0x20] sm:$0xff] %vm3176_vm2, %v3137_v27  ;;  %v933_v32 = vrot.slane %v931_v25, 4  ;;  %v4094_v33 = vrot.slane %v1138_v9, 9  ;;  %3182 = vst.msk [vmem:[#allocation3 + $0x28] sm:$0xff] %vm3176_vm2, %v3139_v36 }
 0x114   : > { %v4237_v49 = vcombine.low %v3369_v7, %v3372_v39  ;;  %v924_v31 = vor.u32 %v923_v5, %v920_v22  ;;  %v1143_v23 = vld [vmem:[#allocation2 + $0xa4] sm:$0x1]  ;;  %v1640_v34 = vld [vmem:[#allocation2 + $0x9c] sm:$0xf]  ;;  %v916_v37 = vsel %vm4718_vm7, %v911_v10, %v915_v13  ;;  %v939_v35 = vrot.slane %v937_v53, 5  ;;  %3502 = vst.msk [vmem:[#allocation3 + $0x20] sm:$0xff] %vm3497_vm3, %v3458_v45 }
 0x115   : > { %v1287_v38 = vrot.slane %v1139_v20, 5  ;;  %v1290_v40 = vrot.slane %v1140_v26, 5  ;;  %v1641_v41 = vld [vmem:[#allocation2 + $0xa0] sm:$0xf]  ;;  %v4078_v42 = vcombine.low %v906_v29, %v916_v37  ;;  %v934_v44 = vor.u32 %v933_v32, %v929_v24  ;;  %v1642_v51 = vld [vmem:[#allocation2 + $0xa4] sm:$0x1]  ;;  %v1050_v9 = vpop.permute.xlu1 %1049  ;;  %v3460_v13 = vpop.permute.xlu0 %3459 }
 0x116   : > { %3471 = vrot.lane.b32.xlu0 %v4237_v49, %s4554_s29  ;;  %v925_v43 = vrot.slane %v924_v31, 4  ;;  %v4095_v11 = vrot.slane %v1141_v30, 9  ;;  %v1294_v48 = vrot.slane %v1142_v63, 5  ;;  %v1297_v50 = vrot.slane %v1143_v23, 5  ;;  %v1643_v52 = vld [vmem:[#allocation2 + $0xa8] sm:$0xf] }
 0x117   : > { %v1288_v46 = vsel %vm4667_vm4, %v4094_v33, %v1287_v38  ;;  %v1289_v47 = vrot.slane %v1287_v38, 4  ;;  %1061 = vrot.lane.b32.xlu1 %v4078_v42, %s4551_s8  ;;  %v935_v55 = vrot.slane %v934_v44, 4  ;;  %v1941_v57 = vshrl.u32 %v1640_v34, 16  ;;  %v326_v0 = vld [vmem:[%s4642_s30 + $0xb4] sm:$0xf]  ;;  %v4449_v3 = vld [vmem:[#allocation2 + $0x9c] sm:$0xff]  }
 0x118   : > { %v930_v54 = vsel %vm4718_vm7, %v925_v43, %v929_v24  ;;  %v1944_v58 = vshll.u32 %v1640_v34, 16  ;;  %v1295_v60 = vsel %vm4667_vm4, %v4095_v11, %v1294_v48  ;;  %v1296_v61 = vrot.slane %v1294_v48, 4  ;;  %v327_v1 = vld [vmem:[%s4642_s30 + $0xb8] sm:$0xf]  ;;  %v1644_v8 = vld [vmem:[#allocation2 + $0xac] sm:$0xf] }
 0x119   : > { %v1291_v59 = vsel %vm4667_vm4, %v1289_v47, %v1290_v40  ;;  %v1950_v62 = vshll.u32 %v1641_v41, 16  ;;  %v940_v56 = vsel %vm4718_vm7, %v935_v55, %v939_v35  ;;  %v1943_v4 = vrot.slane %v1941_v57, 4  ;;  %376 = vst.msk [vmem:[#allocation2 + $0xb4] sm:$0xf] %vm329_vm0, %v326_v0  ;;  %377 = vst.msk [vmem:[#allocation2 + $0xb8] sm:$0xf] %vm329_vm0, %v327_v1 }
 0x11a   : > { %v4110_v2 = vcombine.low %v1288_v46, %v1291_v59  ;;  %v1946_v6 = vrot.slane %v1944_v58, 5  ;;  %v4079_v14 = vcombine.low %v930_v54, %v940_v56  ;;  %v1298_v15 = vsel %vm4667_vm4, %v1296_v61, %v1297_v50  ;;  %v1645_v28 = vld [vmem:[#allocation2 + $0xb0] sm:$0x1]  ;;  %1092 = vst.msk [vmem:[#allocation3 + $0x30] sm:$0xff] %vm1085_vm10, %v1050_v9  ;;  %v2185_v7 = vld [vmem:[#allocation2 + $0x9c] sm:$0xe]  ;;  %v1374_v43 = vpop.permute.xlu0 %1373 }
 0x11b   : > { %v1952_v17 = vrot.slane %v1950_v62, 5  ;;  %v1954_v18 = vshrl.u32 %v1641_v41, 16  ;;  %3503 = vst.msk [vmem:[#allocation3 + $0x28] sm:$0xff] %vm3497_vm3, %v3460_v13  ;;  %v328_v19 = vld [vmem:[%s4642_s30 + $0xbc] sm:$0x1]  ;;  %v4111_v20 = vcombine.low %v1295_v60, %v1298_v15  ;;  %v1960_v22 = vshll.u32 %v1642_v51, 16  ;;  %v1052_v47 = vpop.permute.xlu1 %1051 }
 0x11c   : > { %1385 = vrot.lane.b32.xlu0 %v4110_v2, %s4550_s7  ;;  %v1947_v21 = vor.u32 %v1946_v6, %v1943_v4  ;;  %v1965_v5 = vshrl.u32 %v1643_v52, 16  ;;  %v2186_v24 = vld [vmem:[#allocation2 + $0xa0] sm:$0xf]  ;;  %v2187_v25 = vld [vmem:[#allocation2 + $0xa4] sm:$0x1]  ;;  %1063 = vrot.lane.b32.xlu1 %v4079_v14, %s4551_s8  ;;  %v1968_v27 = vshll.u32 %v1643_v52, 16 }
 0x11d   : > { %378 = vst.msk [vmem:[#allocation2 + $0xbc] sm:$0x1] %vm332_vm1, %v328_v19  ;;  %v1956_v26 = vrot.slane %v1954_v18, 4  ;;  %v1974_v29 = vshll.u32 %v1644_v8, 16  ;;  %v1978_v10 = vshrl.u32 %v1644_v8, 16  ;;  %v1962_v30 = vrot.slane %v1960_v22, 5 }
 0x11e   : > { %v2188_v39 = vld [vmem:[#allocation2 + $0xa8] sm:$0xe]  ;;  %v1948_v53 = vrot.slane %v1947_v21, 4  ;;  %v1967_v63 = vrot.slane %v1965_v5, 4  ;;  %v1984_v49 = vshll.u32 %v1645_v28, 16  ;;  %v3518_v31 = vld [vmem:[#allocation3 + $0x20] sm:$0xff] }
 0x11f   : > { %v1957_v32 = vor.u32 %v1956_v26, %v1952_v17  ;;  %v1970_v33 = vrot.slane %v1968_v27, 5  ;;  %v1976_v23 = vrot.slane %v1974_v29, 5  ;;  %v1980_v34 = vrot.slane %v1978_v10, 4  ;;  %v2189_v37 = vld [vmem:[#allocation2 + $0xac] sm:$0xf]  ;;  %4304 = vmatprep.mubr.bf16.mxu0 %v3518_v31  ;;  %1416 = vst.msk [vmem:[#allocation3 + $0x30] sm:$0xff] %vm1409_vm11, %v1374_v43  ;;  %v1376_v9 = vpop.permute.xlu1 %1375 }
 0x120   : > { %1563 = vrot.lane.b32.xlu0 %v4449_v3, %s4547_s4  ;;  %v4450_v35 = vld [vmem:[#allocation2 + $0xa8] sm:$0xff]   ;;  %v1953_v38 = vsel %vm4718_vm7, %v1948_v53, %v1952_v17  ;;  %v1986_v40 = vrot.slane %v1984_v49, 5  ;;  %v4158_v36 = vrot.slane %v2185_v7, 9  ;;  %v2331_v41 = vrot.slane %v2186_v24, 5  ;;  %v2190_v42 = vld [vmem:[#allocation2 + $0xb0] sm:$0x1]  ;;  %1387 = vrot.lane.b32.xlu1 %v4111_v20, %s4550_s7  ;;  %v1552_v3 = vpop.permute.xlu0 %1551 }
 0x121   : > { %v1958_v44 = vrot.slane %v1957_v32, 4  ;;  %v1971_v11 = vor.u32 %v1970_v33, %v1967_v63  ;;  %v1981_v45 = vor.u32 %v1980_v34, %v1976_v23  ;;  %v2334_v46 = vrot.slane %v2187_v25, 5  ;;  %1093 = vst.msk [vmem:[#allocation3 + $0x38] sm:$0xff] %vm1085_vm10, %v1052_v47  ;;  %v2684_v54 = vld [vmem:[#allocation2 + $0xa8] sm:$0xf]  ;;  %s5360_s30 = sadd.s32 192, %s4344_s27 }
 0x122   : > { %v2332_v48 = vsel %vm4667_vm4, %v4158_v36, %v2331_v41  ;;  %v2333_v50 = vrot.slane %v2331_v41, 4  ;;  %v4159_v51 = vrot.slane %v2188_v39, 9  ;;  %v2338_v52 = vrot.slane %v2189_v37, 5  ;;  %v2685_v60 = vld [vmem:[#allocation2 + $0xac] sm:$0xf]  ;;  %v3519_v61 = vld [vmem:[#allocation3 + $0x28] sm:$0xff]  ;;  %s5372_s21 = scalar_lea.vmem %s5670_s1, %s5360_s30 }
 0x123   : > { %v1963_v55 = vsel %vm4718_vm7, %v1958_v44, %v1962_v30  ;;  %v1972_v57 = vrot.slane %v1971_v11, 4  ;;  %v1982_v58 = vrot.slane %v1981_v45, 4  ;;  %v2341_v59 = vrot.slane %v2190_v42, 5  ;;  %v2686_v2 = vld [vmem:[#allocation2 + $0xb0] sm:$0x1]  ;;  %4305 = vmatmul.mubr.bf16.gmra.mrb[8].mxu0 %v3519_v61  ;;  %1594 = vst.msk [vmem:[#allocation3 + $0x30] sm:$0xff] %vm1587_vm12, %v1552_v3  ;;  %v1554_v31 = vpop.permute.xlu1 %1553 }
 0x124   : > { %v4142_v62 = vcombine.low %v1953_v38, %v1963_v55  ;;  %v2335_v0 = vsel %vm4667_vm4, %v2333_v50, %v2334_v46  ;;  %v2339_v1 = vsel %vm4667_vm4, %v4159_v51, %v2338_v52  ;;  %v2340_v56 = vrot.slane %v2338_v52, 4  ;;  %1565 = vrot.lane.b32.xlu1 %v4450_v35, %s4547_s4  ;;  %v2687_v14 = vld [vmem:[#allocation2 + $0xb4] sm:$0xf]  ;;  %1417 = vst.msk [vmem:[#allocation3 + $0x38] sm:$0xff] %vm1409_vm11, %v1376_v9  ;;  %v2688_v7 = vld [vmem:[#allocation2 + $0xb8] sm:$0xf]  ;;  %v2097_v33 = vpop.permute.xlu0 %2096 }
 0x125   : > { %v1977_v4 = vsel %vm4718_vm7, %v1972_v57, %v1976_v23  ;;  %v1987_v6 = vsel %vm4718_vm7, %v1982_v58, %v1986_v40  ;;  %v4174_v8 = vcombine.low %v2332_v48, %v2335_v0  ;;  %v2985_v13 = vshrl.u32 %v2684_v54, 16  ;;  %v3229_v19 = vld [vmem:[#allocation2 + $0xa8] sm:$0xe]  ;;  %v2689_v24 = vld [vmem:[#allocation2 + $0xbc] sm:$0x1]  ;;  %1595 = vst.msk [vmem:[#allocation3 + $0x38] sm:$0xff] %vm1587_vm12, %v1554_v31 }
 0x126   : > { %2108 = vrot.lane.b32.xlu0 %v4142_v62, %s4552_s19  ;;  %v4143_v15 = vcombine.low %v1977_v4, %v1987_v6  ;;  %v2342_v17 = vsel %vm4667_vm4, %v2340_v56, %v2341_v59  ;;  %v2988_v18 = vshll.u32 %v2684_v54, 16  ;;  %v2994_v28 = vshll.u32 %v2685_v60, 16  ;;  %v4453_v25 = vld [vmem:[#allocation2 + $0xa8] sm:$0xff]   ;;  %v3231_v32 = vld [vmem:[#allocation2 + $0xb0] sm:$0x1]  ;;  %2139 = vst.msk [vmem:[#allocation3 + $0x30] sm:$0xff] %vm2132_vm13, %v2097_v33 }
 0x127   : > { %v4175_v20 = vcombine.low %v2339_v1, %v2342_v17  ;;  %v2987_v21 = vrot.slane %v2985_v13, 4  ;;  %v2998_v22 = vshrl.u32 %v2685_v60, 16  ;;  %v3004_v5 = vshll.u32 %v2686_v2, 16  ;;  %v3230_v39 = vld [vmem:[#allocation2 + $0xac] sm:$0xf]  ;;  %v4454_v48 = vld [vmem:[#allocation2 + $0xb4] sm:$0xff]   ;;  %v2099_v57 = vpop.permute.xlu1 %2098 }
 0x128   : > { %v2990_v26 = vrot.slane %v2988_v18, 5  ;;  %v2996_v27 = vrot.slane %v2994_v28, 5  ;;  %v3009_v29 = vshrl.u32 %v2687_v14, 16  ;;  %v3012_v10 = vshll.u32 %v2687_v14, 16  ;;  %2110 = vrot.lane.b32.xlu1 %v4143_v15, %s4552_s19  ;;  %v596_v38 = vld [vmem:[#allocation2 + $0xa8] sm:$0xf]  ;;  %v2418_v59 = vpop.permute.xlu0 %2417 }
 0x129   : > { %v3000_v53 = vrot.slane %v2998_v22, 4  ;;  %v3006_v30 = vrot.slane %v3004_v5, 5  ;;  %v3018_v63 = vshll.u32 %v2688_v7, 16  ;;  %v3022_v49 = vshrl.u32 %v2688_v7, 16  ;;  %v4465_v40 = vld [vmem:[#allocation2 + $0xa8] sm:$0xff]   ;;  %2140 = vst.msk [vmem:[#allocation3 + $0x38] sm:$0xff] %vm2132_vm13, %v2099_v57 }
 0x12a   : > { %2429 = vrot.lane.b32.xlu0 %v4174_v8, %s4549_s6  ;;  %v2991_v23 = vor.u32 %v2990_v26, %v2987_v21  ;;  %v3011_v34 = vrot.slane %v3009_v29, 4  ;;  %v3014_v37 = vrot.slane %v3012_v10, 5  ;;  %v3028_v35 = vshll.u32 %v2689_v24, 16  ;;  %v597_v47 = vld [vmem:[#allocation2 + $0xac] sm:$0xf]  ;;  %552 = vst.msk [vmem:[#allocation3 + $0x70] sm:$0xff] %vm537_vm9, %v4465_v40 }
 0x12b   : > { %v3001_v36 = vor.u32 %v3000_v53, %v2996_v27  ;;  %v3020_v41 = vrot.slane %v3018_v63, 5  ;;  %v3024_v42 = vrot.slane %v3022_v49, 4  ;;  %v4222_v43 = vrot.slane %v3229_v19, 9  ;;  %v598_v54 = vld [vmem:[#allocation2 + $0xb0] sm:$0x1]  ;;  %2460 = vst.msk [vmem:[#allocation3 + $0x30] sm:$0xff] %vm2453_vm14, %v2418_v59  ;;  %v2420_v5 = vpop.permute.xlu1 %2419 }
 0x12c   : > { %v2992_v44 = vrot.slane %v2991_v23, 4  ;;  %v3015_v11 = vor.u32 %v3014_v37, %v3011_v34  ;;  %v3030_v45 = vrot.slane %v3028_v35, 5  ;;  %v3375_v46 = vrot.slane %v3230_v39, 5  ;;  %2431 = vrot.lane.b32.xlu1 %v4175_v20, %s4549_s6  ;;  %v3232_v58 = vld [vmem:[#allocation2 + $0xb4] sm:$0xe]  ;;  %v2596_v24 = vpop.permute.xlu0 %2595  ;;  %2461 = vst.msk [vmem:[#allocation3 + $0x38] sm:$0xff] %vm2453_vm14, %v2420_v5 }
 0x12d   : > { %v3002_v50 = vrot.slane %v3001_v36, 4  ;;  %v3025_v51 = vor.u32 %v3024_v42, %v3020_v41  ;;  %v3378_v52 = vrot.slane %v3231_v32, 5  ;;  %v942_v55 = vshrl.u32 %v596_v38, 16  ;;  %v3233_v1 = vld [vmem:[#allocation2 + $0xb8] sm:$0xf]  ;;  %2638 = vst.msk [vmem:[#allocation3 + $0x30] sm:$0xff] %vm2631_vm15, %v2596_v24 }
 0x12e   : > { %2607 = vrot.lane.b32.xlu0 %v4453_v25, %s4548_s5  ;;  %v2997_v60 = vsel %vm4718_vm7, %v2992_v44, %v2996_v27  ;;  %v3016_v61 = vrot.slane %v3015_v11, 4  ;;  %v3376_v62 = vsel %vm4667_vm4, %v4222_v43, %v3375_v46  ;;  %v3377_v0 = vrot.slane %v3375_v46, 4  ;;  %v5380_v56 = vld [vmem:[#allocation2 + $0xbc] sm:$0x1]  ;;  %v4466_v8 = vld [vmem:[#allocation2 + $0xb4] sm:$0xff]  }
 0x12f   : > { %v3007_v2 = vsel %vm4718_vm7, %v3002_v50, %v3006_v30  ;;  %v3026_v3 = vrot.slane %v3025_v51, 4  ;;  %v944_v4 = vrot.slane %v942_v55, 4  ;;  %v945_v6 = vshll.u32 %v596_v38, 16  ;;  %v379_v17 = vld [vmem:[%s5372_s21] sm:$0xf]  ;;  %553 = vst.msk [vmem:[#allocation3 + $0x78] sm:$0xff] %vm537_vm9, %v4466_v8  ;;  %v2598_v43 = vpop.permute.xlu1 %2597 }
 0x130   : > { %v4206_v9 = vcombine.low %v2997_v60, %v3007_v2  ;;  %v3021_v13 = vsel %vm4718_vm7, %v3016_v61, %v3020_v41  ;;  %v3379_v14 = vsel %vm4667_vm4, %v3377_v0, %v3378_v52  ;;  %v951_v15 = vshll.u32 %v597_v47, 16  ;;  %v380_v18 = vld [vmem:[%s5372_s21 + $0x4] sm:$0xf]  ;;  %2609 = vrot.lane.b32.xlu1 %v4454_v48, %s4548_s5  ;;  %v599_v21 = vld [vmem:[#allocation2 + $0xb4] sm:$0xf]  ;;  %2639 = vst.msk [vmem:[#allocation3 + $0x38] sm:$0xff] %vm2631_vm15, %v2598_v43  ;;  %v3141_v48 = vpop.permute.xlu0 %3140 }
 0x131   : > { %v3031_v28 = vsel %vm4718_vm7, %v3026_v3, %v3030_v45  ;;  %v4238_v7 = vcombine.low %v3376_v62, %v3379_v14  ;;  %v947_v19 = vrot.slane %v945_v6, 5  ;;  %v955_v20 = vshrl.u32 %v597_v47, 16  ;;  %v600_v22 = vld [vmem:[#allocation2 + $0xb8] sm:$0xf]  ;;  %386 = vst.msk [vmem:[#allocation2 + $0xc0] sm:$0xf] %vm329_vm0, %v379_v17 }
 0x132   : > { %387 = vst.msk [vmem:[#allocation2 + $0xc4] sm:$0xf] %vm329_vm0, %v380_v18  ;;  %3152 = vrot.lane.b32.xlu0 %v4206_v9, %s4553_s28  ;;  %v4207_v25 = vcombine.low %v3021_v13, %v3031_v28  ;;  %v953_v26 = vrot.slane %v951_v15, 5  ;;  %v961_v27 = vshll.u32 %v598_v54, 16  ;;  %v4223_v29 = vrot.slane %v3232_v58, 9 }
 0x133   : > { %v601_v10 = vld [vmem:[#allocation2 + $0xbc] sm:$0x1]  ;;  %v948_v39 = vor.u32 %v947_v19, %v944_v4  ;;  %v957_v53 = vrot.slane %v955_v20, 4  ;;  %v3382_v30 = vrot.slane %v3233_v1, 5  ;;  %v3385_v63 = vrot.slane %v5380_v56, 5  ;;  %3183 = vst.msk [vmem:[#allocation3 + $0x30] sm:$0xff] %vm3176_vm2, %v3141_v48  ;;  %v3143_v56 = vpop.permute.xlu1 %3142 }
 0x134   : > { %v1144_v49 = vld [vmem:[#allocation2 + $0xa8] sm:$0xe]  ;;  %v381_v31 = vld [vmem:[%s5372_s21 + $0x8] sm:$0x1]  ;;  %v963_v32 = vrot.slane %v961_v27, 5  ;;  %v966_v33 = vshrl.u32 %v599_v21, 16  ;;  %3154 = vrot.lane.b32.xlu1 %v4207_v25, %s4553_s28  ;;  %v3462_v13 = vpop.permute.xlu0 %3461 }
 0x135   : > { %v969_v23 = vshll.u32 %v599_v21, 16  ;;  %v975_v34 = vshll.u32 %v600_v22, 16  ;;  %v1145_v37 = vld [vmem:[#allocation2 + $0xac] sm:$0xf]  ;;  %v1146_v35 = vld [vmem:[#allocation2 + $0xb0] sm:$0x1]  ;;  %v958_v40 = vor.u32 %v957_v53, %v953_v26  ;;  %v3383_v36 = vsel %vm4667_vm4, %v4223_v29, %v3382_v30 }
 0x136   : > { %388 = vst.msk [vmem:[#allocation2 + $0xc8] sm:$0x1] %vm332_vm1, %v381_v31  ;;  %v949_v38 = vrot.slane %v948_v39, 4  ;;  %v3384_v41 = vrot.slane %v3382_v30, 4  ;;  %v1147_v42 = vld [vmem:[#allocation2 + $0xb4] sm:$0xe]  ;;  %3473 = vrot.lane.b32.xlu0 %v4238_v7, %s4554_s29 }
 0x137   : > { %v968_v44 = vrot.slane %v966_v33, 4  ;;  %v971_v11 = vrot.slane %v969_v23, 5  ;;  %v977_v45 = vrot.slane %v975_v34, 5  ;;  %v979_v46 = vshrl.u32 %v600_v22, 16  ;;  %v1148_v47 = vld [vmem:[#allocation2 + $0xb8] sm:$0xf] }
 0x138   : > { %v954_v50 = vsel %vm4718_vm7, %v949_v38, %v953_v26  ;;  %v959_v51 = vrot.slane %v958_v40, 4  ;;  %v3386_v52 = vsel %vm4667_vm4, %v3384_v41, %v3385_v63  ;;  %v985_v54 = vshll.u32 %v601_v10, 16  ;;  %v1149_v55 = vld [vmem:[#allocation2 + $0xbc] sm:$0x1]  ;;  %v1646_v2 = vld [vmem:[#allocation2 + $0xb4] sm:$0xf] }
 0x139   : > { %v4239_v57 = vcombine.low %v3383_v36, %v3386_v52  ;;  %v972_v58 = vor.u32 %v971_v11, %v968_v44  ;;  %v981_v59 = vrot.slane %v979_v46, 4  ;;  %v4096_v60 = vrot.slane %v1144_v49, 9  ;;  %3184 = vst.msk [vmem:[#allocation3 + $0x38] sm:$0xff] %vm3176_vm2, %v3143_v56  ;;  %v1647_v9 = vld [vmem:[#allocation2 + $0xb8] sm:$0xf] }
 0x13a   : > { %v964_v61 = vsel %vm4718_vm7, %v959_v51, %v963_v32  ;;  %v987_v62 = vrot.slane %v985_v54, 5  ;;  %v1301_v0 = vrot.slane %v1145_v37, 5  ;;  %v1304_v1 = vrot.slane %v1146_v35, 5  ;;  %v1648_v28 = vld [vmem:[#allocation2 + $0xbc] sm:$0x1]  ;;  %3504 = vst.msk [vmem:[#allocation3 + $0x30] sm:$0xff] %vm3497_vm3, %v3462_v13 }
 0x13b   : > { %v4080_v3 = vcombine.low %v954_v50, %v964_v61  ;;  %3475 = vrot.lane.b32.xlu0 %v4239_v57, %s4554_s29  ;;  %v973_v4 = vrot.slane %v972_v58, 4  ;;  %v982_v6 = vor.u32 %v981_v59, %v977_v45  ;;  %v4097_v8 = vrot.slane %v1147_v42, 9  ;;  %v1649_v7 = vld [vmem:[#allocation2 + $0xc0] sm:$0xf]  ;;  %v1650_v5 = vld [vmem:[#allocation2 + $0xc4] sm:$0xf] }
 0x13c   : > { %v1302_v14 = vsel %vm4667_vm4, %v4096_v60, %v1301_v0  ;;  %v1303_v15 = vrot.slane %v1301_v0, 4  ;;  %v1308_v17 = vrot.slane %v1148_v47, 5  ;;  %v1311_v18 = vrot.slane %v1149_v55, 5  ;;  %v4455_v53 = vld [vmem:[#allocation2 + $0xb4] sm:$0xff]   ;;  %v382_v35 = vld [vmem:[%s5372_s21 + $0xc] sm:$0xf] }
 0x13d   : > { %1065 = vrot.lane.b32.xlu1 %v4080_v3, %s4551_s8  ;;  %v978_v19 = vsel %vm4718_vm7, %v973_v4, %v977_v45  ;;  %v983_v20 = vrot.slane %v982_v6, 4  ;;  %v1989_v21 = vshrl.u32 %v1646_v2, 16  ;;  %v1992_v22 = vshll.u32 %v1646_v2, 16  ;;  %v1651_v29 = vld [vmem:[#allocation2 + $0xc8] sm:$0x1]  ;;  %v4456_v0 = vld [vmem:[#allocation2 + $0xc0] sm:$0xff]  }
 0x13e   : > { %v1305_v24 = vsel %vm4667_vm4, %v1303_v15, %v1304_v1  ;;  %v1309_v25 = vsel %vm4667_vm4, %v4097_v8, %v1308_v17  ;;  %v1310_v26 = vrot.slane %v1308_v17, 4  ;;  %v1998_v27 = vshll.u32 %v1647_v9, 16  ;;  %v2191_v34 = vld [vmem:[#allocation2 + $0xb4] sm:$0xe]  ;;  %v383_v38 = vld [vmem:[%s5372_s21 + $0x10] sm:$0xf] }
 0x13f   : > { %v988_v10 = vsel %vm4718_vm7, %v983_v20, %v987_v62  ;;  %v4112_v39 = vcombine.low %v1302_v14, %v1305_v24  ;;  %v1991_v30 = vrot.slane %v1989_v21, 4  ;;  %v1994_v63 = vrot.slane %v1992_v22, 5  ;;  %v2192_v43 = vld [vmem:[#allocation2 + $0xb8] sm:$0xf]  ;;  %v2193_v44 = vld [vmem:[#allocation2 + $0xbc] sm:$0x1] }
 0x140   : > { %v4081_v31 = vcombine.low %v978_v19, %v988_v10  ;;  %v1312_v32 = vsel %vm4667_vm4, %v1310_v26, %v1311_v18  ;;  %v5431_v33 = vrot.slane %v1998_v27, 5  ;;  %v2002_v23 = vshrl.u32 %v1647_v9, 16  ;;  %v3464_v37 = vpop.permute.xlu0 %3463  ;;  %389 = vst.msk [vmem:[#allocation2 + $0xcc] sm:$0xf] %vm329_vm0, %v382_v35  ;;  %390 = vst.msk [vmem:[#allocation2 + $0xd0] sm:$0xf] %vm329_vm0, %v383_v38 }
 0x141   : > { %v1054_v49 = vpop.permute.xlu1 %1053  ;;  %1389 = vrot.lane.b32.xlu0 %v4112_v39, %s4550_s7  ;;  %v4113_v40 = vcombine.low %v1309_v25, %v1312_v32  ;;  %v1995_v36 = vor.u32 %v1994_v63, %v1991_v30  ;;  %v2008_v41 = vshll.u32 %v1648_v28, 16  ;;  %v2013_v42 = vshrl.u32 %v1649_v7, 16  ;;  %3505 = vst.msk [vmem:[#allocation3 + $0x38] sm:$0xff] %vm3497_vm3, %v3464_v37  ;;  %v2194_v48 = vld [vmem:[#allocation2 + $0xc0] sm:$0xe]  ;;  %v3520_v57 = vld [vmem:[#allocation3 + $0x30] sm:$0xff] }
 0x142   : > { %1094 = vst.msk [vmem:[#allocation3 + $0x40] sm:$0xff] %vm1085_vm10, %v1054_v49  ;;  %1067 = vrot.lane.b32.xlu1 %v4081_v31, %s4551_s8  ;;  %v2004_v11 = vrot.slane %v2002_v23, 4  ;;  %v2016_v45 = vshll.u32 %v1649_v7, 16  ;;  %v2022_v46 = vshll.u32 %v1650_v5, 16  ;;  %v2026_v47 = vshrl.u32 %v1650_v5, 16  ;;  %4308 = vmatprep.mubr.bf16.mxu0 %v3520_v57 }
 0x143   : > { %v2195_v50 = vld [vmem:[#allocation2 + $0xc4] sm:$0xf]  ;;  %v1996_v51 = vrot.slane %v1995_v36, 4  ;;  %v2010_v52 = vrot.slane %v2008_v41, 5  ;;  %v2015_v54 = vrot.slane %v2013_v42, 4  ;;  %v2032_v55 = vshll.u32 %v1651_v29, 16 }
 0x144   : > { %v2005_v58 = vor.u32 %v2004_v11, %v5431_v33  ;;  %v2018_v59 = vrot.slane %v2016_v45, 5  ;;  %v2024_v60 = vrot.slane %v2022_v46, 5  ;;  %v2028_v61 = vrot.slane %v2026_v47, 4  ;;  %v384_v62 = vld [vmem:[%s5372_s21 + $0x14] sm:$0x1]  ;;  %v1378_v15 = vpop.permute.xlu0 %1377 }
 0x145   : > { %1567 = vrot.lane.b32.xlu0 %v4455_v53, %s4547_s4  ;;  %v2001_v1 = vsel %vm4718_vm7, %v1996_v51, %v5431_v33  ;;  %v2034_v56 = vrot.slane %v2032_v55, 5  ;;  %v4160_v2 = vrot.slane %v2191_v34, 9  ;;  %v2345_v3 = vrot.slane %v2192_v43, 5  ;;  %v2196_v4 = vld [vmem:[#allocation2 + $0xc8] sm:$0x1]  ;;  %1418 = vst.msk [vmem:[#allocation3 + $0x40] sm:$0xff] %vm1409_vm11, %v1378_v15 }
 0x146   : > { %391 = vst.msk [vmem:[#allocation2 + $0xd4] sm:$0x1] %vm332_vm1, %v384_v62  ;;  %1391 = vrot.lane.b32.xlu1 %v4113_v40, %s4550_s7  ;;  %v2006_v6 = vrot.slane %v2005_v58, 4  ;;  %v2019_v8 = vor.u32 %v2018_v59, %v2015_v54  ;;  %v2029_v9 = vor.u32 %v2028_v61, %v2024_v60  ;;  %v2348_v13 = vrot.slane %v2193_v44, 5  ;;  %v2690_v17 = vld [vmem:[#allocation2 + $0xc0] sm:$0xf] }
 0x147   : > { %v1056_v14 = vpop.permute.xlu1 %1055  ;;  %v2691_v18 = vld [vmem:[#allocation2 + $0xc4] sm:$0xf]  ;;  %v2346_v28 = vsel %vm4667_vm4, %v4160_v2, %v2345_v3  ;;  %v2347_v7 = vrot.slane %v2345_v3, 4  ;;  %v4161_v19 = vrot.slane %v2194_v48, 9  ;;  %v2352_v20 = vrot.slane %v2195_v50, 5 }
 0x148   : > { %1095 = vst.msk [vmem:[#allocation3 + $0x48] sm:$0xff] %vm1085_vm10, %v1056_v14  ;;  %v2011_v21 = vsel %vm4718_vm7, %v2006_v6, %v2010_v52  ;;  %v2020_v22 = vrot.slane %v2019_v8, 4  ;;  %v2030_v5 = vrot.slane %v2029_v9, 4  ;;  %v2355_v24 = vrot.slane %v2196_v4, 5  ;;  %v2692_v10 = vld [vmem:[#allocation2 + $0xc8] sm:$0x1]  ;;  %v1556_v33 = vpop.permute.xlu0 %1555 }
 0x149   : > { %v4144_v25 = vcombine.low %v2001_v1, %v2011_v21  ;;  %v2349_v26 = vsel %vm4667_vm4, %v2347_v7, %v2348_v13  ;;  %v2353_v27 = vsel %vm4667_vm4, %v4161_v19, %v2352_v20  ;;  %v2354_v29 = vrot.slane %v2352_v20, 4  ;;  %v3521_v39 = vld [vmem:[#allocation3 + $0x38] sm:$0xff]  ;;  %v2693_v32 = vld [vmem:[#allocation2 + $0xcc] sm:$0xf]  ;;  %1596 = vst.msk [vmem:[#allocation3 + $0x40] sm:$0xff] %vm1587_vm12, %v1556_v33  ;;  %v4459_v59 = vld [vmem:[#allocation2 + $0xc0] sm:$0xff]  }
 0x14a   : > { %1569 = vrot.lane.b32.xlu1 %v4456_v0, %s4547_s4  ;;  %v2025_v53 = vsel %vm4718_vm7, %v2020_v22, %v2024_v60  ;;  %v2035_v30 = vsel %vm4718_vm7, %v2030_v5, %v2034_v56  ;;  %v4176_v63 = vcombine.low %v2346_v28, %v2349_v26  ;;  %v3033_v31 = vshrl.u32 %v2690_v17, 16  ;;  %4309 = vmatmul.mubr.bf16.gmra.mrb[12].mxu0 %v3521_v39  ;;  %v2694_v38 = vld [vmem:[#allocation2 + $0xd0] sm:$0xf]  ;;  %v3235_v40 = vld [vmem:[#allocation2 + $0xc0] sm:$0xe]  ;;  %s241_s4 = sand.u32 1, %s4529_s13  }
 0x14b   : > { %v1380_v49 = vpop.permute.xlu1 %1379  ;;  %2112 = vrot.lane.b32.xlu0 %v4144_v25, %s4552_s19  ;;  %v4145_v23 = vcombine.low %v2025_v53, %v2035_v30  ;;  %v2356_v34 = vsel %vm4667_vm4, %v2354_v29, %v2355_v24  ;;  %v3036_v37 = vshll.u32 %v2690_v17, 16  ;;  %v3042_v35 = vshll.u32 %v2691_v18, 16  ;;  %v3236_v11 = vld [vmem:[#allocation2 + $0xc4] sm:$0xf]  ;;  %v3237_v50 = vld [vmem:[#allocation2 + $0xc8] sm:$0x1] }
 0x14c   : > { %1419 = vst.msk [vmem:[#allocation3 + $0x48] sm:$0xff] %vm1409_vm11, %v1380_v49  ;;  %v4177_v36 = vcombine.low %v2353_v27, %v2356_v34  ;;  %v3035_v41 = vrot.slane %v3033_v31, 4  ;;  %v3046_v42 = vshrl.u32 %v2691_v18, 16  ;;  %v3052_v43 = vshll.u32 %v2692_v10, 16  ;;  %v3238_v51 = vld [vmem:[#allocation2 + $0xcc] sm:$0xe] }
 0x14d   : > { %v2695_v44 = vld [vmem:[#allocation2 + $0xd4] sm:$0x1]  ;;  %v3038_v45 = vrot.slane %v3036_v37, 5  ;;  %v3044_v46 = vrot.slane %v3042_v35, 5  ;;  %v3057_v47 = vshrl.u32 %v2693_v32, 16  ;;  %v3060_v48 = vshll.u32 %v2693_v32, 16 }
 0x14e   : > { %2114 = vrot.lane.b32.xlu1 %v4145_v23, %s4552_s19  ;;  %v3048_v52 = vrot.slane %v3046_v42, 4  ;;  %v3054_v54 = vrot.slane %v3052_v43, 5  ;;  %v3066_v55 = vshll.u32 %v2694_v38, 16  ;;  %v3070_v57 = vshrl.u32 %v2694_v38, 16  ;;  %v3239_v1 = vld [vmem:[#allocation2 + $0xd0] sm:$0xf] }
 0x14f   : > { %v1558_v58 = vpop.permute.xlu1 %1557  ;;  %2433 = vrot.lane.b32.xlu0 %v4176_v63, %s4549_s6  ;;  %v3039_v60 = vor.u32 %v3038_v45, %v3035_v41  ;;  %v3059_v61 = vrot.slane %v3057_v47, 4  ;;  %v3062_v62 = vrot.slane %v3060_v48, 5  ;;  %v3076_v0 = vshll.u32 %v2695_v44, 16  ;;  %v3240_v56 = vld [vmem:[#allocation2 + $0xd4] sm:$0x1]  ;;  %v2101_v15 = vpop.permute.xlu0 %2100  ;;  %v4460_v17 = vld [vmem:[#allocation2 + $0xcc] sm:$0xff]  }
 0x150   : > { %1597 = vst.msk [vmem:[#allocation3 + $0x48] sm:$0xff] %vm1587_vm12, %v1558_v58  ;;  %v3049_v2 = vor.u32 %v3048_v52, %v3044_v46  ;;  %v3068_v3 = vrot.slane %v3066_v55, 5  ;;  %v3072_v4 = vrot.slane %v3070_v57, 4  ;;  %v4224_v6 = vrot.slane %v3235_v40, 9  ;;  %s3930_s23 = scalar_lea.sflag [#allocation5], %s241_s4 }
 0x151   : > { %v3040_v8 = vrot.slane %v3039_v60, 4  ;;  %v3063_v9 = vor.u32 %v3062_v62, %v3059_v61  ;;  %v3078_v13 = vrot.slane %v3076_v0, 5  ;;  %v3389_v14 = vrot.slane %v3236_v11, 5  ;;  %2141 = vst.msk [vmem:[#allocation3 + $0x40] sm:$0xff] %vm2132_vm13, %v2101_v15 }
 0x152   : > { %2435 = vrot.lane.b32.xlu1 %v4177_v36, %s4549_s6  ;;  %v3050_v18 = vrot.slane %v3049_v2, 4  ;;  %v3073_v28 = vor.u32 %v3072_v4, %v3068_v3  ;;  %v3392_v7 = vrot.slane %v3237_v50, 5  ;;  %v4225_v19 = vrot.slane %v3238_v51, 9  ;;  %s4251_s6 = sshll.u32 %s4537_s15, 5  ;;  %s4556_s15 = smov [#allocation4]  }
 0x153   : > { %2611 = vrot.lane.b32.xlu0 %v4459_v59, %s4548_s5  ;;  %v3045_v20 = vsel %vm4718_vm7, %v3040_v8, %v3044_v46  ;;  %v3064_v21 = vrot.slane %v3063_v9, 4  ;;  %v3390_v22 = vsel %vm4667_vm4, %v4224_v6, %v3389_v14  ;;  %v3391_v5 = vrot.slane %v3389_v14, 4  ;;  %v2103_v29 = vpop.permute.xlu1 %2102  ;;  %v2422_v30 = vpop.permute.xlu0 %2421  ;;  %s4471_s10 = sshll.u32 %s4556_s15, 4  ;;  %s4472_s10 = int_to_ptr.vmem [resolvable:$false] %s4471_s10 }
 0x154   : > { %v3055_v24 = vsel %vm4718_vm7, %v3050_v18, %v3054_v54  ;;  %v3074_v25 = vrot.slane %v3073_v28, 4  ;;  %v3396_v26 = vrot.slane %v3239_v1, 5  ;;  %v3399_v27 = vrot.slane %v3240_v56, 5  ;;  %2142 = vst.msk [vmem:[#allocation3 + $0x48] sm:$0xff] %vm2132_vm13, %v2103_v29  ;;  %s4473_s11 = scalar_lea.vmem %s4472_s10, 64 }
 0x155   : > { %v4208_v10 = vcombine.low %v3045_v20, %v3055_v24  ;;  %v3069_v39 = vsel %vm4718_vm7, %v3064_v21, %v3068_v3  ;;  %v3393_v53 = vsel %vm4667_vm4, %v3391_v5, %v3392_v7  ;;  %2462 = vst.msk [vmem:[#allocation3 + $0x40] sm:$0xff] %vm2453_vm14, %v2422_v30  ;;  %vm3755_vm0 = vcmask 64512  }
 0x156   : > { %2613 = vrot.lane.b32.xlu1 %v4460_v17, %s4548_s5  ;;  %v3079_v63 = vsel %vm4718_vm7, %v3074_v25, %v3078_v13  ;;  %v3398_v49 = vrot.slane %v3396_v26, 4  ;;  %v4240_v32 = vcombine.low %v3390_v22, %v3393_v53  ;;  %v3397_v33 = vsel %vm4667_vm4, %v4225_v19, %v3396_v26  ;;  %s4047_s5 = sshll.u32 %s241_s4, 1 }
 0x157   : > { %3156 = vrot.lane.b32.xlu0 %v4208_v10, %s4553_s28  ;;  %v4209_v31 = vcombine.low %v3069_v39, %v3079_v63  ;;  %v2424_v34 = vpop.permute.xlu1 %2423  ;;  %v2600_v37 = vpop.permute.xlu0 %2599  ;;  %vm3825_vm1 = vcmask 57344   ;;  %s243_s7 = scalar_lea.vmem [#allocation4], %s4047_s5 }
 0x158   : > { %v3400_v23 = vsel %vm4667_vm4, %v3398_v49, %v3399_v27  ;;  %2463 = vst.msk [vmem:[#allocation3 + $0x48] sm:$0xff] %vm2453_vm14, %v2424_v34  ;;  %s3944_s8 = sshll.u32 %s243_s7, 4  ;;  %s5624_s8 = int_to_ptr.vmem [resolvable:$true] %s3944_s8 }
 0x159   : > { %v4241_v16 = vcombine.low %v3397_v33, %v3400_v23  ;;  %2640 = vst.msk [vmem:[#allocation3 + $0x40] sm:$0xff] %vm2631_vm15, %v2600_v37  ;;  %s4467_s9 = scalar_lea.vmem %s5624_s8, 32  ;;  %p4474_p1 = scmp.lt.s32.totalorder %s5624_s8, %s4472_s10 }
 0x15a   : > { %3158 = vrot.lane.b32.xlu1 %v4209_v31, %s4553_s28  ;;  %p4468_p12 = scmp.ne.s32.totalorder %s5624_s8, %s4467_s9  ;;  %p4475_p2 = scmp.lt.s32.totalorder %s4473_s11, %s4467_s9 }
 0x15b   : > { %3477 = vrot.lane.b32.xlu0 %v4240_v32, %s4554_s29  ;;  %v2602_v35 = vpop.permute.xlu1 %2601  ;;  %v3145_v38 = vpop.permute.xlu0 %3144 }
 0x15c   : > { %2641 = vst.msk [vmem:[#allocation3 + $0x48] sm:$0xff] %vm2631_vm15, %v2602_v35  ;;  %p4469_p13 = pnand %p4468_p12, %p4617_p4  ;;  %p4476_p3 = por %p4475_p2, %p4474_p1 }
 0x15d   : > { %3185 = vst.msk [vmem:[#allocation3 + $0x40] sm:$0xff] %vm3176_vm2, %v3145_v38 }
 0x15e   : > { %3479 = vrot.lane.b32.xlu1 %v4241_v16, %s4554_s29  ;;  %s5622_s29 = scalar_lea.hbm %s5672_s3, %s4251_s6  ;;  %p4470_p0 = pneg %p4469_p13 }
 0x15f   : > { %v3147_v12 = vpop.permute.xlu1 %3146  ;;  %v3466_v40 = vpop.permute.xlu0 %3465 }
 0x160   : > { %3186 = vst.msk [vmem:[#allocation3 + $0x48] sm:$0xff] %vm3176_vm2, %v3147_v12  ;;  %p4477_p5 = pnand %p4476_p3, %p4470_p0 }
 0x161   : > { %3506 = vst.msk [vmem:[#allocation3 + $0x40] sm:$0xff] %vm3497_vm3, %v3466_v40 }
 0x163   : > { %v3468_v36 = vpop.permute.xlu0 %3467 }
 0x164   : > { %v1058_v41 = vpop.permute.xlu1 %1057  ;;  %3507 = vst.msk [vmem:[#allocation3 + $0x48] sm:$0xff] %vm3497_vm3, %v3468_v36 }
 0x165   : > { %1096 = vst.msk [vmem:[#allocation3 + $0x50] sm:$0xff] %vm1085_vm10, %v1058_v41 }
 0x168   : > { %v3522_v42 = vld [vmem:[#allocation3 + $0x40] sm:$0xff] }
 0x169   : > { %4312 = vmatprep.mubr.bf16.mxu1 %v3522_v42  ;;  %v1382_v43 = vpop.permute.xlu0 %1381 }
 0x16a   : > { %v1060_v44 = vpop.permute.xlu1 %1059  ;;  %1420 = vst.msk [vmem:[#allocation3 + $0x50] sm:$0xff] %vm1409_vm11, %v1382_v43 }
 0x16b   : > { %1097 = vst.msk [vmem:[#allocation3 + $0x58] sm:$0xff] %vm1085_vm10, %v1060_v44  ;;  %v3523_v11 = vld [vmem:[#allocation3 + $0x48] sm:$0xff] }
 0x16c   : > { %4313 = vmatmul.mubr.bf16.vlgmr.msra.gmra.mrb[0].mxu1 %v3523_v11 }
 0x16d   : > { %v1560_v45 = vpop.permute.xlu0 %1559 }
 0x16e   : > { %v1384_v46 = vpop.permute.xlu1 %1383  ;;  %1598 = vst.msk [vmem:[#allocation3 + $0x50] sm:$0xff] %vm1587_vm12, %v1560_v45 }
 0x16f   : > { %1421 = vst.msk [vmem:[#allocation3 + $0x58] sm:$0xff] %vm1409_vm11, %v1384_v46 }
 0x172   : > { %v1562_v47 = vpop.permute.xlu1 %1561 }
 0x173   : > { %1599 = vst.msk [vmem:[#allocation3 + $0x58] sm:$0xff] %vm1587_vm12, %v1562_v47  ;;  %v2105_v48 = vpop.permute.xlu0 %2104 }
 0x174   : > { %2143 = vst.msk [vmem:[#allocation3 + $0x50] sm:$0xff] %vm2132_vm13, %v2105_v48 }
 0x176   : > { %v2107_v50 = vpop.permute.xlu1 %2106 }
 0x177   : > { %2144 = vst.msk [vmem:[#allocation3 + $0x58] sm:$0xff] %vm2132_vm13, %v2107_v50  ;;  %v2426_v51 = vpop.permute.xlu0 %2425 }
 0x178   : > { %2464 = vst.msk [vmem:[#allocation3 + $0x50] sm:$0xff] %vm2453_vm14, %v2426_v51 }
 0x17a   : > { %v2428_v52 = vpop.permute.xlu1 %2427 }
 0x17b   : > { %2465 = vst.msk [vmem:[#allocation3 + $0x58] sm:$0xff] %vm2453_vm14, %v2428_v52  ;;  %v2604_v54 = vpop.permute.xlu0 %2603 }
 0x17c   : > { %2642 = vst.msk [vmem:[#allocation3 + $0x50] sm:$0xff] %vm2631_vm15, %v2604_v54 }
 0x17e   : > { %v2606_v55 = vpop.permute.xlu1 %2605 }
 0x17f   : > { %2643 = vst.msk [vmem:[#allocation3 + $0x58] sm:$0xff] %vm2631_vm15, %v2606_v55  ;;  %v3149_v57 = vpop.permute.xlu0 %3148 }
 0x180   : > { %3187 = vst.msk [vmem:[#allocation3 + $0x50] sm:$0xff] %vm3176_vm2, %v3149_v57 }
 0x182   : > { %v3151_v58 = vpop.permute.xlu1 %3150 }
 0x183   : > { %3188 = vst.msk [vmem:[#allocation3 + $0x58] sm:$0xff] %vm3176_vm2, %v3151_v58  ;;  %v3470_v59 = vpop.permute.xlu0 %3469 }
 0x184   : > { %3508 = vst.msk [vmem:[#allocation3 + $0x50] sm:$0xff] %vm3497_vm3, %v3470_v59 }
 0x188   : > { %v3472_v60 = vpop.permute.xlu0 %3471 }
 0x189   : > { %3509 = vst.msk [vmem:[#allocation3 + $0x58] sm:$0xff] %vm3497_vm3, %v3472_v60  ;;  %v1062_v61 = vpop.permute.xlu1 %1061 }
 0x18a   : > { %1098 = vst.msk [vmem:[#allocation3 + $0x60] sm:$0xff] %vm1085_vm10, %v1062_v61 }
 0x18b   : > { %v3524_v62 = vld [vmem:[#allocation3 + $0x50] sm:$0xff] }
 0x18c   : > { %4316 = vmatprep.mubr.bf16.mxu1 %v3524_v62 }
 0x18e   : > { %v1386_v0 = vpop.permute.xlu0 %1385  ;;  %v1064_v1 = vpop.permute.xlu1 %1063 }
 0x18f   : > { %1422 = vst.msk [vmem:[#allocation3 + $0x60] sm:$0xff] %vm1409_vm11, %v1386_v0 }
 0x190   : > { %1099 = vst.msk [vmem:[#allocation3 + $0x68] sm:$0xff] %vm1085_vm10, %v1064_v1  ;;  %v3525_v56 = vld [vmem:[#allocation3 + $0x58] sm:$0xff] }
 0x191   : > { %4317 = vmatmul.mubr.bf16.gmra.mrb[4].mxu1 %v3525_v56 }
 0x192   : > { %v1564_v2 = vpop.permute.xlu0 %1563  ;;  %v1388_v3 = vpop.permute.xlu1 %1387 }
 0x193   : > { %1600 = vst.msk [vmem:[#allocation3 + $0x60] sm:$0xff] %vm1587_vm12, %v1564_v2 }
 0x194   : > { %1423 = vst.msk [vmem:[#allocation3 + $0x68] sm:$0xff] %vm1409_vm11, %v1388_v3 }
 0x196   : > { %v1566_v4 = vpop.permute.xlu1 %1565 }
 0x197   : > { %1601 = vst.msk [vmem:[#allocation3 + $0x68] sm:$0xff] %vm1587_vm12, %v1566_v4 }
 0x198   : > { %v2109_v6 = vpop.permute.xlu0 %2108 }
 0x199   : > { %2145 = vst.msk [vmem:[#allocation3 + $0x60] sm:$0xff] %vm2132_vm13, %v2109_v6 }
 0x19a   : > { %v2111_v8 = vpop.permute.xlu1 %2110 }
 0x19b   : > { %2146 = vst.msk [vmem:[#allocation3 + $0x68] sm:$0xff] %vm2132_vm13, %v2111_v8 }
 0x19c   : > { %v2430_v9 = vpop.permute.xlu0 %2429 }
 0x19d   : > { %2466 = vst.msk [vmem:[#allocation3 + $0x60] sm:$0xff] %vm2453_vm14, %v2430_v9 }
 0x19e   : > { %v2432_v13 = vpop.permute.xlu1 %2431 }
 0x19f   : > { %2467 = vst.msk [vmem:[#allocation3 + $0x68] sm:$0xff] %vm2453_vm14, %v2432_v13 }
 0x1a0   : > { %v2608_v14 = vpop.permute.xlu0 %2607 }
 0x1a1   : > { %2644 = vst.msk [vmem:[#allocation3 + $0x60] sm:$0xff] %vm2631_vm15, %v2608_v14 }
 0x1a2   : > { %v2610_v15 = vpop.permute.xlu1 %2609 }
 0x1a3   : > { %2645 = vst.msk [vmem:[#allocation3 + $0x68] sm:$0xff] %vm2631_vm15, %v2610_v15 }
 0x1a4   : > { %v3153_v17 = vpop.permute.xlu0 %3152 }
 0x1a5   : > { %3189 = vst.msk [vmem:[#allocation3 + $0x60] sm:$0xff] %vm3176_vm2, %v3153_v17 }
 0x1a6   : > { %v3155_v18 = vpop.permute.xlu1 %3154 }
 0x1a7   : > { %3190 = vst.msk [vmem:[#allocation3 + $0x68] sm:$0xff] %vm3176_vm2, %v3155_v18 }
 0x1a8   : > { %v3474_v28 = vpop.permute.xlu0 %3473 }
 0x1a9   : > { %3510 = vst.msk [vmem:[#allocation3 + $0x60] sm:$0xff] %vm3497_vm3, %v3474_v28 }
 0x1ad   : > { %v3476_v7 = vpop.permute.xlu0 %3475 }
 0x1ae   : > { %3511 = vst.msk [vmem:[#allocation3 + $0x68] sm:$0xff] %vm3497_vm3, %v3476_v7 }
 0x1af   : > { %v1066_v19 = vpop.permute.xlu1 %1065 }
 0x1b0   : > { %1100 = vst.msk [vmem:[#allocation3 + $0x70] sm:$0xff] %vm1085_vm10, %v1066_v19  ;;  %v3526_v20 = vld [vmem:[#allocation3 + $0x60] sm:$0xff] }
 0x1b1   : > { %4320 = vmatprep.mubr.bf16.mxu1 %v3526_v20 }
 0x1b2   : > { %v4298_v24 = vpop.f32.mrb[0].mxu0 }
 0x1b3   : > { %v1390_v21 = vpop.permute.xlu0 %1389  ;;  %v3628_v25 = vpop.f32.mrb[1].mxu0  ;;  %v3829_v53 = vmul.f32 %v4298_v24, %v4298_v24  ;;  %v3759_v32 = vsel %vm3755_vm0, %v4298_v24, 0.0 }
 0x1b4   : > { %v1068_v22 = vpop.permute.xlu1 %1067  ;;  %1424 = vst.msk [vmem:[#allocation3 + $0x70] sm:$0xff] %vm1409_vm11, %v1390_v21  ;;  %v3827_v27 = vmul.f32 %v3628_v25, %v3628_v25  ;;  %v4299_v29 = vpop.f32.mrb[2].mxu0  ;;  %v3756_v30 = vsel %vm3755_vm0, %v3628_v25, 0.0 }
 0x1b5   : > { %1101 = vst.msk [vmem:[#allocation3 + $0x78] sm:$0xff] %vm1085_vm10, %v1068_v22  ;;  %v3527_v5 = vld [vmem:[#allocation3 + $0x68] sm:$0xff]  ;;  %v3631_v39 = vpop.f32.mrb[3].mxu0  ;;  %v3830_v23 = vmul.f32 %v4299_v29, %v4299_v29  ;;  %v3862_v12 = vsel %vm3755_vm0, %v3829_v53, 0.0  ;;  %v3761_v40 = vsel %vm3755_vm0, %v4299_v29, 0.0 }
 0x1b6   : > { %4321 = vmatmul.mubr.bf16.gmra.mrb[8].mxu1 %v3527_v5  ;;  %v3757_v63 = vsel %vm3755_vm0, %v3631_v39, 0.0  ;;  %v3828_v49 = vmul.f32 %v3631_v39, %v3631_v39  ;;  %v3859_v33 = vsel %vm3755_vm0, %v3827_v27, 0.0 }
 0x1b7   : > { %v1568_v26 = vpop.permute.xlu0 %1567  ;;  %v3758_v31 = vadd.f32 %v3757_v63, %v3756_v30  ;;  %v3864_v42 = vsel %vm3755_vm0, %v3830_v23, 0.0 }
 0x1b8   : > { %v1392_v10 = vpop.permute.xlu1 %1391  ;;  %1602 = vst.msk [vmem:[#allocation3 + $0x70] sm:$0xff] %vm1587_vm12, %v1568_v26  ;;  %v3860_v34 = vsel %vm3755_vm0, %v3828_v49, 0.0 }
 0x1b9   : > { %1425 = vst.msk [vmem:[#allocation3 + $0x78] sm:$0xff] %vm1409_vm11, %v1392_v10  ;;  %v3760_v16 = vadd.f32 %v3759_v32, %v3758_v31  ;;  %v3861_v35 = vadd.f32 %v3860_v34, %v3859_v33 }
 0x1bb   : > { %v3863_v36 = vadd.f32 %v3862_v12, %v3861_v35  ;;  %v3762_v41 = vadd.f32 %v3761_v40, %v3760_v16 }
 0x1bc   : > { %v1570_v37 = vpop.permute.xlu1 %1569 }
 0x1bd   : > { %1603 = vst.msk [vmem:[#allocation3 + $0x78] sm:$0xff] %vm1587_vm12, %v1570_v37  ;;  %v2113_v38 = vpop.permute.xlu0 %2112  ;;  %v3865_v44 = vadd.f32 %v3864_v42, %v3863_v36 }
 0x1be   : > { %2147 = vst.msk [vmem:[#allocation3 + $0x70] sm:$0xff] %vm2132_vm13, %v2113_v38 }
 0x1c0   : > { %v2115_v43 = vpop.permute.xlu1 %2114 }
 0x1c1   : > { %2148 = vst.msk [vmem:[#allocation3 + $0x78] sm:$0xff] %vm2132_vm13, %v2115_v43  ;;  %v2434_v11 = vpop.permute.xlu0 %2433 }
 0x1c2   : > { %2468 = vst.msk [vmem:[#allocation3 + $0x70] sm:$0xff] %vm2453_vm14, %v2434_v11 }
 0x1c4   : > { %v2436_v45 = vpop.permute.xlu1 %2435 }
 0x1c5   : > { %2469 = vst.msk [vmem:[#allocation3 + $0x78] sm:$0xff] %vm2453_vm14, %v2436_v45  ;;  %v2612_v46 = vpop.permute.xlu0 %2611 }
 0x1c6   : > { %2646 = vst.msk [vmem:[#allocation3 + $0x70] sm:$0xff] %vm2631_vm15, %v2612_v46 }
 0x1c8   : > { %v2614_v47 = vpop.permute.xlu1 %2613 }
 0x1c9   : > { %2647 = vst.msk [vmem:[#allocation3 + $0x78] sm:$0xff] %vm2631_vm15, %v2614_v47  ;;  %v3157_v48 = vpop.permute.xlu0 %3156 }
 0x1ca   : > { %3191 = vst.msk [vmem:[#allocation3 + $0x70] sm:$0xff] %vm3176_vm2, %v3157_v48 }
 0x1cc   : > { %v3159_v50 = vpop.permute.xlu1 %3158 }
 0x1cd   : > { %3192 = vst.msk [vmem:[#allocation3 + $0x78] sm:$0xff] %vm3176_vm2, %v3159_v50  ;;  %v3478_v51 = vpop.permute.xlu0 %3477 }
 0x1ce   : > { %3512 = vst.msk [vmem:[#allocation3 + $0x70] sm:$0xff] %vm3497_vm3, %v3478_v51 }
 0x1d0   : > { %v3480_v52 = vpop.permute.xlu1 %3479 }
 0x1d1   : > { %3513 = vst.msk [vmem:[#allocation3 + $0x78] sm:$0xff] %vm3497_vm3, %v3480_v52 }
 0x1d2   : > { %v4302_v54 = vpop.f32.mrb[4].mxu0 }
 0x1d3   : > { %v3644_v55 = vpop.f32.mrb[5].mxu0  ;;  %v3833_v0 = vmul.f32 %v4302_v54, %v4302_v54  ;;  %v3767_v8 = vsel %vm3755_vm0, %v4302_v54, 0.0 }
 0x1d4   : > { %v3763_v58 = vsel %vm3755_vm0, %v3644_v55, 0.0  ;;  %v3831_v59 = vmul.f32 %v3644_v55, %v3644_v55  ;;  %v4303_v60 = vpop.f32.mrb[6].mxu0 }
 0x1d5   : > { %v3528_v57 = vld [vmem:[#allocation3 + $0x70] sm:$0xff]  ;;  %v3764_v61 = vadd.f32 %v3763_v58, %v3762_v41  ;;  %v3647_v62 = vpop.f32.mrb[7].mxu0  ;;  %v3834_v9 = vmul.f32 %v4303_v60, %v4303_v60  ;;  %v3870_v17 = vsel %vm3755_vm0, %v3833_v0, 0.0  ;;  %v3769_v18 = vsel %vm3755_vm0, %v4303_v60, 0.0 }
 0x1d6   : > { %4324 = vmatprep.mubr.bf16.mxu1 %v3528_v57  ;;  %v3866_v1 = vsel %vm3755_vm0, %v3831_v59, 0.0  ;;  %v3765_v56 = vsel %vm3755_vm0, %v3647_v62, 0.0  ;;  %v3832_v2 = vmul.f32 %v3647_v62, %v3647_v62 }
 0x1d7   : > { %v3867_v4 = vadd.f32 %v3866_v1, %v3865_v44  ;;  %v3766_v6 = vadd.f32 %v3765_v56, %v3764_v61  ;;  %v3872_v19 = vsel %vm3755_vm0, %v3834_v9, 0.0 }
 0x1d8   : > { %v3529_v3 = vld [vmem:[#allocation3 + $0x78] sm:$0xff]  ;;  %v3868_v13 = vsel %vm3755_vm0, %v3832_v2, 0.0 }
 0x1d9   : > { %4325 = vmatmul.mubr.bf16.gmra.mrb[12].mxu1 %v3529_v3  ;;  %v3768_v14 = vadd.f32 %v3767_v8, %v3766_v6  ;;  %v3869_v15 = vadd.f32 %v3868_v13, %v3867_v4 }
 0x1db   : > { %v3871_v28 = vadd.f32 %v3870_v17, %v3869_v15  ;;  %v3770_v7 = vadd.f32 %v3769_v18, %v3768_v14 }
 0x1dd   : > { %v3873_v20 = vadd.f32 %v3872_v19, %v3871_v28 }
 0x1f6   : > { %v4306_v21 = vpop.f32.mrb[8].mxu0 }
 0x1f7   : > { %v3660_v22 = vpop.f32.mrb[9].mxu0  ;;  %v3837_v29 = vmul.f32 %v4306_v21, %v4306_v21  ;;  %v3775_v49 = vsel %vm3755_vm0, %v4306_v21, 0.0 }
 0x1f8   : > { %v3771_v5 = vsel %vm3755_vm0, %v3660_v22, 0.0  ;;  %v3835_v24 = vmul.f32 %v3660_v22, %v3660_v22  ;;  %v4307_v25 = vpop.f32.mrb[10].mxu0 }
 0x1f9   : > { %v3772_v26 = vadd.f32 %v3771_v5, %v3770_v7  ;;  %v3663_v27 = vpop.f32.mrb[11].mxu0  ;;  %v3838_v31 = vmul.f32 %v4307_v25, %v4307_v25  ;;  %v3878_v34 = vsel %vm3755_vm0, %v3837_v29, 0.0  ;;  %v3777_v37 = vsel %vm3755_vm0, %v4307_v25, 0.0 }
 0x1fa   : > { %v3874_v10 = vsel %vm3755_vm0, %v3835_v24, 0.0  ;;  %v3773_v39 = vsel %vm3755_vm0, %v3663_v27, 0.0  ;;  %v3836_v53 = vmul.f32 %v3663_v27, %v3663_v27 }
 0x1fb   : > { %v3875_v30 = vadd.f32 %v3874_v10, %v3873_v20  ;;  %v3774_v63 = vadd.f32 %v3773_v39, %v3772_v26  ;;  %v3880_v38 = vsel %vm3755_vm0, %v3838_v31, 0.0 }
 0x1fc   : > { %v3876_v32 = vsel %vm3755_vm0, %v3836_v53, 0.0 }
 0x1fd   : > { %v3776_v33 = vadd.f32 %v3775_v49, %v3774_v63  ;;  %v3877_v23 = vadd.f32 %v3876_v32, %v3875_v30 }
 0x1ff   : > { %v3879_v16 = vadd.f32 %v3878_v34, %v3877_v23  ;;  %v3778_v35 = vadd.f32 %v3777_v37, %v3776_v33 }
 0x201   : > { %v3881_v12 = vadd.f32 %v3880_v38, %v3879_v16 }
 0x21d   : > { %v4310_v40 = vpop.f32.mrb[12].mxu0 }
 0x21e   : > { %v3676_v36 = vpop.f32.mrb[13].mxu0  ;;  %v3841_v45 = vmul.f32 %v4310_v40, %v4310_v40  ;;  %v3783_v52 = vsel %vm3755_vm0, %v4310_v40, 0.0 }
 0x21f   : > { %v3779_v41 = vsel %vm3755_vm0, %v3676_v36, 0.0  ;;  %v3839_v42 = vmul.f32 %v3676_v36, %v3676_v36  ;;  %v4311_v43 = vpop.f32.mrb[14].mxu0 }
 0x220   : > { %v3780_v44 = vadd.f32 %v3779_v41, %v3778_v35  ;;  %v3679_v11 = vpop.f32.mrb[15].mxu0  ;;  %v3842_v54 = vmul.f32 %v4311_v43, %v4311_v43  ;;  %v3886_v59 = vsel %vm3755_vm0, %v3841_v45, 0.0  ;;  %v3785_v60 = vsel %vm3755_vm0, %v4311_v43, 0.0 }
 0x221   : > { %v3882_v46 = vsel %vm3755_vm0, %v3839_v42, 0.0  ;;  %v3781_v47 = vsel %vm3755_vm0, %v3679_v11, 0.0  ;;  %v3840_v48 = vmul.f32 %v3679_v11, %v3679_v11 }
 0x222   : > { %v3883_v50 = vadd.f32 %v3882_v46, %v3881_v12  ;;  %v3782_v51 = vadd.f32 %v3781_v47, %v3780_v44  ;;  %v3888_v0 = vsel %vm3755_vm0, %v3842_v54, 0.0 }
 0x223   : > { %v3884_v55 = vsel %vm3755_vm0, %v3840_v48, 0.0 }
 0x224   : > { %v3784_v57 = vadd.f32 %v3783_v52, %v3782_v51  ;;  %v3885_v58 = vadd.f32 %v3884_v55, %v3883_v50 }
 0x226   : > { %v3887_v61 = vadd.f32 %v3886_v59, %v3885_v58  ;;  %v3786_v62 = vadd.f32 %v3785_v60, %v3784_v57 }
 0x228   : > { %v3889_v1 = vadd.f32 %v3888_v0, %v3887_v61 }
 0x23f   : > { %v4314_v56 = vpop.f32.mrb[0].mxu1 }
 0x240   : > { %v3692_v2 = vpop.f32.mrb[1].mxu1  ;;  %v3845_v13 = vmul.f32 %v4314_v56, %v4314_v56  ;;  %v3791_v7 = vsel %vm3755_vm0, %v4314_v56, 0.0 }
 0x241   : > { %v3787_v3 = vsel %vm3755_vm0, %v3692_v2, 0.0  ;;  %v3843_v4 = vmul.f32 %v3692_v2, %v3692_v2  ;;  %v4315_v6 = vpop.f32.mrb[2].mxu1 }
 0x242   : > { %v3788_v8 = vadd.f32 %v3787_v3, %v3786_v62  ;;  %v3695_v9 = vpop.f32.mrb[3].mxu1  ;;  %v3846_v19 = vmul.f32 %v4315_v6, %v4315_v6  ;;  %v3894_v5 = vsel %vm3755_vm0, %v3845_v13, 0.0  ;;  %v3793_v24 = vsel %vm3755_vm0, %v4315_v6, 0.0 }
 0x243   : > { %v3890_v14 = vsel %vm3755_vm0, %v3843_v4, 0.0  ;;  %v3789_v15 = vsel %vm3755_vm0, %v3695_v9, 0.0  ;;  %v3844_v17 = vmul.f32 %v3695_v9, %v3695_v9 }
 0x244   : > { %v3891_v18 = vadd.f32 %v3890_v14, %v3889_v1  ;;  %v3790_v28 = vadd.f32 %v3789_v15, %v3788_v8  ;;  %v3896_v27 = vsel %vm3755_vm0, %v3846_v19, 0.0 }
 0x245   : > { %v3892_v20 = vsel %vm3755_vm0, %v3844_v17, 0.0 }
 0x246   : > { %v3792_v21 = vadd.f32 %v3791_v7, %v3790_v28  ;;  %v3893_v22 = vadd.f32 %v3892_v20, %v3891_v18 }
 0x248   : > { %v3895_v25 = vadd.f32 %v3894_v5, %v3893_v22  ;;  %v3794_v26 = vadd.f32 %v3793_v24, %v3792_v21 }
 0x24a   : > { %v3897_v29 = vadd.f32 %v3896_v27, %v3895_v25 }
 0x264   : > { %v4318_v10 = vpop.f32.mrb[4].mxu1 }
 0x265   : > { %v3708_v39 = vpop.f32.mrb[5].mxu1  ;;  %v3849_v32 = vmul.f32 %v4318_v10, %v4318_v10  ;;  %v3799_v35 = vsel %vm3755_vm0, %v4318_v10, 0.0 }
 0x266   : > { %v3795_v53 = vsel %vm3755_vm0, %v3708_v39, 0.0  ;;  %v3847_v30 = vmul.f32 %v3708_v39, %v3708_v39  ;;  %v4319_v63 = vpop.f32.mrb[6].mxu1 }
 0x267   : > { %v3796_v49 = vadd.f32 %v3795_v53, %v3794_v26  ;;  %v3711_v31 = vpop.f32.mrb[7].mxu1  ;;  %v3850_v38 = vmul.f32 %v4319_v63, %v4319_v63  ;;  %v3902_v41 = vsel %vm3755_vm0, %v3849_v32, 0.0  ;;  %v3801_v42 = vsel %vm3755_vm0, %v4319_v63, 0.0 }
 0x268   : > { %v3898_v33 = vsel %vm3755_vm0, %v3847_v30, 0.0  ;;  %v3797_v23 = vsel %vm3755_vm0, %v3711_v31, 0.0  ;;  %v3848_v34 = vmul.f32 %v3711_v31, %v3711_v31 }
 0x269   : > { %v3899_v37 = vadd.f32 %v3898_v33, %v3897_v29  ;;  %v3798_v16 = vadd.f32 %v3797_v23, %v3796_v49  ;;  %v3904_v11 = vsel %vm3755_vm0, %v3850_v38, 0.0 }
 0x26a   : > { %v3900_v12 = vsel %vm3755_vm0, %v3848_v34, 0.0 }
 0x26b   : > { %v3800_v40 = vadd.f32 %v3799_v35, %v3798_v16  ;;  %v3901_v36 = vadd.f32 %v3900_v12, %v3899_v37 }
 0x26d   : > { %v3903_v43 = vadd.f32 %v3902_v41, %v3901_v36  ;;  %v3802_v44 = vadd.f32 %v3801_v42, %v3800_v40 }
 0x26f   : > { %v3905_v45 = vadd.f32 %v3904_v11, %v3903_v43 }
 0x289   : > { %v4322_v46 = vpop.f32.mrb[8].mxu1 }
 0x28a   : > { %v3724_v47 = vpop.f32.mrb[9].mxu1  ;;  %v3853_v55 = vmul.f32 %v4322_v46, %v4322_v46  ;;  %v3807_v62 = vsel %vm3755_vm0, %v4322_v46, 0.0 }
 0x28b   : > { %v3803_v48 = vsel %vm3755_vm0, %v3724_v47, 0.0  ;;  %v3851_v50 = vmul.f32 %v3724_v47, %v3724_v47  ;;  %v4323_v51 = vpop.f32.mrb[10].mxu1 }
 0x28c   : > { %v3804_v52 = vadd.f32 %v3803_v48, %v3802_v44  ;;  %v3727_v54 = vpop.f32.mrb[11].mxu1  ;;  %v3854_v0 = vmul.f32 %v4323_v51, %v4323_v51  ;;  %v3910_v3 = vsel %vm3755_vm0, %v3853_v55, 0.0  ;;  %v3809_v4 = vsel %vm3755_vm0, %v4323_v51, 0.0 }
 0x28d   : > { %v3906_v57 = vsel %vm3755_vm0, %v3851_v50, 0.0  ;;  %v3805_v58 = vsel %vm3755_vm0, %v3727_v54, 0.0  ;;  %v3852_v59 = vmul.f32 %v3727_v54, %v3727_v54 }
 0x28e   : > { %v3907_v60 = vadd.f32 %v3906_v57, %v3905_v45  ;;  %v3806_v61 = vadd.f32 %v3805_v58, %v3804_v52  ;;  %v3912_v9 = vsel %vm3755_vm0, %v3854_v0, 0.0 }
 0x28f   : > { %v3908_v1 = vsel %vm3755_vm0, %v3852_v59, 0.0 }
 0x290   : > { %v3808_v56 = vadd.f32 %v3807_v62, %v3806_v61  ;;  %v3909_v2 = vadd.f32 %v3908_v1, %v3907_v60 }
 0x292   : > { %v3911_v6 = vadd.f32 %v3910_v3, %v3909_v2  ;;  %v3810_v8 = vadd.f32 %v3809_v4, %v3808_v56 }
 0x294   : > { %v3913_v13 = vadd.f32 %v3912_v9, %v3911_v6 }
 0x2ac   : > { %v4326_v14 = vpop.f32.mrb[12].mxu1 }
 0x2ad   : > { %v3740_v15 = vpop.f32.mrb[13].mxu1  ;;  %v3857_v20 = vmul.f32 %v4326_v14, %v4326_v14  ;;  %v3815_v26 = vsel %vm3755_vm0, %v4326_v14, 0.0 }
 0x2ae   : > { %v3811_v17 = vsel %vm3755_vm0, %v3740_v15, 0.0  ;;  %v3855_v18 = vmul.f32 %v3740_v15, %v3740_v15  ;;  %v4327_v28 = vpop.f32.mrb[14].mxu1 }
 0x2af   : > { %v3812_v7 = vadd.f32 %v3811_v17, %v3810_v8  ;;  %v3743_v19 = vpop.f32.mrb[15].mxu1  ;;  %v3858_v27 = vmul.f32 %v4327_v28, %v4327_v28  ;;  %v3918_v53 = vsel %vm3755_vm0, %v3857_v20, 0.0  ;;  %v3817_v30 = vsel %vm3755_vm0, %v4327_v28, 0.0 }
 0x2b0   : > { %v3914_v21 = vsel %vm3755_vm0, %v3855_v18, 0.0  ;;  %v3813_v22 = vsel %vm3755_vm0, %v3743_v19, 0.0  ;;  %v3856_v5 = vmul.f32 %v3743_v19, %v3743_v19 }
 0x2b1   : > { %v3915_v24 = vadd.f32 %v3914_v21, %v3913_v13  ;;  %v3814_v25 = vadd.f32 %v3813_v22, %v3812_v7  ;;  %v3920_v31 = vsel %vm3755_vm0, %v3858_v27, 0.0 }
 0x2b2   : > { %v3916_v29 = vsel %vm3755_vm0, %v3856_v5, 0.0 }
 0x2b3   : > { %v3816_v10 = vadd.f32 %v3815_v26, %v3814_v25  ;;  %v3917_v39 = vadd.f32 %v3916_v29, %v3915_v24 }
 0x2b5   : > { %v3818_v63 = vadd.f32 %v3817_v30, %v3816_v10  ;;  %v3919_v49 = vadd.f32 %v3918_v53, %v3917_v39 }
 0x2b7   : > { %v3819_v32 = vrot.slane %v3818_v63, 4  ;;  %v3921_v33 = vadd.f32 %v3920_v31, %v3919_v49 }
 0x2b9   : > { %v3820_v23 = vadd.f32 %v3819_v32, %v3818_v63  ;;  %v3922_v34 = vrot.slane %v3921_v33, 4 }
 0x2bb   : > { %v3821_v37 = vrot.slane %v3820_v23, 2  ;;  %v3923_v16 = vadd.f32 %v3922_v34, %v3921_v33 }
 0x2bd   : > { %v3822_v35 = vadd.f32 %v3821_v37, %v3820_v23  ;;  %v3924_v38 = vrot.slane %v3923_v16, 2 }
 0x2bf   : > { %v3823_v12 = vrot.slane %v3822_v35, 1  ;;  %v3925_v40 = vadd.f32 %v3924_v38, %v3923_v16 }
 0x2c1   : > { %v3824_v36 = vadd.f32 %v3823_v12, %v3822_v35  ;;  %v3926_v41 = vrot.slane %v3925_v40, 1 }
 0x2c3   : > { %3826 = vst.msk [vmem:[%s243_s7] sm:$0x1] %vm3825_vm1, %v3824_v36  ;;  %v3927_v42 = vadd.f32 %v3926_v41, %v3925_v40 }
 0x2c5   : > { %3928 = vst.msk [vmem:[%s243_s7 + $0x1] sm:$0x1] %vm3825_vm1, %v3927_v42 }
 0x2c6   : > { %4480 = shalt.err (!%p4477_p5)
}
 0x2c7   : > { %s4481_s18 = scalar_lea.hbm %s5622_s29, 32  ;;  %s4485_s27 = scalar_lea.hbm %s5672_s3, 64 }
 0x2c8   : > { %p4482_p6 = scmp.ne.s32.totalorder %s5622_s29, %s4481_s18  ;;  %p4486_p10 = scmp.lt.u32.totalorder %s5622_s29, %s5672_s3 }
 0x2c9   : > { %p4487_p11 = scmp.lt.u32.totalorder %s4485_s27, %s4481_s18  ;;  %p4489_p13 = scmp.lt.u32.totalorder %s4481_s18, %s5622_s29 }
 0x2ca   : > { %p4483_p7 = pnand %p4482_p6, %p4617_p4 }
 0x2cb   : > { %p4488_p12 = por %p4487_p11, %p4486_p10 }
 0x2cc   : > { %p4484_p9 = pneg %p4483_p7 }
 0x2cd   : > { %p4490_p0 = por %p4489_p13, %p4488_p12 }
 0x2cf   : > { %p4491_p1 = pnand %p4490_p0, %p4484_p9 }
 0x2d1   : > { %4494 = shalt.err (!%p4491_p1)
}
 0x2d2   : > { %4346 = dma.vmem_to_hbm [thread:$0]  (%p4617_p4), %s5624_s8, 32, %s5622_s29, %s3930_s23  }
 0x2d3 PF: > { %p4353_p2 = scmp.ge.s32.totalorder %s4545_s17, 2  ;;  %s3956_s5 = sand.u32 1, %s4525_s12  }
 0x2d4   : > { %s3957_s6 = scalar_lea.sflag [#allocation5], %s3956_s5 }
 0x2d5   : > { %p4349_p3 = pnand %p4353_p2, %p4624_p8 }
 0x2d7   : > { %4520 = dma.done.wait (!%p4349_p3), %s3957_s6, 32  }
 0x2d8   : > { %4522 = vsyncadd (!%p4349_p3), %s3957_s6, 4294967264  ;;  %s16_s17 = sadd.s32 1, %s4545_s17   ;;  %s5679_s12 = smov %s4529_s13 }
 0x2d9   : > { %p13_p5 = scmp.ge.s32.totalorder %s16_s17, 4   ;;  %s5680_s13 = smov %s4533_s14 }
 0x2da   : > { %s5681_s14 = smov %s4630_s25  ;;  %s5682_s15 = smov %s4541_s16 }
 0x2db   : > { %s5683_s16 = smov %s5685_s20  ;;  %15 = sbr.rel (!%p13_p5) target bundleno = 4 (0x4), region = 73 }
 0x2e2   :  { %3962 = vsyncpa [#allocation5], 1 }
 0x2e3   :  { %3964 = vsyncpa [#allocation5 + $0x1], 1 }

</bundles_post_ra>
